<compile_context>
chip_gen: v5e
topology: v5e:2x2
jax: 0.10.0
libtpu: 0.0.40
codegen_flags: <defaults>
</compile_context>

<pallas_src>
import math

import jax
import jax.numpy as jnp
from jax.experimental import pallas as pl
from jax.experimental.pallas import tpu as pltpu

# ---------------- model dims (small, synthetic) ----------------
BATCH = 2
CHANNELS = 3                      # ViT expects RGB images
IMG = 16
PATCH = 4
NUM_PATCHES = (IMG // PATCH) ** 2             # 16
SEQ = NUM_PATCHES + 1                         # +1 CLS token = 17
SEQ_PAD = 24                                  # padded to a multiple of 8
ROWS = BATCH * SEQ_PAD                        # 48 stacked sequence rows
PATCH_DIM = CHANNELS * PATCH * PATCH          # 48
HIDDEN = 32                                   # feature_dim
NUM_HEADS = 2
HEAD_DIM = HIDDEN // NUM_HEADS                # 16
MLP_DIM = 64
NUM_LAYERS = 2
NUM_CLASSES = 10
OUT_PAD = 128                                 # lane-dense logits width
LN_EPS = 1e-12                                # HF ViT default
LEAKY_SLOPE = 0.01                            # nn.LeakyReLU default
SLAB_COLS = 160                               # >= widest block (fc1: 150)


# ---------------- static slab layout (name -> (row, nrows, ncols)) -------------
def _build_slab_layout():
    layout = {}
    row = 0

    def add(name, nrows, ncols):
        nonlocal row
        layout[name] = (row, nrows, ncols)
        row += ((nrows + 7) // 8) * 8          # keep every block 8-row aligned

    add("patch_w", PATCH_DIM, HIDDEN)
    add("tok_bias", ROWS, HIDDEN)
    add("attn_mask", ROWS, ROWS)
    for l in range(NUM_LAYERS):
        for hd in range(NUM_HEADS):
            for r in ("q", "k", "v"):
                add(f"w{r}_{l}_{hd}", HIDDEN, HEAD_DIM)
                add(f"b{r}_{l}_{hd}", 1, HEAD_DIM)
            add(f"wo_{l}_{hd}", HEAD_DIM, HIDDEN)
        add(f"bo_{l}", 1, HIDDEN)
        add(f"w1_{l}", HIDDEN, MLP_DIM)
        add(f"b1_{l}", 1, MLP_DIM)
        add(f"w2_{l}", MLP_DIM, HIDDEN)
        add(f"b2_{l}", 1, HIDDEN)
    add("pool_w", HIDDEN, HIDDEN)
    add("pool_b", 1, HIDDEN)
    add("fc1_w", HIDDEN, 150)
    add("fc1_b", 1, 150)
    add("fc2_w", 150, 50)
    add("fc2_b", 1, 50)
    add("fc3_w", 50, OUT_PAD)                  # classes padded to 128 lanes
    add("fc3_b", 1, OUT_PAD)
    return layout, row


_SLAB_LAYOUT, _SLAB_ROWS = _build_slab_layout()


# ---------------- fused Pallas kernel (whole model, one call, no grid) ----------
def _fused_vit_kernel(patches_ref, slab_ref, out_ref):
    # patches_ref: (ROWS, PATCH_DIM)   slab_ref: (_SLAB_ROWS, SLAB_COLS)
    # out_ref:     (BATCH, OUT_PAD)

    def blk(name):
        r, nr, nc = _SLAB_LAYOUT[name]
        return slab_ref[r:r + nr, 0:nc]

    def norm(x):  # LayerNorm without affine (gamma/beta folded into next matmul)
        mean = jnp.mean(x, axis=-1, keepdims=True)
        ex2 = jnp.mean(x * x, axis=-1, keepdims=True)
        var = jnp.maximum(ex2 - mean * mean, 0.0)
        return (x - mean) * jax.lax.rsqrt(var + LN_EPS)

    def mm(x, w):
        return jnp.dot(x, w, preferred_element_type=jnp.float32)

    # Patch embedding; CLS/pos/patch-bias pre-folded into the token-bias table,
    # pad rows are all-zero.
    h = mm(patches_ref[...], blk("patch_w")) + blk("tok_bias")        # (ROWS, H)
    mask = blk("attn_mask")                                           # (ROWS, ROWS)

    for l in range(NUM_LAYERS):
        # ----- attention block (pre-LN; gamma/beta + 1/sqrt(Dh) folded) -----
        hn = norm(h)
        attn = None
        for hd in range(NUM_HEADS):
            q = mm(hn, blk(f"wq_{l}_{hd}")) + blk(f"bq_{l}_{hd}")     # (ROWS, Dh)
            k = mm(hn, blk(f"wk_{l}_{hd}")) + blk(f"bk_{l}_{hd}")
            v = mm(hn, blk(f"wv_{l}_{hd}")) + blk(f"bv_{l}_{hd}")
            s = jax.lax.dot_general(
                q, k, (((1,), (1,)), ((), ())),
                preferred_element_type=jnp.float32) + mask            # (ROWS, ROWS)
            s = s - jnp.max(s, axis=-1, keepdims=True)
            p = jnp.exp(s)
            p = p * pl.reciprocal(jnp.sum(p, axis=-1, keepdims=True), approx=True)
            ctx = mm(p, v)                                            # (ROWS, Dh)
            part = mm(ctx, blk(f"wo_{l}_{hd}"))                       # (ROWS, H)
            attn = part if attn is None else attn + part
        h = h + attn + blk(f"bo_{l}")                                 # residual

        # ----- MLP block (pre-LN; gamma/beta folded into w1/b1) -----
        hn = norm(h)
        m = mm(hn, blk(f"w1_{l}")) + blk(f"b1_{l}")
        # TODO(synk): HF ViT uses exact (erf) GELU; tanh approximation used here.
        m = jax.nn.gelu(m, approximate=True)
        h = h + mm(m, blk(f"w2_{l}")) + blk(f"b2_{l}")                # residual

    # final LN (affine folded into pooler) on the CLS rows only -> tanh pooler
    cls_rows = [h[b * SEQ_PAD:b * SEQ_PAD + 1, :] for b in range(BATCH)]
    cls = jnp.concatenate(cls_rows, axis=0) if BATCH > 1 else cls_rows[0]
    cls = norm(cls)                                                   # (B, H)
    pooled = jnp.tanh(mm(cls, blk("pool_w")) + blk("pool_b"))

    # classification head; Flatten is a no-op, Dropout = identity (eval mode)
    z = mm(pooled, blk("fc1_w")) + blk("fc1_b")
    z = jnp.where(z >= 0.0, z, LEAKY_SLOPE * z)
    z = mm(z, blk("fc2_w")) + blk("fc2_b")
    z = jnp.where(z >= 0.0, z, LEAKY_SLOPE * z)
    z = mm(z, blk("fc3_w")) + blk("fc3_b")                            # (B, OUT_PAD)
    out_ref[...] = z.astype(out_ref.dtype)


# ---------------- parameter init (deterministic, synthetic) ----------------
def _dense_params(key, fan_in, fan_out):
    k1, k2 = jax.random.split(key)
    w = jax.random.normal(k1, (fan_in, fan_out), jnp.float32) / math.sqrt(fan_in)
    b = 0.02 * jax.random.normal(k2, (fan_out,), jnp.float32)
    return w, b


def init_params(key):
    keys = iter(jax.random.split(key, 64))
    p = {}
    p["patch_w"], p["patch_b"] = _dense_params(next(keys), PATCH_DIM, HIDDEN)
    p["cls_token"] = 0.02 * jax.random.normal(next(keys), (1, HIDDEN), jnp.float32)
    p["pos_emb"] = 0.02 * jax.random.normal(next(keys), (SEQ, HIDDEN), jnp.float32)
    p["layers"] = []
    for _ in range(NUM_LAYERS):
        layer = {}
        layer["ln1_g"] = jnp.ones((HIDDEN,), jnp.float32)
        layer["ln1_b"] = jnp.zeros((HIDDEN,), jnp.float32)
        layer["wq"], layer["bq"] = _dense_params(next(keys), HIDDEN, HIDDEN)
        layer["wk"], layer["bk"] = _dense_params(next(keys), HIDDEN, HIDDEN)
        layer["wv"], layer["bv"] = _dense_params(next(keys), HIDDEN, HIDDEN)
        layer["wo"], layer["bo"] = _dense_params(next(keys), HIDDEN, HIDDEN)
        layer["ln2_g"] = jnp.ones((HIDDEN,), jnp.float32)
        layer["ln2_b"] = jnp.zeros((HIDDEN,), jnp.float32)
        layer["w1"], layer["b1"] = _dense_params(next(keys), HIDDEN, MLP_DIM)
        layer["w2"], layer["b2"] = _dense_params(next(keys), MLP_DIM, HIDDEN)
        p["layers"].append(layer)
    p["ln_f_g"] = jnp.ones((HIDDEN,), jnp.float32)
    p["ln_f_b"] = jnp.zeros((HIDDEN,), jnp.float32)
    p["pool_w"], p["pool_b"] = _dense_params(next(keys), HIDDEN, HIDDEN)
    # ClassificationHead: Linear(feat,150) -> LeakyReLU -> Dropout
    #                     Linear(150,50) -> LeakyReLU -> Dropout -> Linear(50, classes)
    p["fc1_w"], p["fc1_b"] = _dense_params(next(keys), HIDDEN, 150)
    p["fc2_w"], p["fc2_b"] = _dense_params(next(keys), 150, 50)
    p["fc3_w"], p["fc3_b"] = _dense_params(next(keys), 50, NUM_CLASSES)
    return p


# ---------------- packing: fold + lay out everything into one slab -------------
def pack_params(p):
    slab = jnp.zeros((_SLAB_ROWS, SLAB_COLS), jnp.float32)

    def put(s, name, arr):
        r, nr, nc = _SLAB_LAYOUT[name]
        return s.at[r:r + nr, 0:nc].set(jnp.asarray(arr, jnp.float32).reshape(nr, nc))

    slab = put(slab, "patch_w", p["patch_w"])

    # token bias: row 0 = cls + pos[0] (patch row there is zero);
    #             rows 1..16 = pos[i] + patch_b; pad rows 17..23 = 0; tiled per image.
    tok = jnp.zeros((SEQ_PAD, HIDDEN), jnp.float32)
    tok = tok.at[0].set(p["cls_token"][0] + p["pos_emb"][0])
    tok = tok.at[1:SEQ].set(p["pos_emb"][1:] + p["patch_b"][None, :])
    slab = put(slab, "tok_bias", jnp.tile(tok, (BATCH, 1)))

    # block-diagonal additive attention mask over the stacked batch; also masks
    # the padded key rows of each image.
    idx = jnp.arange(ROWS)
    same_img = (idx[:, None] // SEQ_PAD) == (idx[None, :] // SEQ_PAD)
    real_key = ((idx % SEQ_PAD) < SEQ)[None, :]
    slab = put(slab, "attn_mask",
               jnp.where(same_img & real_key, 0.0, -1e30).astype(jnp.float32))

    scale = 1.0 / math.sqrt(HEAD_DIM)
    for l, lyr in enumerate(p["layers"]):
        g1, be1 = lyr["ln1_g"], lyr["ln1_b"]
        for hd in range(NUM_HEADS):
            sl = slice(hd * HEAD_DIM, (hd + 1) * HEAD_DIM)
            wq, bq = lyr["wq"][:, sl], lyr["bq"][sl]
            wk, bk = lyr["wk"][:, sl], lyr["bk"][sl]
            wv, bv = lyr["wv"][:, sl], lyr["bv"][sl]
            # fold ln1 gamma/beta; fold 1/sqrt(Dh) into q
            slab = put(slab, f"wq_{l}_{hd}", g1[:, None] * wq * scale)
            slab = put(slab, f"bq_{l}_{hd}", (be1 @ wq + bq) * scale)
            slab = put(slab, f"wk_{l}_{hd}", g1[:, None] * wk)
            slab = put(slab, f"bk_{l}_{hd}", be1 @ wk + bk)
            slab = put(slab, f"wv_{l}_{hd}", g1[:, None] * wv)
            slab = put(slab, f"bv_{l}_{hd}", be1 @ wv + bv)
            slab = put(slab, f"wo_{l}_{hd}", lyr["wo"][sl, :])
        slab = put(slab, f"bo_{l}", lyr["bo"])
        g2, be2 = lyr["ln2_g"], lyr["ln2_b"]
        slab = put(slab, f"w1_{l}", g2[:, None] * lyr["w1"])
        slab = put(slab, f"b1_{l}", be2 @ lyr["w1"] + lyr["b1"])
        slab = put(slab, f"w2_{l}", lyr["w2"])
        slab = put(slab, f"b2_{l}", lyr["b2"])

    # final LN folded into pooler
    slab = put(slab, "pool_w", p["ln_f_g"][:, None] * p["pool_w"])
    slab = put(slab, "pool_b", p["ln_f_b"] @ p["pool_w"] + p["pool_b"])
    slab = put(slab, "fc1_w", p["fc1_w"])
    slab = put(slab, "fc1_b", p["fc1_b"])
    slab = put(slab, "fc2_w", p["fc2_w"])
    slab = put(slab, "fc2_b", p["fc2_b"])
    fc3_w = jnp.zeros((50, OUT_PAD), jnp.float32).at[:, :NUM_CLASSES].set(p["fc3_w"])
    fc3_b = jnp.zeros((OUT_PAD,), jnp.float32).at[:NUM_CLASSES].set(p["fc3_b"])
    slab = put(slab, "fc3_w", fc3_w)
    slab = put(slab, "fc3_b", fc3_b)
    return slab


# ---------------- forward pass ----------------
def vit_cls_head_forward(x_nchw, slab):
    b, c, hh, ww = x_nchw.shape
    assert b == BATCH and c == CHANNELS and hh == IMG and ww == IMG
    nph, npw = hh // PATCH, ww // PATCH
    # Patch extraction (Conv2d(kernel=stride=PATCH) rewritten as reshape/transpose),
    # one zero front row per image for the CLS slot, zero rows to pad SEQ->SEQ_PAD,
    # then both images stacked along sublanes.
    patches = x_nchw.reshape(b, c, nph, PATCH, npw, PATCH)
    patches = patches.transpose(0, 2, 4, 1, 3, 5).reshape(b, nph * npw, PATCH_DIM)
    patches = jnp.pad(patches, ((0, 0), (1, SEQ_PAD - SEQ), (0, 0)))
    patches = patches.reshape(b * SEQ_PAD, PATCH_DIM)                 # (ROWS, PD)

    out = pl.pallas_call(
        _fused_vit_kernel,
        out_shape=jax.ShapeDtypeStruct((BATCH, OUT_PAD), jnp.float32),
        in_specs=[pl.BlockSpec(memory_space=pltpu.MemorySpace.VMEM),
                  pl.BlockSpec(memory_space=pltpu.MemorySpace.VMEM)],
        out_specs=pl.BlockSpec(memory_space=pltpu.MemorySpace.VMEM),
    )(patches, slab)
    return out[:, :NUM_CLASSES]


if __name__ == "__main__":
    key = jax.random.PRNGKey(0)
    k_param, k_input = jax.random.split(key)
    params = init_params(k_param)
    slab = pack_params(params)
    x = jax.random.normal(k_input, (BATCH, CHANNELS, IMG, IMG), jnp.float32)

    logits = jax.jit(vit_cls_head_forward)(x, slab)
    jax.block_until_ready(logits)
    assert logits.shape == (BATCH, NUM_CLASSES)
    assert bool(jnp.all(jnp.isfinite(logits)))
    print("KERNEL_OK")
</pallas_src>

<mosaic_0001>
module attributes {stable_mosaic.version = 11 : i64} {
  func.func @_fused_vit_kernel(%arg0: memref<48x48xf32, #tpu.memory_space<vmem>>, %arg1: memref<1232x160xf32, #tpu.memory_space<vmem>>, %arg2: memref<2x128xf32, #tpu.memory_space<vmem>>) attributes {dimension_semantics = [], scalar_prefetch = 0 : i64, scratch_operands = 0 : i64, tpu.core_type = #tpu.core_type<tc>} {
    %c0 = arith.constant 0 : index
    %c0_0 = arith.constant 0 : index
    %0 = vector.load %arg0[%c0, %c0_0] : memref<48x48xf32, #tpu.memory_space<vmem>>, vector<48x48xf32>
    %c0_1 = arith.constant 0 : index
    %c0_2 = arith.constant 0 : index
    %1 = vector.load %arg1[%c0_1, %c0_2] : memref<1232x160xf32, #tpu.memory_space<vmem>>, vector<48x32xf32>
    %cst = arith.constant dense<0.000000e+00> : vector<48x32xf32>
    %2 = tpu.matmul %0, %1, %cst {dimension_numbers = #tpu.dot_dimension_numbers<[1], [0], [0], [1], [0, 0, 1, 1], [], []>} : vector<48x48xf32>, vector<48x32xf32>, vector<48x32xf32> -> vector<48x32xf32>
    %c48 = arith.constant 48 : index
    %c0_3 = arith.constant 0 : index
    %3 = vector.load %arg1[%c48, %c0_3] : memref<1232x160xf32, #tpu.memory_space<vmem>>, vector<48x32xf32>
    %4 = arith.addf %2, %3 : vector<48x32xf32>
    %c96 = arith.constant 96 : index
    %c0_4 = arith.constant 0 : index
    %5 = vector.load %arg1[%c96, %c0_4] : memref<1232x160xf32, #tpu.memory_space<vmem>>, vector<48x48xf32>
    %cst_5 = arith.constant dense<0.000000e+00> : vector<48xf32>
    %6 = vector.multi_reduction <add>, %4, %cst_5 [1] : vector<48x32xf32> to vector<48xf32>
    %7 = vector.shape_cast %6 : vector<48xf32> to vector<48x1xf32>
    %cst_6 = arith.constant 3.200000e+01 : f32
    %8 = vector.broadcast %cst_6 : f32 to vector<48x1xf32>
    %9 = arith.divf %7, %8 : vector<48x1xf32>
    %10 = arith.mulf %4, %4 : vector<48x32xf32>
    %cst_7 = arith.constant dense<0.000000e+00> : vector<48xf32>
    %11 = vector.multi_reduction <add>, %10, %cst_7 [1] : vector<48x32xf32> to vector<48xf32>
    %12 = vector.shape_cast %11 : vector<48xf32> to vector<48x1xf32>
    %cst_8 = arith.constant 3.200000e+01 : f32
    %13 = vector.broadcast %cst_8 : f32 to vector<48x1xf32>
    %14 = arith.divf %12, %13 : vector<48x1xf32>
    %15 = arith.mulf %9, %9 : vector<48x1xf32>
    %16 = arith.subf %14, %15 : vector<48x1xf32>
    %cst_9 = arith.constant 0.000000e+00 : f32
    %17 = vector.broadcast %cst_9 : f32 to vector<48x1xf32>
    %18 = arith.maximumf %16, %17 : vector<48x1xf32>
    %19 = vector.broadcast %9 : vector<48x1xf32> to vector<48x32xf32>
    %20 = arith.subf %4, %19 : vector<48x32xf32>
    %cst_10 = arith.constant 9.99999996E-13 : f32
    %21 = vector.broadcast %cst_10 : f32 to vector<48x1xf32>
    %22 = arith.addf %18, %21 : vector<48x1xf32>
    %23 = math.rsqrt %22 : vector<48x1xf32>
    %24 = vector.broadcast %23 : vector<48x1xf32> to vector<48x32xf32>
    %25 = arith.mulf %20, %24 : vector<48x32xf32>
    %c144 = arith.constant 144 : index
    %c0_11 = arith.constant 0 : index
    %26 = vector.load %arg1[%c144, %c0_11] : memref<1232x160xf32, #tpu.memory_space<vmem>>, vector<32x16xf32>
    %cst_12 = arith.constant dense<0.000000e+00> : vector<48x16xf32>
    %27 = tpu.matmul %25, %26, %cst_12 {dimension_numbers = #tpu.dot_dimension_numbers<[1], [0], [0], [1], [0, 0, 1, 1], [], []>} : vector<48x32xf32>, vector<32x16xf32>, vector<48x16xf32> -> vector<48x16xf32>
    %c176 = arith.constant 176 : index
    %c0_13 = arith.constant 0 : index
    %28 = vector.load %arg1[%c176, %c0_13] : memref<1232x160xf32, #tpu.memory_space<vmem>>, vector<1x16xf32>
    %29 = vector.broadcast %28 : vector<1x16xf32> to vector<48x16xf32>
    %30 = arith.addf %27, %29 : vector<48x16xf32>
    %c184 = arith.constant 184 : index
    %c0_14 = arith.constant 0 : index
    %31 = vector.load %arg1[%c184, %c0_14] : memref<1232x160xf32, #tpu.memory_space<vmem>>, vector<32x16xf32>
    %cst_15 = arith.constant dense<0.000000e+00> : vector<48x16xf32>
    %32 = tpu.matmul %25, %31, %cst_15 {dimension_numbers = #tpu.dot_dimension_numbers<[1], [0], [0], [1], [0, 0, 1, 1], [], []>} : vector<48x32xf32>, vector<32x16xf32>, vector<48x16xf32> -> vector<48x16xf32>
    %c216 = arith.constant 216 : index
    %c0_16 = arith.constant 0 : index
    %33 = vector.load %arg1[%c216, %c0_16] : memref<1232x160xf32, #tpu.memory_space<vmem>>, vector<1x16xf32>
    %34 = vector.broadcast %33 : vector<1x16xf32> to vector<48x16xf32>
    %35 = arith.addf %32, %34 : vector<48x16xf32>
    %c224 = arith.constant 224 : index
    %c0_17 = arith.constant 0 : index
    %36 = vector.load %arg1[%c224, %c0_17] : memref<1232x160xf32, #tpu.memory_space<vmem>>, vector<32x16xf32>
    %cst_18 = arith.constant dense<0.000000e+00> : vector<48x16xf32>
    %37 = tpu.matmul %25, %36, %cst_18 {dimension_numbers = #tpu.dot_dimension_numbers<[1], [0], [0], [1], [0, 0, 1, 1], [], []>} : vector<48x32xf32>, vector<32x16xf32>, vector<48x16xf32> -> vector<48x16xf32>
    %c256 = arith.constant 256 : index
    %c0_19 = arith.constant 0 : index
    %38 = vector.load %arg1[%c256, %c0_19] : memref<1232x160xf32, #tpu.memory_space<vmem>>, vector<1x16xf32>
    %39 = vector.broadcast %38 : vector<1x16xf32> to vector<48x16xf32>
    %40 = arith.addf %37, %39 : vector<48x16xf32>
    %cst_20 = arith.constant dense<0.000000e+00> : vector<48x48xf32>
    %41 = tpu.matmul %30, %35, %cst_20 {dimension_numbers = #tpu.dot_dimension_numbers<[1], [1], [0], [0], [0, 0, 1, 0], [], []>} : vector<48x16xf32>, vector<48x16xf32>, vector<48x48xf32> -> vector<48x48xf32>
    %42 = arith.addf %41, %5 : vector<48x48xf32>
    %cst_21 = arith.constant dense<0xFF800000> : vector<48xf32>
    %43 = vector.multi_reduction <maximumf>, %42, %cst_21 [1] : vector<48x48xf32> to vector<48xf32>
    %44 = vector.shape_cast %43 : vector<48xf32> to vector<48x1xf32>
    %45 = vector.broadcast %44 : vector<48x1xf32> to vector<48x48xf32>
    %46 = arith.subf %42, %45 : vector<48x48xf32>
    %47 = math.exp %46 : vector<48x48xf32>
    %cst_22 = arith.constant dense<0.000000e+00> : vector<48xf32>
    %48 = vector.multi_reduction <add>, %47, %cst_22 [1] : vector<48x48xf32> to vector<48xf32>
    %49 = vector.shape_cast %48 : vector<48xf32> to vector<48x1xf32>
    %50 = tpu.reciprocal %49 {approx = true} : vector<48x1xf32> -> vector<48x1xf32>
    %51 = vector.broadcast %50 : vector<48x1xf32> to vector<48x48xf32>
    %52 = arith.mulf %47, %51 : vector<48x48xf32>
    %cst_23 = arith.constant dense<0.000000e+00> : vector<48x16xf32>
    %53 = tpu.matmul %52, %40, %cst_23 {dimension_numbers = #tpu.dot_dimension_numbers<[1], [0], [0], [1], [0, 0, 1, 1], [], []>} : vector<48x48xf32>, vector<48x16xf32>, vector<48x16xf32> -> vector<48x16xf32>
    %c264 = arith.constant 264 : index
    %c0_24 = arith.constant 0 : index
    %54 = vector.load %arg1[%c264, %c0_24] : memref<1232x160xf32, #tpu.memory_space<vmem>>, vector<16x32xf32>
    %cst_25 = arith.constant dense<0.000000e+00> : vector<48x32xf32>
    %55 = tpu.matmul %53, %54, %cst_25 {dimension_numbers = #tpu.dot_dimension_numbers<[1], [0], [0], [1], [0, 0, 1, 1], [], []>} : vector<48x16xf32>, vector<16x32xf32>, vector<48x32xf32> -> vector<48x32xf32>
    %c280 = arith.constant 280 : index
    %c0_26 = arith.constant 0 : index
    %56 = vector.load %arg1[%c280, %c0_26] : memref<1232x160xf32, #tpu.memory_space<vmem>>, vector<32x16xf32>
    %cst_27 = arith.constant dense<0.000000e+00> : vector<48x16xf32>
    %57 = tpu.matmul %25, %56, %cst_27 {dimension_numbers = #tpu.dot_dimension_numbers<[1], [0], [0], [1], [0, 0, 1, 1], [], []>} : vector<48x32xf32>, vector<32x16xf32>, vector<48x16xf32> -> vector<48x16xf32>
    %c312 = arith.constant 312 : index
    %c0_28 = arith.constant 0 : index
    %58 = vector.load %arg1[%c312, %c0_28] : memref<1232x160xf32, #tpu.memory_space<vmem>>, vector<1x16xf32>
    %59 = vector.broadcast %58 : vector<1x16xf32> to vector<48x16xf32>
    %60 = arith.addf %57, %59 : vector<48x16xf32>
    %c320 = arith.constant 320 : index
    %c0_29 = arith.constant 0 : index
    %61 = vector.load %arg1[%c320, %c0_29] : memref<1232x160xf32, #tpu.memory_space<vmem>>, vector<32x16xf32>
    %cst_30 = arith.constant dense<0.000000e+00> : vector<48x16xf32>
    %62 = tpu.matmul %25, %61, %cst_30 {dimension_numbers = #tpu.dot_dimension_numbers<[1], [0], [0], [1], [0, 0, 1, 1], [], []>} : vector<48x32xf32>, vector<32x16xf32>, vector<48x16xf32> -> vector<48x16xf32>
    %c352 = arith.constant 352 : index
    %c0_31 = arith.constant 0 : index
    %63 = vector.load %arg1[%c352, %c0_31] : memref<1232x160xf32, #tpu.memory_space<vmem>>, vector<1x16xf32>
    %64 = vector.broadcast %63 : vector<1x16xf32> to vector<48x16xf32>
    %65 = arith.addf %62, %64 : vector<48x16xf32>
    %c360 = arith.constant 360 : index
    %c0_32 = arith.constant 0 : index
    %66 = vector.load %arg1[%c360, %c0_32] : memref<1232x160xf32, #tpu.memory_space<vmem>>, vector<32x16xf32>
    %cst_33 = arith.constant dense<0.000000e+00> : vector<48x16xf32>
    %67 = tpu.matmul %25, %66, %cst_33 {dimension_numbers = #tpu.dot_dimension_numbers<[1], [0], [0], [1], [0, 0, 1, 1], [], []>} : vector<48x32xf32>, vector<32x16xf32>, vector<48x16xf32> -> vector<48x16xf32>
    %c392 = arith.constant 392 : index
    %c0_34 = arith.constant 0 : index
    %68 = vector.load %arg1[%c392, %c0_34] : memref<1232x160xf32, #tpu.memory_space<vmem>>, vector<1x16xf32>
    %69 = vector.broadcast %68 : vector<1x16xf32> to vector<48x16xf32>
    %70 = arith.addf %67, %69 : vector<48x16xf32>
    %cst_35 = arith.constant dense<0.000000e+00> : vector<48x48xf32>
    %71 = tpu.matmul %60, %65, %cst_35 {dimension_numbers = #tpu.dot_dimension_numbers<[1], [1], [0], [0], [0, 0, 1, 0], [], []>} : vector<48x16xf32>, vector<48x16xf32>, vector<48x48xf32> -> vector<48x48xf32>
    %72 = arith.addf %71, %5 : vector<48x48xf32>
    %cst_36 = arith.constant dense<0xFF800000> : vector<48xf32>
    %73 = vector.multi_reduction <maximumf>, %72, %cst_36 [1] : vector<48x48xf32> to vector<48xf32>
    %74 = vector.shape_cast %73 : vector<48xf32> to vector<48x1xf32>
    %75 = vector.broadcast %74 : vector<48x1xf32> to vector<48x48xf32>
    %76 = arith.subf %72, %75 : vector<48x48xf32>
    %77 = math.exp %76 : vector<48x48xf32>
    %cst_37 = arith.constant dense<0.000000e+00> : vector<48xf32>
    %78 = vector.multi_reduction <add>, %77, %cst_37 [1] : vector<48x48xf32> to vector<48xf32>
    %79 = vector.shape_cast %78 : vector<48xf32> to vector<48x1xf32>
    %80 = tpu.reciprocal %79 {approx = true} : vector<48x1xf32> -> vector<48x1xf32>
    %81 = vector.broadcast %80 : vector<48x1xf32> to vector<48x48xf32>
    %82 = arith.mulf %77, %81 : vector<48x48xf32>
    %cst_38 = arith.constant dense<0.000000e+00> : vector<48x16xf32>
    %83 = tpu.matmul %82, %70, %cst_38 {dimension_numbers = #tpu.dot_dimension_numbers<[1], [0], [0], [1], [0, 0, 1, 1], [], []>} : vector<48x48xf32>, vector<48x16xf32>, vector<48x16xf32> -> vector<48x16xf32>
    %c400 = arith.constant 400 : index
    %c0_39 = arith.constant 0 : index
    %84 = vector.load %arg1[%c400, %c0_39] : memref<1232x160xf32, #tpu.memory_space<vmem>>, vector<16x32xf32>
    %cst_40 = arith.constant dense<0.000000e+00> : vector<48x32xf32>
    %85 = tpu.matmul %83, %84, %cst_40 {dimension_numbers = #tpu.dot_dimension_numbers<[1], [0], [0], [1], [0, 0, 1, 1], [], []>} : vector<48x16xf32>, vector<16x32xf32>, vector<48x32xf32> -> vector<48x32xf32>
    %86 = arith.addf %55, %85 : vector<48x32xf32>
    %87 = arith.addf %4, %86 : vector<48x32xf32>
    %c416 = arith.constant 416 : index
    %c0_41 = arith.constant 0 : index
    %88 = vector.load %arg1[%c416, %c0_41] : memref<1232x160xf32, #tpu.memory_space<vmem>>, vector<1x32xf32>
    %89 = vector.broadcast %88 : vector<1x32xf32> to vector<48x32xf32>
    %90 = arith.addf %87, %89 : vector<48x32xf32>
    %cst_42 = arith.constant dense<0.000000e+00> : vector<48xf32>
    %91 = vector.multi_reduction <add>, %90, %cst_42 [1] : vector<48x32xf32> to vector<48xf32>
    %92 = vector.shape_cast %91 : vector<48xf32> to vector<48x1xf32>
    %cst_43 = arith.constant 3.200000e+01 : f32
    %93 = vector.broadcast %cst_43 : f32 to vector<48x1xf32>
    %94 = arith.divf %92, %93 : vector<48x1xf32>
    %95 = arith.mulf %90, %90 : vector<48x32xf32>
    %cst_44 = arith.constant dense<0.000000e+00> : vector<48xf32>
    %96 = vector.multi_reduction <add>, %95, %cst_44 [1] : vector<48x32xf32> to vector<48xf32>
    %97 = vector.shape_cast %96 : vector<48xf32> to vector<48x1xf32>
    %cst_45 = arith.constant 3.200000e+01 : f32
    %98 = vector.broadcast %cst_45 : f32 to vector<48x1xf32>
    %99 = arith.divf %97, %98 : vector<48x1xf32>
    %100 = arith.mulf %94, %94 : vector<48x1xf32>
    %101 = arith.subf %99, %100 : vector<48x1xf32>
    %cst_46 = arith.constant 0.000000e+00 : f32
    %102 = vector.broadcast %cst_46 : f32 to vector<48x1xf32>
    %103 = arith.maximumf %101, %102 : vector<48x1xf32>
    %104 = vector.broadcast %94 : vector<48x1xf32> to vector<48x32xf32>
    %105 = arith.subf %90, %104 : vector<48x32xf32>
    %cst_47 = arith.constant 9.99999996E-13 : f32
    %106 = vector.broadcast %cst_47 : f32 to vector<48x1xf32>
    %107 = arith.addf %103, %106 : vector<48x1xf32>
    %108 = math.rsqrt %107 : vector<48x1xf32>
    %109 = vector.broadcast %108 : vector<48x1xf32> to vector<48x32xf32>
    %110 = arith.mulf %105, %109 : vector<48x32xf32>
    %c424 = arith.constant 424 : index
    %c0_48 = arith.constant 0 : index
    %111 = vector.load %arg1[%c424, %c0_48] : memref<1232x160xf32, #tpu.memory_space<vmem>>, vector<32x64xf32>
    %cst_49 = arith.constant dense<0.000000e+00> : vector<48x64xf32>
    %112 = tpu.matmul %110, %111, %cst_49 {dimension_numbers = #tpu.dot_dimension_numbers<[1], [0], [0], [1], [0, 0, 1, 1], [], []>} : vector<48x32xf32>, vector<32x64xf32>, vector<48x64xf32> -> vector<48x64xf32>
    %c456 = arith.constant 456 : index
    %c0_50 = arith.constant 0 : index
    %113 = vector.load %arg1[%c456, %c0_50] : memref<1232x160xf32, #tpu.memory_space<vmem>>, vector<1x64xf32>
    %114 = vector.broadcast %113 : vector<1x64xf32> to vector<48x64xf32>
    %115 = arith.addf %112, %114 : vector<48x64xf32>
    %116 = arith.mulf %115, %115 : vector<48x64xf32>
    %117 = arith.mulf %115, %116 : vector<48x64xf32>
    %cst_51 = arith.constant 4.471500e-02 : f32
    %118 = vector.broadcast %cst_51 : f32 to vector<48x64xf32>
    %119 = arith.mulf %118, %117 : vector<48x64xf32>
    %120 = arith.addf %115, %119 : vector<48x64xf32>
    %cst_52 = arith.constant 0.797884583 : f32
    %121 = vector.broadcast %cst_52 : f32 to vector<48x64xf32>
    %122 = arith.mulf %121, %120 : vector<48x64xf32>
    %123 = math.tanh %122 : vector<48x64xf32>
    %cst_53 = arith.constant 1.000000e+00 : f32
    %124 = vector.broadcast %cst_53 : f32 to vector<48x64xf32>
    %125 = arith.addf %124, %123 : vector<48x64xf32>
    %cst_54 = arith.constant 5.000000e-01 : f32
    %126 = vector.broadcast %cst_54 : f32 to vector<48x64xf32>
    %127 = arith.mulf %126, %125 : vector<48x64xf32>
    %128 = arith.mulf %115, %127 : vector<48x64xf32>
    %c464 = arith.constant 464 : index
    %c0_55 = arith.constant 0 : index
    %129 = vector.load %arg1[%c464, %c0_55] : memref<1232x160xf32, #tpu.memory_space<vmem>>, vector<64x32xf32>
    %cst_56 = arith.constant dense<0.000000e+00> : vector<48x32xf32>
    %130 = tpu.matmul %128, %129, %cst_56 {dimension_numbers = #tpu.dot_dimension_numbers<[1], [0], [0], [1], [0, 0, 1, 1], [], []>} : vector<48x64xf32>, vector<64x32xf32>, vector<48x32xf32> -> vector<48x32xf32>
    %131 = arith.addf %90, %130 : vector<48x32xf32>
    %c528 = arith.constant 528 : index
    %c0_57 = arith.constant 0 : index
    %132 = vector.load %arg1[%c528, %c0_57] : memref<1232x160xf32, #tpu.memory_space<vmem>>, vector<1x32xf32>
    %133 = vector.broadcast %132 : vector<1x32xf32> to vector<48x32xf32>
    %134 = arith.addf %131, %133 : vector<48x32xf32>
    %cst_58 = arith.constant dense<0.000000e+00> : vector<48xf32>
    %135 = vector.multi_reduction <add>, %134, %cst_58 [1] : vector<48x32xf32> to vector<48xf32>
    %136 = vector.shape_cast %135 : vector<48xf32> to vector<48x1xf32>
    %cst_59 = arith.constant 3.200000e+01 : f32
    %137 = vector.broadcast %cst_59 : f32 to vector<48x1xf32>
    %138 = arith.divf %136, %137 : vector<48x1xf32>
    %139 = arith.mulf %134, %134 : vector<48x32xf32>
    %cst_60 = arith.constant dense<0.000000e+00> : vector<48xf32>
    %140 = vector.multi_reduction <add>, %139, %cst_60 [1] : vector<48x32xf32> to vector<48xf32>
    %141 = vector.shape_cast %140 : vector<48xf32> to vector<48x1xf32>
    %cst_61 = arith.constant 3.200000e+01 : f32
    %142 = vector.broadcast %cst_61 : f32 to vector<48x1xf32>
    %143 = arith.divf %141, %142 : vector<48x1xf32>
    %144 = arith.mulf %138, %138 : vector<48x1xf32>
    %145 = arith.subf %143, %144 : vector<48x1xf32>
    %cst_62 = arith.constant 0.000000e+00 : f32
    %146 = vector.broadcast %cst_62 : f32 to vector<48x1xf32>
    %147 = arith.maximumf %145, %146 : vector<48x1xf32>
    %148 = vector.broadcast %138 : vector<48x1xf32> to vector<48x32xf32>
    %149 = arith.subf %134, %148 : vector<48x32xf32>
    %cst_63 = arith.constant 9.99999996E-13 : f32
    %150 = vector.broadcast %cst_63 : f32 to vector<48x1xf32>
    %151 = arith.addf %147, %150 : vector<48x1xf32>
    %152 = math.rsqrt %151 : vector<48x1xf32>
    %153 = vector.broadcast %152 : vector<48x1xf32> to vector<48x32xf32>
    %154 = arith.mulf %149, %153 : vector<48x32xf32>
    %c536 = arith.constant 536 : index
    %c0_64 = arith.constant 0 : index
    %155 = vector.load %arg1[%c536, %c0_64] : memref<1232x160xf32, #tpu.memory_space<vmem>>, vector<32x16xf32>
    %cst_65 = arith.constant dense<0.000000e+00> : vector<48x16xf32>
    %156 = tpu.matmul %154, %155, %cst_65 {dimension_numbers = #tpu.dot_dimension_numbers<[1], [0], [0], [1], [0, 0, 1, 1], [], []>} : vector<48x32xf32>, vector<32x16xf32>, vector<48x16xf32> -> vector<48x16xf32>
    %c568 = arith.constant 568 : index
    %c0_66 = arith.constant 0 : index
    %157 = vector.load %arg1[%c568, %c0_66] : memref<1232x160xf32, #tpu.memory_space<vmem>>, vector<1x16xf32>
    %158 = vector.broadcast %157 : vector<1x16xf32> to vector<48x16xf32>
    %159 = arith.addf %156, %158 : vector<48x16xf32>
    %c576 = arith.constant 576 : index
    %c0_67 = arith.constant 0 : index
    %160 = vector.load %arg1[%c576, %c0_67] : memref<1232x160xf32, #tpu.memory_space<vmem>>, vector<32x16xf32>
    %cst_68 = arith.constant dense<0.000000e+00> : vector<48x16xf32>
    %161 = tpu.matmul %154, %160, %cst_68 {dimension_numbers = #tpu.dot_dimension_numbers<[1], [0], [0], [1], [0, 0, 1, 1], [], []>} : vector<48x32xf32>, vector<32x16xf32>, vector<48x16xf32> -> vector<48x16xf32>
    %c608 = arith.constant 608 : index
    %c0_69 = arith.constant 0 : index
    %162 = vector.load %arg1[%c608, %c0_69] : memref<1232x160xf32, #tpu.memory_space<vmem>>, vector<1x16xf32>
    %163 = vector.broadcast %162 : vector<1x16xf32> to vector<48x16xf32>
    %164 = arith.addf %161, %163 : vector<48x16xf32>
    %c616 = arith.constant 616 : index
    %c0_70 = arith.constant 0 : index
    %165 = vector.load %arg1[%c616, %c0_70] : memref<1232x160xf32, #tpu.memory_space<vmem>>, vector<32x16xf32>
    %cst_71 = arith.constant dense<0.000000e+00> : vector<48x16xf32>
    %166 = tpu.matmul %154, %165, %cst_71 {dimension_numbers = #tpu.dot_dimension_numbers<[1], [0], [0], [1], [0, 0, 1, 1], [], []>} : vector<48x32xf32>, vector<32x16xf32>, vector<48x16xf32> -> vector<48x16xf32>
    %c648 = arith.constant 648 : index
    %c0_72 = arith.constant 0 : index
    %167 = vector.load %arg1[%c648, %c0_72] : memref<1232x160xf32, #tpu.memory_space<vmem>>, vector<1x16xf32>
    %168 = vector.broadcast %167 : vector<1x16xf32> to vector<48x16xf32>
    %169 = arith.addf %166, %168 : vector<48x16xf32>
    %cst_73 = arith.constant dense<0.000000e+00> : vector<48x48xf32>
    %170 = tpu.matmul %159, %164, %cst_73 {dimension_numbers = #tpu.dot_dimension_numbers<[1], [1], [0], [0], [0, 0, 1, 0], [], []>} : vector<48x16xf32>, vector<48x16xf32>, vector<48x48xf32> -> vector<48x48xf32>
    %171 = arith.addf %170, %5 : vector<48x48xf32>
    %cst_74 = arith.constant dense<0xFF800000> : vector<48xf32>
    %172 = vector.multi_reduction <maximumf>, %171, %cst_74 [1] : vector<48x48xf32> to vector<48xf32>
    %173 = vector.shape_cast %172 : vector<48xf32> to vector<48x1xf32>
    %174 = vector.broadcast %173 : vector<48x1xf32> to vector<48x48xf32>
    %175 = arith.subf %171, %174 : vector<48x48xf32>
    %176 = math.exp %175 : vector<48x48xf32>
    %cst_75 = arith.constant dense<0.000000e+00> : vector<48xf32>
    %177 = vector.multi_reduction <add>, %176, %cst_75 [1] : vector<48x48xf32> to vector<48xf32>
    %178 = vector.shape_cast %177 : vector<48xf32> to vector<48x1xf32>
    %179 = tpu.reciprocal %178 {approx = true} : vector<48x1xf32> -> vector<48x1xf32>
    %180 = vector.broadcast %179 : vector<48x1xf32> to vector<48x48xf32>
    %181 = arith.mulf %176, %180 : vector<48x48xf32>
    %cst_76 = arith.constant dense<0.000000e+00> : vector<48x16xf32>
    %182 = tpu.matmul %181, %169, %cst_76 {dimension_numbers = #tpu.dot_dimension_numbers<[1], [0], [0], [1], [0, 0, 1, 1], [], []>} : vector<48x48xf32>, vector<48x16xf32>, vector<48x16xf32> -> vector<48x16xf32>
    %c656 = arith.constant 656 : index
    %c0_77 = arith.constant 0 : index
    %183 = vector.load %arg1[%c656, %c0_77] : memref<1232x160xf32, #tpu.memory_space<vmem>>, vector<16x32xf32>
    %cst_78 = arith.constant dense<0.000000e+00> : vector<48x32xf32>
    %184 = tpu.matmul %182, %183, %cst_78 {dimension_numbers = #tpu.dot_dimension_numbers<[1], [0], [0], [1], [0, 0, 1, 1], [], []>} : vector<48x16xf32>, vector<16x32xf32>, vector<48x32xf32> -> vector<48x32xf32>
    %c672 = arith.constant 672 : index
    %c0_79 = arith.constant 0 : index
    %185 = vector.load %arg1[%c672, %c0_79] : memref<1232x160xf32, #tpu.memory_space<vmem>>, vector<32x16xf32>
    %cst_80 = arith.constant dense<0.000000e+00> : vector<48x16xf32>
    %186 = tpu.matmul %154, %185, %cst_80 {dimension_numbers = #tpu.dot_dimension_numbers<[1], [0], [0], [1], [0, 0, 1, 1], [], []>} : vector<48x32xf32>, vector<32x16xf32>, vector<48x16xf32> -> vector<48x16xf32>
    %c704 = arith.constant 704 : index
    %c0_81 = arith.constant 0 : index
    %187 = vector.load %arg1[%c704, %c0_81] : memref<1232x160xf32, #tpu.memory_space<vmem>>, vector<1x16xf32>
    %188 = vector.broadcast %187 : vector<1x16xf32> to vector<48x16xf32>
    %189 = arith.addf %186, %188 : vector<48x16xf32>
    %c712 = arith.constant 712 : index
    %c0_82 = arith.constant 0 : index
    %190 = vector.load %arg1[%c712, %c0_82] : memref<1232x160xf32, #tpu.memory_space<vmem>>, vector<32x16xf32>
    %cst_83 = arith.constant dense<0.000000e+00> : vector<48x16xf32>
    %191 = tpu.matmul %154, %190, %cst_83 {dimension_numbers = #tpu.dot_dimension_numbers<[1], [0], [0], [1], [0, 0, 1, 1], [], []>} : vector<48x32xf32>, vector<32x16xf32>, vector<48x16xf32> -> vector<48x16xf32>
    %c744 = arith.constant 744 : index
    %c0_84 = arith.constant 0 : index
    %192 = vector.load %arg1[%c744, %c0_84] : memref<1232x160xf32, #tpu.memory_space<vmem>>, vector<1x16xf32>
    %193 = vector.broadcast %192 : vector<1x16xf32> to vector<48x16xf32>
    %194 = arith.addf %191, %193 : vector<48x16xf32>
    %c752 = arith.constant 752 : index
    %c0_85 = arith.constant 0 : index
    %195 = vector.load %arg1[%c752, %c0_85] : memref<1232x160xf32, #tpu.memory_space<vmem>>, vector<32x16xf32>
    %cst_86 = arith.constant dense<0.000000e+00> : vector<48x16xf32>
    %196 = tpu.matmul %154, %195, %cst_86 {dimension_numbers = #tpu.dot_dimension_numbers<[1], [0], [0], [1], [0, 0, 1, 1], [], []>} : vector<48x32xf32>, vector<32x16xf32>, vector<48x16xf32> -> vector<48x16xf32>
    %c784 = arith.constant 784 : index
    %c0_87 = arith.constant 0 : index
    %197 = vector.load %arg1[%c784, %c0_87] : memref<1232x160xf32, #tpu.memory_space<vmem>>, vector<1x16xf32>
    %198 = vector.broadcast %197 : vector<1x16xf32> to vector<48x16xf32>
    %199 = arith.addf %196, %198 : vector<48x16xf32>
    %cst_88 = arith.constant dense<0.000000e+00> : vector<48x48xf32>
    %200 = tpu.matmul %189, %194, %cst_88 {dimension_numbers = #tpu.dot_dimension_numbers<[1], [1], [0], [0], [0, 0, 1, 0], [], []>} : vector<48x16xf32>, vector<48x16xf32>, vector<48x48xf32> -> vector<48x48xf32>
    %201 = arith.addf %200, %5 : vector<48x48xf32>
    %cst_89 = arith.constant dense<0xFF800000> : vector<48xf32>
    %202 = vector.multi_reduction <maximumf>, %201, %cst_89 [1] : vector<48x48xf32> to vector<48xf32>
    %203 = vector.shape_cast %202 : vector<48xf32> to vector<48x1xf32>
    %204 = vector.broadcast %203 : vector<48x1xf32> to vector<48x48xf32>
    %205 = arith.subf %201, %204 : vector<48x48xf32>
    %206 = math.exp %205 : vector<48x48xf32>
    %cst_90 = arith.constant dense<0.000000e+00> : vector<48xf32>
    %207 = vector.multi_reduction <add>, %206, %cst_90 [1] : vector<48x48xf32> to vector<48xf32>
    %208 = vector.shape_cast %207 : vector<48xf32> to vector<48x1xf32>
    %209 = tpu.reciprocal %208 {approx = true} : vector<48x1xf32> -> vector<48x1xf32>
    %210 = vector.broadcast %209 : vector<48x1xf32> to vector<48x48xf32>
    %211 = arith.mulf %206, %210 : vector<48x48xf32>
    %cst_91 = arith.constant dense<0.000000e+00> : vector<48x16xf32>
    %212 = tpu.matmul %211, %199, %cst_91 {dimension_numbers = #tpu.dot_dimension_numbers<[1], [0], [0], [1], [0, 0, 1, 1], [], []>} : vector<48x48xf32>, vector<48x16xf32>, vector<48x16xf32> -> vector<48x16xf32>
    %c792 = arith.constant 792 : index
    %c0_92 = arith.constant 0 : index
    %213 = vector.load %arg1[%c792, %c0_92] : memref<1232x160xf32, #tpu.memory_space<vmem>>, vector<16x32xf32>
    %cst_93 = arith.constant dense<0.000000e+00> : vector<48x32xf32>
    %214 = tpu.matmul %212, %213, %cst_93 {dimension_numbers = #tpu.dot_dimension_numbers<[1], [0], [0], [1], [0, 0, 1, 1], [], []>} : vector<48x16xf32>, vector<16x32xf32>, vector<48x32xf32> -> vector<48x32xf32>
    %215 = arith.addf %184, %214 : vector<48x32xf32>
    %216 = arith.addf %134, %215 : vector<48x32xf32>
    %c808 = arith.constant 808 : index
    %c0_94 = arith.constant 0 : index
    %217 = vector.load %arg1[%c808, %c0_94] : memref<1232x160xf32, #tpu.memory_space<vmem>>, vector<1x32xf32>
    %218 = vector.broadcast %217 : vector<1x32xf32> to vector<48x32xf32>
    %219 = arith.addf %216, %218 : vector<48x32xf32>
    %cst_95 = arith.constant dense<0.000000e+00> : vector<48xf32>
    %220 = vector.multi_reduction <add>, %219, %cst_95 [1] : vector<48x32xf32> to vector<48xf32>
    %221 = vector.shape_cast %220 : vector<48xf32> to vector<48x1xf32>
    %cst_96 = arith.constant 3.200000e+01 : f32
    %222 = vector.broadcast %cst_96 : f32 to vector<48x1xf32>
    %223 = arith.divf %221, %222 : vector<48x1xf32>
    %224 = arith.mulf %219, %219 : vector<48x32xf32>
    %cst_97 = arith.constant dense<0.000000e+00> : vector<48xf32>
    %225 = vector.multi_reduction <add>, %224, %cst_97 [1] : vector<48x32xf32> to vector<48xf32>
    %226 = vector.shape_cast %225 : vector<48xf32> to vector<48x1xf32>
    %cst_98 = arith.constant 3.200000e+01 : f32
    %227 = vector.broadcast %cst_98 : f32 to vector<48x1xf32>
    %228 = arith.divf %226, %227 : vector<48x1xf32>
    %229 = arith.mulf %223, %223 : vector<48x1xf32>
    %230 = arith.subf %228, %229 : vector<48x1xf32>
    %cst_99 = arith.constant 0.000000e+00 : f32
    %231 = vector.broadcast %cst_99 : f32 to vector<48x1xf32>
    %232 = arith.maximumf %230, %231 : vector<48x1xf32>
    %233 = vector.broadcast %223 : vector<48x1xf32> to vector<48x32xf32>
    %234 = arith.subf %219, %233 : vector<48x32xf32>
    %cst_100 = arith.constant 9.99999996E-13 : f32
    %235 = vector.broadcast %cst_100 : f32 to vector<48x1xf32>
    %236 = arith.addf %232, %235 : vector<48x1xf32>
    %237 = math.rsqrt %236 : vector<48x1xf32>
    %238 = vector.broadcast %237 : vector<48x1xf32> to vector<48x32xf32>
    %239 = arith.mulf %234, %238 : vector<48x32xf32>
    %c816 = arith.constant 816 : index
    %c0_101 = arith.constant 0 : index
    %240 = vector.load %arg1[%c816, %c0_101] : memref<1232x160xf32, #tpu.memory_space<vmem>>, vector<32x64xf32>
    %cst_102 = arith.constant dense<0.000000e+00> : vector<48x64xf32>
    %241 = tpu.matmul %239, %240, %cst_102 {dimension_numbers = #tpu.dot_dimension_numbers<[1], [0], [0], [1], [0, 0, 1, 1], [], []>} : vector<48x32xf32>, vector<32x64xf32>, vector<48x64xf32> -> vector<48x64xf32>
    %c848 = arith.constant 848 : index
    %c0_103 = arith.constant 0 : index
    %242 = vector.load %arg1[%c848, %c0_103] : memref<1232x160xf32, #tpu.memory_space<vmem>>, vector<1x64xf32>
    %243 = vector.broadcast %242 : vector<1x64xf32> to vector<48x64xf32>
    %244 = arith.addf %241, %243 : vector<48x64xf32>
    %245 = arith.mulf %244, %244 : vector<48x64xf32>
    %246 = arith.mulf %244, %245 : vector<48x64xf32>
    %cst_104 = arith.constant 4.471500e-02 : f32
    %247 = vector.broadcast %cst_104 : f32 to vector<48x64xf32>
    %248 = arith.mulf %247, %246 : vector<48x64xf32>
    %249 = arith.addf %244, %248 : vector<48x64xf32>
    %cst_105 = arith.constant 0.797884583 : f32
    %250 = vector.broadcast %cst_105 : f32 to vector<48x64xf32>
    %251 = arith.mulf %250, %249 : vector<48x64xf32>
    %252 = math.tanh %251 : vector<48x64xf32>
    %cst_106 = arith.constant 1.000000e+00 : f32
    %253 = vector.broadcast %cst_106 : f32 to vector<48x64xf32>
    %254 = arith.addf %253, %252 : vector<48x64xf32>
    %cst_107 = arith.constant 5.000000e-01 : f32
    %255 = vector.broadcast %cst_107 : f32 to vector<48x64xf32>
    %256 = arith.mulf %255, %254 : vector<48x64xf32>
    %257 = arith.mulf %244, %256 : vector<48x64xf32>
    %c856 = arith.constant 856 : index
    %c0_108 = arith.constant 0 : index
    %258 = vector.load %arg1[%c856, %c0_108] : memref<1232x160xf32, #tpu.memory_space<vmem>>, vector<64x32xf32>
    %cst_109 = arith.constant dense<0.000000e+00> : vector<48x32xf32>
    %259 = tpu.matmul %257, %258, %cst_109 {dimension_numbers = #tpu.dot_dimension_numbers<[1], [0], [0], [1], [0, 0, 1, 1], [], []>} : vector<48x64xf32>, vector<64x32xf32>, vector<48x32xf32> -> vector<48x32xf32>
    %260 = arith.addf %219, %259 : vector<48x32xf32>
    %c920 = arith.constant 920 : index
    %c0_110 = arith.constant 0 : index
    %261 = vector.load %arg1[%c920, %c0_110] : memref<1232x160xf32, #tpu.memory_space<vmem>>, vector<1x32xf32>
    %262 = vector.broadcast %261 : vector<1x32xf32> to vector<48x32xf32>
    %263 = arith.addf %260, %262 : vector<48x32xf32>
    %264 = vector.extract_strided_slice %263 {offsets = [0, 0], sizes = [1, 32], strides = [1, 1]} : vector<48x32xf32> to vector<1x32xf32>
    %265 = vector.extract_strided_slice %263 {offsets = [24, 0], sizes = [1, 32], strides = [1, 1]} : vector<48x32xf32> to vector<1x32xf32>
    %266 = tpu.concatenate %264, %265 in 0 : vector<1x32xf32>, vector<1x32xf32> -> vector<2x32xf32>
    %cst_111 = arith.constant dense<0.000000e+00> : vector<2xf32>
    %267 = vector.multi_reduction <add>, %266, %cst_111 [1] : vector<2x32xf32> to vector<2xf32>
    %268 = vector.shape_cast %267 : vector<2xf32> to vector<2x1xf32>
    %cst_112 = arith.constant 3.200000e+01 : f32
    %269 = vector.broadcast %cst_112 : f32 to vector<2x1xf32>
    %270 = arith.divf %268, %269 : vector<2x1xf32>
    %271 = arith.mulf %266, %266 : vector<2x32xf32>
    %cst_113 = arith.constant dense<0.000000e+00> : vector<2xf32>
    %272 = vector.multi_reduction <add>, %271, %cst_113 [1] : vector<2x32xf32> to vector<2xf32>
    %273 = vector.shape_cast %272 : vector<2xf32> to vector<2x1xf32>
    %cst_114 = arith.constant 3.200000e+01 : f32
    %274 = vector.broadcast %cst_114 : f32 to vector<2x1xf32>
    %275 = arith.divf %273, %274 : vector<2x1xf32>
    %276 = arith.mulf %270, %270 : vector<2x1xf32>
    %277 = arith.subf %275, %276 : vector<2x1xf32>
    %cst_115 = arith.constant 0.000000e+00 : f32
    %278 = vector.broadcast %cst_115 : f32 to vector<2x1xf32>
    %279 = arith.maximumf %277, %278 : vector<2x1xf32>
    %280 = vector.broadcast %270 : vector<2x1xf32> to vector<2x32xf32>
    %281 = arith.subf %266, %280 : vector<2x32xf32>
    %cst_116 = arith.constant 9.99999996E-13 : f32
    %282 = vector.broadcast %cst_116 : f32 to vector<2x1xf32>
    %283 = arith.addf %279, %282 : vector<2x1xf32>
    %284 = math.rsqrt %283 : vector<2x1xf32>
    %285 = vector.broadcast %284 : vector<2x1xf32> to vector<2x32xf32>
    %286 = arith.mulf %281, %285 : vector<2x32xf32>
    %c928 = arith.constant 928 : index
    %c0_117 = arith.constant 0 : index
    %287 = vector.load %arg1[%c928, %c0_117] : memref<1232x160xf32, #tpu.memory_space<vmem>>, vector<32x32xf32>
    %cst_118 = arith.constant dense<0.000000e+00> : vector<2x32xf32>
    %288 = tpu.matmul %286, %287, %cst_118 {dimension_numbers = #tpu.dot_dimension_numbers<[1], [0], [0], [1], [0, 0, 1, 1], [], []>} : vector<2x32xf32>, vector<32x32xf32>, vector<2x32xf32> -> vector<2x32xf32>
    %c960 = arith.constant 960 : index
    %c0_119 = arith.constant 0 : index
    %289 = vector.load %arg1[%c960, %c0_119] : memref<1232x160xf32, #tpu.memory_space<vmem>>, vector<1x32xf32>
    %290 = vector.broadcast %289 : vector<1x32xf32> to vector<2x32xf32>
    %291 = arith.addf %288, %290 : vector<2x32xf32>
    %292 = math.tanh %291 : vector<2x32xf32>
    %c968 = arith.constant 968 : index
    %c0_120 = arith.constant 0 : index
    %293 = vector.load %arg1[%c968, %c0_120] : memref<1232x160xf32, #tpu.memory_space<vmem>>, vector<32x150xf32>
    %cst_121 = arith.constant dense<0.000000e+00> : vector<2x150xf32>
    %294 = tpu.matmul %292, %293, %cst_121 {dimension_numbers = #tpu.dot_dimension_numbers<[1], [0], [0], [1], [0, 0, 1, 1], [], []>} : vector<2x32xf32>, vector<32x150xf32>, vector<2x150xf32> -> vector<2x150xf32>
    %c1000 = arith.constant 1000 : index
    %c0_122 = arith.constant 0 : index
    %295 = vector.load %arg1[%c1000, %c0_122] : memref<1232x160xf32, #tpu.memory_space<vmem>>, vector<1x150xf32>
    %296 = vector.broadcast %295 : vector<1x150xf32> to vector<2x150xf32>
    %297 = arith.addf %294, %296 : vector<2x150xf32>
    %cst_123 = arith.constant 0.000000e+00 : f32
    %298 = vector.broadcast %cst_123 : f32 to vector<2x150xf32>
    %299 = arith.cmpf oge, %297, %298 : vector<2x150xf32>
    %cst_124 = arith.constant 0.00999999977 : f32
    %300 = vector.broadcast %cst_124 : f32 to vector<2x150xf32>
    %301 = arith.mulf %300, %297 : vector<2x150xf32>
    %302 = arith.select %299, %297, %301 : vector<2x150xi1>, vector<2x150xf32>
    %c1008 = arith.constant 1008 : index
    %c0_125 = arith.constant 0 : index
    %303 = vector.load %arg1[%c1008, %c0_125] : memref<1232x160xf32, #tpu.memory_space<vmem>>, vector<150x50xf32>
    %cst_126 = arith.constant dense<0.000000e+00> : vector<2x50xf32>
    %304 = tpu.matmul %302, %303, %cst_126 {dimension_numbers = #tpu.dot_dimension_numbers<[1], [0], [0], [1], [0, 0, 1, 1], [], []>} : vector<2x150xf32>, vector<150x50xf32>, vector<2x50xf32> -> vector<2x50xf32>
    %c1160 = arith.constant 1160 : index
    %c0_127 = arith.constant 0 : index
    %305 = vector.load %arg1[%c1160, %c0_127] : memref<1232x160xf32, #tpu.memory_space<vmem>>, vector<1x50xf32>
    %306 = vector.broadcast %305 : vector<1x50xf32> to vector<2x50xf32>
    %307 = arith.addf %304, %306 : vector<2x50xf32>
    %cst_128 = arith.constant 0.000000e+00 : f32
    %308 = vector.broadcast %cst_128 : f32 to vector<2x50xf32>
    %309 = arith.cmpf oge, %307, %308 : vector<2x50xf32>
    %cst_129 = arith.constant 0.00999999977 : f32
    %310 = vector.broadcast %cst_129 : f32 to vector<2x50xf32>
    %311 = arith.mulf %310, %307 : vector<2x50xf32>
    %312 = arith.select %309, %307, %311 : vector<2x50xi1>, vector<2x50xf32>
    %c1168 = arith.constant 1168 : index
    %c0_130 = arith.constant 0 : index
    %313 = vector.load %arg1[%c1168, %c0_130] : memref<1232x160xf32, #tpu.memory_space<vmem>>, vector<50x128xf32>
    %cst_131 = arith.constant dense<0.000000e+00> : vector<2x128xf32>
    %314 = tpu.matmul %312, %313, %cst_131 {dimension_numbers = #tpu.dot_dimension_numbers<[1], [0], [0], [1], [0, 0, 1, 1], [], []>} : vector<2x50xf32>, vector<50x128xf32>, vector<2x128xf32> -> vector<2x128xf32>
    %c1224 = arith.constant 1224 : index
    %c0_132 = arith.constant 0 : index
    %315 = vector.load %arg1[%c1224, %c0_132] : memref<1232x160xf32, #tpu.memory_space<vmem>>, vector<1x128xf32>
    %316 = vector.broadcast %315 : vector<1x128xf32> to vector<2x128xf32>
    %317 = arith.addf %314, %316 : vector<2x128xf32>
    %c0_133 = arith.constant 0 : index
    %c0_134 = arith.constant 0 : index
    %318 = vector.load %arg2[%c0_133, %c0_134] : memref<2x128xf32, #tpu.memory_space<vmem>>, vector<2x128xf32>
    tpu.vector_store %arg2[%c0_133, %c0_134], %317 {strides = array<i32>} : memref<2x128xf32, #tpu.memory_space<vmem>>, vector<2x128xf32>,
    return
  }
}

</mosaic_0001>

<bundles_post_ra>
// kernel: vit_cls_head_forward.1
= control target key start
LH: loop header
LB: loop body
LE: loop exit
PB: predicated region body
PF: predicated region fallthrough
CT: control target
= control target key end

     0   :  { %s4574_s0 = inlined_call_operand.vmem [shape: f32[48,48], index: 0, kind: input, shape index: {}]   ;;  %s4575_s1 = inlined_call_operand.vmem [shape: f32[1232,160], index: 1, kind: input, shape index: {}]   ;;  %s4576_s2 = inlined_call_operand.hbm [shape: f32[2,128], index: 2, kind: output, shape index: {}]  }
   0x1   :  { %v23_v0 = vld [vmem:[%s4575_s1 + $0x50] sm:$0xff]  ;;  %v22_v1 = vld [vmem:[%s4575_s1 + $0x40] sm:$0xff] }
   0x2   :  { %59 = vmatpush.msra.mxu0 %v23_v0  ;;  %v21_v2 = vld [vmem:[%s4575_s1 + $0x30] sm:$0xff] }
   0x4   :  { %60 = vmatpush.msra.mxu0 %v22_v1 }
   0x5   :  { %7 = vsyncpa [#allocation3], 0  ;;  %v20_v3 = vld [vmem:[%s4575_s1 + $0x20] sm:$0xff]  ;;  %v19_v4 = vld [vmem:[%s4575_s1 + $0x10] sm:$0xff]  ;;  %vm30_vm0 = vcmask 392192   ;;  %vm90_vm1 = vcmask 261120  }
   0x6   :  { %61 = vmatpush.msra.mxu0 %v21_v2  ;;  %v18_v5 = vld [vmem:[%s4575_s1] sm:$0xff]  ;;  %v13_v7 = vld [vmem:[%s4574_s0 + $0x8] sm:$0xff]  ;;  %v14_v8 = vld [vmem:[%s4574_s0 + $0x10] sm:$0xff]  ;;  %v3252_v48 = vmov 32.0   ;;  %s3253_s30 = smov [#allocation2]   ;;  %s2821_s6 = sshll.u32 %s4576_s2, 4  ;;  %s2822_s6 = int_to_ptr.hbm [resolvable:$true] %s2821_s6 }
   0x7   :  { %v12_v6 = vld [vmem:[%s4574_s0] sm:$0xff]  ;;  %v15_v9 = vld [vmem:[%s4574_s0 + $0x18] sm:$0xff]  ;;  %v17_v11 = vld [vmem:[%s4574_s0 + $0x28] sm:$0xff]  ;;  %3046 = vrcp.f32 %v3252_v48  ;;  %s2819_s3 = sshll.u32 %s3253_s30, 4  ;;  %s2820_s3 = int_to_ptr.vmem [resolvable:$true] %s2819_s3 }
   0x8   :  { %62 = vmatpush.msra.mxu0 %v20_v3  ;;  %v16_v10 = vld [vmem:[%s4574_s0 + $0x20] sm:$0xff]  ;;  %v25_v13 = vld [vmem:[%s4575_s1 + $0x70] sm:$0xff] }
   0x9   :  { %v26_v17 = vld [vmem:[%s4575_s1 + $0x80] sm:$0xff]  ;;  %v27_v23 = vld [vmem:[%s4575_s1 + $0x90] sm:$0xff] }
   0xa   :  { %63 = vmatpush.msra.mxu0 %v19_v4  ;;  %v28_v29 = vld [vmem:[%s4575_s1 + $0xa0] sm:$0xff]  ;;  %v29_v38 = vld [vmem:[%s4575_s1 + $0xb0] sm:$0xff] }
   0xb   :  { %v24_v37 = vld [vmem:[%s4575_s1 + $0x60] sm:$0xff]  ;;  %v308_v55 = vld [vmem:[%s4575_s1 + $0x190] sm:$0xff] }
   0xc   :  { %64 = vmatpush.msra.mxu0 %v18_v5  ;;  %v309_v53 = vld [vmem:[%s4575_s1 + $0x1a0] sm:$0xff]  ;;  %v306_v60 = vld [vmem:[%s4575_s1 + $0x170] sm:$0xff] }
   0xd   :  { %2830 = vmatmul.msk.f32.vlgmr.msra.gmra.mxu0 %vm30_vm0, %v12_v6  ;;  %v3047_v49 = vpop.eup %3046  ;;  %3040 = vmatpush.msra.mxu2 %v309_v53  ;;  %v307_v58 = vld [vmem:[%s4575_s1 + $0x180] sm:$0xff]  ;;  %v349_v48 = vld [vmem:[%s4575_s1 + $0x1f0] sm:$0xff] }
   0xe   :  { %v110_v50 = vmul.f32 32.0, %v3047_v49  ;;  %323 = vmatpush.msrb.mxu0 %v309_v53  ;;  %vm114_vm2 = vweird.f32 %v3047_v49 }
   0xf   :  { %3041 = vmatpush.msra.mxu2 %v308_v55 }
  0x10   :  { %v111_v51 = vsub.f32 1.0, %v110_v50  ;;  %324 = vmatpush.msrb.mxu0 %v308_v55  ;;  %v348_v55 = vld [vmem:[%s4575_s1 + $0x1e0] sm:$0xff] }
  0x11   :  { %3042 = vmatpush.msra.mxu2 %v307_v58 }
  0x12   :  { %v112_v52 = vmul.f32 %v3047_v49, %v111_v51  ;;  %325 = vmatpush.msrb.mxu0 %v307_v58 }
  0x13   :  { %3043 = vmatpush.msra.mxu2 %v306_v60 }
  0x14   :  { %v113_v54 = vadd.f32 %v3047_v49, %v112_v52  ;;  %326 = vmatpush.msrb.mxu0 %v306_v60 }
  0x15   :  { %2831 = vmatmul.msk.f32.gmra.mxu0 %vm30_vm0, %v13_v7 }
  0x16   :  { %v3377_v57 = vsel %vm114_vm2, %v3047_v49, %v113_v54 }
  0x1d   :  { %2832 = vmatmul.msk.f32.gmra.mxu0 %vm30_vm0, %v14_v8 }
  0x25   :  { %2833 = vmatmul.msk.f32.gmra.mxu0 %vm30_vm0, %v15_v9  ;;  %v251_v9 = vld [vmem:[%s4575_s1 + $0x150] sm:$0xff] }
  0x26   :  { %3036 = vmatpush.msra.mxu3 %v251_v9  ;;  %283 = vmatpush.msra.mxu1 %v251_v9 }
  0x2d   :  { %2834 = vmatmul.msk.f32.gmra.mxu0 %vm30_vm0, %v16_v10 }
  0x35   :  { %2835 = vmatmul.msk.f32.gmra.mxu0 %vm30_vm0, %v17_v11  ;;  %v250_v11 = vld [vmem:[%s4575_s1 + $0x140] sm:$0xff] }
  0x36   :  { %3037 = vmatpush.msra.mxu3 %v250_v11  ;;  %284 = vmatpush.msra.mxu1 %v250_v11  ;;  %v621_v11 = vld [vmem:[%s4575_s1 + $0x2a0] sm:$0xff] }
  0x8a   :  { %v66_v12 = vpop.f32.mrf.mxu0 }
  0x8b   :  { %v3357_v40 = vadd.f32 %v66_v12, %v24_v37 }
  0x8d   :  { %v91_v45 = vsel %vm90_vm1, %v3357_v40, 0.0  ;;  %v122_v46 = vmul.f32 %v3357_v40, %v3357_v40 }
  0x8f   :  { %v128_v47 = vsel %vm90_vm1, %v122_v46, 0.0 }
  0x92   :  { %v69_v14 = vpop.f32.mrf.mxu0 }
  0x93   :  { %v3314_v15 = vadd.f32 %v69_v14, %v25_v13  ;;  %v249_v14 = vld [vmem:[%s4575_s1 + $0x130] sm:$0xff] }
  0x94   :  { %3038 = vmatpush.msra.mxu3 %v249_v14  ;;  %285 = vmatpush.msra.mxu1 %v249_v14 }
  0x95   :  { %v94_v16 = vsel %vm90_vm1, %v3314_v15, 0.0  ;;  %v123_v18 = vmul.f32 %v3314_v15, %v3314_v15 }
  0x96   :  { %95 = vadd.xlane.f32.xlu0 %v94_v16 }
  0x97   :  { %v131_v22 = vsel %vm90_vm1, %v123_v18, 0.0  ;;  %v248_v18 = vld [vmem:[%s4575_s1 + $0x120] sm:$0xff] }
  0x98   :  { %3039 = vmatpush.msra.mxu3 %v248_v18  ;;  %286 = vmatpush.msra.mxu1 %v248_v18 }
  0x9a   :  { %v72_v19 = vpop.f32.mrf.mxu0  ;;  %363 = vmatpush.msrb.mxu3 %v349_v48 }
  0x9b   :  { %v3323_v20 = vadd.f32 %v72_v19, %v26_v17 }
  0x9c   :  { %364 = vmatpush.msrb.mxu3 %v348_v55 }
  0x9d   :  { %v97_v21 = vsel %vm90_vm1, %v3323_v20, 0.0  ;;  %v124_v24 = vmul.f32 %v3323_v20, %v3323_v20 }
  0x9e   :  { %98 = vadd.xlane.f32.xlu1 %v97_v21  ;;  %132 = vadd.xlane.f32.xlu0 %v131_v22 }
  0x9f   :  { %v134_v28 = vsel %vm90_vm1, %v124_v24, 0.0 }
  0xa2   :  { %v75_v25 = vpop.f32.mrf.mxu0 }
  0xa3   :  { %v3333_v26 = vadd.f32 %v75_v25, %v27_v23 }
  0xa5   :  { %v100_v27 = vsel %vm90_vm1, %v3333_v26, 0.0  ;;  %v125_v30 = vmul.f32 %v3333_v26, %v3333_v26 }
  0xa6   :  { %101 = vadd.xlane.f32.xlu2 %v100_v27  ;;  %135 = vadd.xlane.f32.xlu1 %v134_v28 }
  0xa7   :  { %v137_v33 = vsel %vm90_vm1, %v125_v30, 0.0 }
  0xaa   :  { %v78_v31 = vpop.f32.mrf.mxu0 }
  0xab   :  { %v3343_v32 = vadd.f32 %v78_v31, %v28_v29 }
  0xad   :  { %v103_v34 = vsel %vm90_vm1, %v3343_v32, 0.0  ;;  %v126_v35 = vmul.f32 %v3343_v32, %v3343_v32 }
  0xae   :  { %138 = vadd.xlane.f32.xlu2 %v137_v33  ;;  %104 = vadd.xlane.f32.xlu0 %v103_v34 }
  0xaf   :  { %v140_v36 = vsel %vm90_vm1, %v126_v35, 0.0 }
  0xb0   :  { %141 = vadd.xlane.f32.xlu1 %v140_v36 }
  0xb2   :  { %v81_v39 = vpop.f32.mrf.mxu0 }
  0xb3   :  { %v3359_v41 = vadd.f32 %v81_v39, %v29_v38 }
  0xb5   :  { %v106_v42 = vsel %vm90_vm1, %v3359_v41, 0.0  ;;  %v127_v43 = vmul.f32 %v3359_v41, %v3359_v41 }
  0xb6   :  { %107 = vadd.xlane.f32.xlu2 %v106_v42 }
  0xb7   :  { %v143_v44 = vsel %vm90_vm1, %v127_v43, 0.0 }
  0xb8   :  { %144 = vadd.xlane.f32.xlu0 %v143_v44  ;;  %92 = vadd.xlane.f32.xlu1 %v91_v45 }
  0xbe   :  { %129 = vadd.xlane.f32.xlu2 %v128_v47 }
 0x109   :  { %v96_v56 = vpop.xlane.xlu0 %95 }
 0x10a   :  { %v3383_v59 = vmul.f32 %v3377_v57, %v96_v56  ;;  %v347_v56 = vld [vmem:[%s4575_s1 + $0x1d0] sm:$0xff] }
 0x10b   :  { %365 = vmatpush.msrb.mxu3 %v347_v56 }
 0x10c   :  { %v153_v63 = vmul.f32 %v3383_v59, %v3383_v59  ;;  %v171_v45 = vsub.f32 %v3314_v15, %v3383_v59 }
 0x111   :  { %v99_v61 = vpop.xlane.xlu1 %98  ;;  %v133_v62 = vpop.xlane.xlu0 %132 }
 0x112   :  { %v147_v0 = vmul.f32 %v133_v62, %v3377_v57  ;;  %v3392_v2 = vmul.f32 %v3377_v57, %v99_v61 }
 0x114   :  { %v159_v1 = vsub.f32 %v147_v0, %v153_v63  ;;  %v154_v7 = vmul.f32 %v3392_v2, %v3392_v2  ;;  %v346_v63 = vld [vmem:[%s4575_s1 + $0x1c0] sm:$0xff]  ;;  %v622_v0 = vld [vmem:[%s4575_s1 + $0x2b0] sm:$0xff] }
 0x115   :  { %636 = vmatpush.msra.mxu0 %v622_v0  ;;  %366 = vmatpush.msrb.mxu3 %v346_v63  ;;  %v579_v63 = vld [vmem:[%s4575_s1 + $0x230] sm:$0xff] }
 0x116   :  { %v165_v3 = vmax.f32 %v159_v1, 0.0 }
 0x117   :  { %637 = vmatpush.msra.mxu0 %v621_v11 }
 0x118   :  { %v177_v4 = vadd.f32 1e-12, %v165_v3 }
 0x119   :  { %v102_v5 = vpop.xlane.xlu2 %101  ;;  %v136_v6 = vpop.xlane.xlu1 %135 }
 0x11a   :  { %3048 = vrsqrt.f32 %v177_v4  ;;  %v148_v8 = vmul.f32 %v136_v6, %v3377_v57  ;;  %v3404_v12 = vmul.f32 %v3377_v57, %v102_v5  ;;  %vm198_vm4 = vweird.f32 %v177_v4 }
 0x11c   :  { %v160_v10 = vsub.f32 %v148_v8, %v154_v7  ;;  %v155_v23 = vmul.f32 %v3404_v12, %v3404_v12  ;;  %v172_v8 = vsub.f32 %v3323_v20, %v3392_v2 }
 0x11e   :  { %v166_v13 = vmax.f32 %v160_v10, 0.0 }
 0x120   :  { %v3049_v16 = vpop.eup %3048  ;;  %v3409_v17 = vadd.f32 1e-12, %v166_v13  ;;  %v620_v13 = vld [vmem:[%s4575_s1 + $0x290] sm:$0xff] }
 0x121   :  { %v193_v19 = vmul.f32 %v3049_v16, %v177_v4  ;;  %v139_v21 = vpop.xlane.xlu2 %138  ;;  %v105_v22 = vpop.xlane.xlu0 %104  ;;  %vm199_vm3 = vweird.f32 %v3049_v16  ;;  %638 = vmatpush.msra.mxu0 %v620_v13 }
 0x122   :  { %3050 = vrsqrt.f32 %v3409_v17  ;;  %v149_v24 = vmul.f32 %v139_v21, %v3377_v57  ;;  %v3419_v25 = vmul.f32 %v3377_v57, %v105_v22  ;;  %vm200_vm5 = vmor %vm198_vm4, %vm199_vm3  ;;  %vm208_vm7 = vweird.f32 %v3409_v17  ;;  %v619_v21 = vld [vmem:[%s4575_s1 + $0x280] sm:$0xff] }
 0x123   :  { %v194_v27 = vmul.f32 %v3049_v16, %v193_v19  ;;  %v142_v28 = vpop.xlane.xlu1 %141  ;;  %639 = vmatpush.msra.mxu0 %v619_v21 }
 0x124   :  { %v161_v29 = vsub.f32 %v149_v24, %v155_v23  ;;  %v156_v30 = vmul.f32 %v3419_v25, %v3419_v25  ;;  %v150_v31 = vmul.f32 %v142_v28, %v3377_v57 }
 0x125   :  { %v195_v33 = vmul.f32 0.5, %v194_v27 }
 0x126   :  { %v167_v34 = vmax.f32 %v161_v29, 0.0  ;;  %v162_v35 = vsub.f32 %v150_v31, %v156_v30 }
 0x127   :  { %v196_v36 = vsub.f32 1.5, %v195_v33  ;;  %v173_v33 = vsub.f32 %v3333_v26, %v3404_v12 }
 0x128   :  { %v3051_v37 = vpop.eup %3050  ;;  %v3424_v38 = vadd.f32 1e-12, %v167_v34  ;;  %v168_v39 = vmax.f32 %v162_v35, 0.0 }
 0x129   :  { %v197_v42 = vmul.f32 %v3049_v16, %v196_v36  ;;  %v203_v43 = vmul.f32 %v3051_v37, %v3409_v17  ;;  %v108_v44 = vpop.xlane.xlu2 %107  ;;  %vm209_vm6 = vweird.f32 %v3051_v37 }
 0x12a   :  { %3052 = vrsqrt.f32 %v3424_v38  ;;  %v3430_v46 = vadd.f32 1e-12, %v168_v39  ;;  %v3433_v47 = vmul.f32 %v3377_v57, %v108_v44  ;;  %vm210_vm8 = vmor %vm208_vm7, %vm209_vm6  ;;  %vm218_vm10 = vweird.f32 %v3424_v38 }
 0x12b   :  { %v201_v49 = vsel %vm200_vm5, %v3049_v16, %v197_v42  ;;  %v204_v50 = vmul.f32 %v3051_v37, %v203_v43  ;;  %v145_v51 = vpop.xlane.xlu0 %144  ;;  %v93_v52 = vpop.xlane.xlu1 %92  ;;  %v174_v39 = vsub.f32 %v3343_v32, %v3419_v25  ;;  %vm386_vm7 = vcmask 130048  }
 0x12c   :  { %v3438_v53 = vmul.f32 %v201_v49, %v171_v45  ;;  %3054 = vrsqrt.f32 %v3430_v46  ;;  %v157_v54 = vmul.f32 %v3433_v47, %v3433_v47  ;;  %v151_v59 = vmul.f32 %v145_v51, %v3377_v57 }
 0x12d   :  { %v205_v58 = vmul.f32 0.5, %v204_v50  ;;  %v3451_v60 = vmul.f32 %v3377_v57, %v93_v52  ;;  %vm228_vm11 = vweird.f32 %v3430_v46  ;;  %v175_v51 = vsub.f32 %v3359_v41, %v3433_v47 }
 0x12e   :  { %2843 = vmatmul.msk.f32.vlgmr.msra.gmra.mxu2 %vm90_vm1, %v3438_v53  ;;  %v163_v62 = vsub.f32 %v151_v59, %v157_v54 }
 0x12f   :  { %v206_v61 = vsub.f32 1.5, %v205_v58  ;;  %v152_v9 = vmul.f32 %v3451_v60, %v3451_v60  ;;  %v170_v58 = vsub.f32 %v3357_v40, %v3451_v60  ;;  %v582_v60 = vld [vmem:[%s4575_s1 + $0x260] sm:$0xff] }
 0x130   :  { %v3053_v1 = vpop.eup %3052  ;;  %v169_v5 = vmax.f32 %v163_v62, 0.0  ;;  %v580_v62 = vld [vmem:[%s4575_s1 + $0x240] sm:$0xff] }
 0x131   :  { %v207_v3 = vmul.f32 %v3051_v37, %v206_v61  ;;  %v213_v4 = vmul.f32 %v3053_v1, %v3424_v38  ;;  %v130_v6 = vpop.xlane.xlu2 %129  ;;  %vm219_vm9 = vweird.f32 %v3053_v1  ;;  %v581_v61 = vld [vmem:[%s4575_s1 + $0x250] sm:$0xff] }
 0x132   :  { %v3055_v7 = vpop.eup %3054  ;;  %v146_v10 = vmul.f32 %v130_v6, %v3377_v57  ;;  %v181_v18 = vadd.f32 1e-12, %v169_v5  ;;  %vm220_vm13 = vmor %vm218_vm10, %vm219_vm9 }
 0x133   :  { %v211_v14 = vsel %vm210_vm8, %v3051_v37, %v207_v3  ;;  %v214_v16 = vmul.f32 %v3053_v1, %v213_v4  ;;  %v223_v17 = vmul.f32 %v3055_v7, %v3430_v46  ;;  %vm229_vm12 = vweird.f32 %v3055_v7 }
 0x134   :  { %v3476_v2 = vmul.f32 %v211_v14, %v172_v8  ;;  %v158_v19 = vsub.f32 %v146_v10, %v152_v9  ;;  %3056 = vrsqrt.f32 %v181_v18  ;;  %vm230_vm14 = vmor %vm228_vm11, %vm229_vm12  ;;  %vm238_vm15 = vweird.f32 %v181_v18  ;;  %v310_v8 = vld [vmem:[%s4575_s1 + $0x1b0] ss:$0 sm:$0xff] }
 0x135   :  { %v215_v22 = vmul.f32 0.5, %v214_v16  ;;  %v224_v23 = vmul.f32 %v3055_v7, %v223_v17 }
 0x136   :  { %v164_v24 = vmax.f32 %v158_v19, 0.0  ;;  %2844 = vmatmul.msk.f32.gmra.mxu2 %vm90_vm1, %v3476_v2 }
 0x137   :  { %v216_v27 = vsub.f32 1.5, %v215_v22  ;;  %v225_v28 = vmul.f32 0.5, %v224_v23 }
 0x138   :  { %v176_v29 = vadd.f32 1e-12, %v164_v24 }
 0x139   :  { %v217_v30 = vmul.f32 %v3053_v1, %v216_v27  ;;  %v226_v31 = vsub.f32 1.5, %v225_v28  ;;  %v252_v28 = vld [vmem:[%s4575_s1 + $0x160] ss:$0 sm:$0xff] }
 0x13a   :  { %3058 = vrsqrt.f32 %v176_v29  ;;  %v3057_v36 = vpop.eup %3056  ;;  %vm188_vm5 = vweird.f32 %v176_v29 }
 0x13b   :  { %v221_v34 = vsel %vm220_vm13, %v3053_v1, %v217_v30  ;;  %v227_v35 = vmul.f32 %v3055_v7, %v226_v31  ;;  %v233_v42 = vmul.f32 %v3057_v36, %v181_v18  ;;  %vm239_vm2 = vweird.f32 %v3057_v36 }
 0x13c   :  { %v3487_v37 = vmul.f32 %v221_v34, %v173_v33  ;;  %vm240_vm3 = vmor %vm238_vm15, %vm239_vm2 }
 0x13d   :  { %v231_v38 = vsel %vm230_vm14, %v3055_v7, %v227_v35  ;;  %v234_v44 = vmul.f32 %v3057_v36, %v233_v42  ;;  %v660_v42 = vld [vmem:[%s4575_s1 + $0x2e0] sm:$0xff] }
 0x13e   :  { %v3491_v43 = vmul.f32 %v231_v38, %v174_v39  ;;  %2845 = vmatmul.msk.f32.gmra.mxu2 %vm90_vm1, %v3487_v37  ;;  %v662_v39 = vld [vmem:[%s4575_s1 + $0x300] sm:$0xff]  ;;  %v661_v38 = vld [vmem:[%s4575_s1 + $0x2f0] sm:$0xff] }
 0x13f   :  { %v235_v45 = vmul.f32 0.5, %v234_v44 }
 0x140   :  { %v3059_v12 = vpop.eup %3058  ;;  %2840 = vmatmul.msk.f32.vlgmr.msra.gmra.mxu3 %vm90_vm1, %v3491_v43 }
 0x141   :  { %v183_v46 = vmul.f32 %v3059_v12, %v176_v29  ;;  %v236_v48 = vsub.f32 1.5, %v235_v45  ;;  %vm189_vm4 = vweird.f32 %v3059_v12  ;;  %596 = vmatpush.msra.mxu3 %v582_v60 }
 0x142   :  { %vm190_vm6 = vmor %vm188_vm5, %vm189_vm4 }
 0x143   :  { %v184_v49 = vmul.f32 %v3059_v12, %v183_v46  ;;  %v237_v25 = vmul.f32 %v3057_v36, %v236_v48  ;;  %597 = vmatpush.msra.mxu3 %v581_v61  ;;  %v350_v48 = vld [vmem:[%s4575_s1 + $0x200] ss:$0 sm:$0xff] }
 0x145   :  { %v185_v50 = vmul.f32 0.5, %v184_v49  ;;  %v241_v52 = vsel %vm240_vm3, %v3057_v36, %v237_v25  ;;  %598 = vmatpush.msra.mxu3 %v580_v62 }
 0x146   :  { %2846 = vmatmul.msk.f32.gmra.mxu2 %vm90_vm1, %v3491_v43  ;;  %v3501_v55 = vmul.f32 %v241_v52, %v175_v51 }
 0x147   :  { %v186_v54 = vsub.f32 1.5, %v185_v50  ;;  %599 = vmatpush.msra.mxu3 %v579_v63 }
 0x148   :  { %2841 = vmatmul.msk.f32.gmra.mxu3 %vm90_vm1, %v3501_v55 }
 0x149   :  { %v187_v56 = vmul.f32 %v3059_v12, %v186_v54 }
 0x14b   :  { %v191_v59 = vsel %vm190_vm6, %v3059_v12, %v187_v56  ;;  %v659_v12 = vld [vmem:[%s4575_s1 + $0x2d0] sm:$0xff] }
 0x14c   :  { %v3507_v47 = vmul.f32 %v191_v59, %v170_v58  ;;  %v623_v59 = vld [vmem:[%s4575_s1 + $0x2c0] ss:$0 sm:$0xff] }
 0x14e   :  { %2836 = vmatmul.msk.f32.vlgmr.msra.gmra.mxu1 %vm90_vm1, %v3507_v47  ;;  %2842 = vmatmul.msk.f32.vlgmr.msrb.gmra.mxu0 %vm90_vm1, %v3507_v47 }
 0x14f   :  { %2847 = vmatmul.msk.f32.gmra.mxu2 %vm90_vm1, %v3501_v55 }
 0x150   :  { %2848 = vmatmul.msk.f32.vlgmr.msrb.gmra.mxu3 %vm90_vm1, %v3507_v47 }
 0x156   :  { %2837 = vmatmul.msk.f32.gmra.mxu1 %vm90_vm1, %v3438_v53  ;;  %2878 = vmatmul.msk.f32.vlgmr.msra.gmra.mxu0 %vm90_vm1, %v3507_v47 }
 0x158   :  { %2849 = vmatmul.msk.f32.gmra.mxu3 %vm90_vm1, %v3438_v53 }
 0x15e   :  { %2838 = vmatmul.msk.f32.gmra.mxu1 %vm90_vm1, %v3476_v2  ;;  %2879 = vmatmul.msk.f32.gmra.mxu0 %vm90_vm1, %v3438_v53 }
 0x160   :  { %2850 = vmatmul.msk.f32.gmra.mxu3 %vm90_vm1, %v3476_v2 }
 0x166   :  { %2839 = vmatmul.msk.f32.gmra.mxu1 %vm90_vm1, %v3487_v37  ;;  %2880 = vmatmul.msk.f32.gmra.mxu0 %vm90_vm1, %v3476_v2 }
 0x168   :  { %2851 = vmatmul.msk.f32.gmra.mxu3 %vm90_vm1, %v3487_v37 }
 0x16e   :  { %2881 = vmatmul.msk.f32.gmra.mxu0 %vm90_vm1, %v3487_v37 }
 0x170   :  { %2852 = vmatmul.msk.f32.gmra.mxu3 %vm90_vm1, %v3491_v43 }
 0x176   :  { %2882 = vmatmul.msk.f32.gmra.mxu0 %vm90_vm1, %v3491_v43 }
 0x178   :  { %2853 = vmatmul.msk.f32.gmra.mxu3 %vm90_vm1, %v3501_v55 }
 0x17e   :  { %2883 = vmatmul.msk.f32.gmra.mxu0 %vm90_vm1, %v3501_v55 }
 0x180   :  { %2872 = vmatmul.msk.f32.vlgmr.msra.gmra.mxu3 %vm90_vm1, %v3507_v47 }
 0x188   :  { %2873 = vmatmul.msk.f32.gmra.mxu3 %vm90_vm1, %v3438_v53 }
 0x190   :  { %2874 = vmatmul.msk.f32.gmra.mxu3 %vm90_vm1, %v3476_v2 }
 0x198   :  { %2875 = vmatmul.msk.f32.gmra.mxu3 %vm90_vm1, %v3487_v37 }
 0x1a0   :  { %2876 = vmatmul.msk.f32.gmra.mxu3 %vm90_vm1, %v3491_v43 }
 0x1a8   :  { %2877 = vmatmul.msk.f32.gmra.mxu3 %vm90_vm1, %v3501_v55 }
 0x1b1   :  { %v331_v0 = vpop.f32.mrf.mxu2 }
 0x1b2   :  { %v332_v22 = vadd.f32 %v331_v0, %v310_v8 }
 0x1b9   :  { %v334_v1 = vpop.f32.mrf.mxu2 }
 0x1ba   :  { %v335_v19 = vadd.f32 %v334_v1, %v310_v8 }
 0x1c1   :  { %v337_v3 = vpop.f32.mrf.mxu2 }
 0x1c2   :  { %v338_v16 = vadd.f32 %v337_v3, %v310_v8 }
 0x1c3   :  { %v3569_v4 = vpop.f32.mrf.mxu3 }
 0x1c4   :  { %v301_v62 = vadd.f32 %v3569_v4, %v252_v28 }
 0x1c9   :  { %v340_v5 = vpop.f32.mrf.mxu2 }
 0x1ca   :  { %v341_v14 = vadd.f32 %v340_v5, %v310_v8 }
 0x1cb   :  { %v328_v6 = vpop.f32.mrf.mxu0  ;;  %v3571_v7 = vpop.f32.mrf.mxu3 }
 0x1cc   :  { %v288_v21 = vpop.f32.mrf.mxu1  ;;  %v329_v24 = vadd.f32 %v328_v6, %v310_v8  ;;  %v304_v1 = vadd.f32 %v3571_v7, %v252_v28 }
 0x1cd   :  { %v289_v29 = vadd.f32 %v288_v21, %v252_v28 }
 0x1d2   :  { %v343_v9 = vpop.f32.mrf.mxu2 }
 0x1d3   :  { %v344_v10 = vadd.f32 %v343_v9, %v310_v8  ;;  %v3576_v11 = vpop.f32.mrf.mxu0  ;;  %v368_v13 = vpop.f32.mrf.mxu3  ;;  %v3649_v8 = vld [vmem:[%s4575_s1 + $0xe0] sm:$0xff] }
 0x1d4   :  { %v291_v30 = vpop.f32.mrf.mxu1  ;;  %v369_v60 = vadd.f32 %v368_v13, %v350_v48  ;;  %v642_v4 = vadd.f32 %v3576_v11, %v623_v59  ;;  %v3656_v13 = vld [vmem:[%s4575_s1 + $0xf0] sm:$0xff] }
 0x1d5   :  { %2854 = vmatpush.xpose.msk.msrb.mxu1 %vm386_vm7, %v344_v10  ;;  %v292_v33 = vadd.f32 %v291_v30, %v252_v28 }
 0x1d9   :  { %2855 = vmatpush.xpose.msk.msrb.mxu1 %vm386_vm7, %v341_v14 }
 0x1db   :  { %v371_v17 = vpop.f32.mrf.mxu3  ;;  %v644_v18 = vpop.f32.mrf.mxu0 }
 0x1dc   :  { %v294_v35 = vpop.f32.mrf.mxu1  ;;  %v372_v58 = vadd.f32 %v371_v17, %v350_v48  ;;  %v645_v5 = vadd.f32 %v644_v18, %v623_v59  ;;  %v3663_v18 = vld [vmem:[%s4575_s1 + $0x100] sm:$0xff] }
 0x1dd   :  { %2856 = vmatpush.xpose.msk.msrb.mxu1 %vm386_vm7, %v338_v16  ;;  %v295_v44 = vadd.f32 %v294_v35, %v252_v28  ;;  %v663_v35 = vld [vmem:[%s4575_s1 + $0x310] ss:$0 sm:$0xff] }
 0x1e1   :  { %2857 = vmatpush.xpose.msk.msrb.mxu1 %vm386_vm7, %v335_v19 }
 0x1e3   :  { %v374_v23 = vpop.f32.mrf.mxu3  ;;  %v647_v27 = vpop.f32.mrf.mxu0 }
 0x1e4   :  { %v297_v25 = vpop.f32.mrf.mxu1  ;;  %v375_v54 = vadd.f32 %v374_v23, %v350_v48  ;;  %v648_v3 = vadd.f32 %v647_v27, %v623_v59  ;;  %v3670_v23 = vld [vmem:[%s4575_s1 + $0x110] sm:$0xff] }
 0x1e5   :  { %2858 = vmatpush.xpose.msk.msrb.mxu1 %vm386_vm7, %v332_v22  ;;  %v298_v51 = vadd.f32 %v297_v25, %v252_v28 }
 0x1e9   :  { %2859 = vmatpush.xpose.msk.msrb.mxu1 %vm386_vm7, %v329_v24 }
 0x1eb   :  { %v377_v31 = vpop.f32.mrf.mxu3  ;;  %v650_v34 = vpop.f32.mrf.mxu0 }
 0x1ec   :  { %2860 = vmatmul.msk.f32.vlgmr.msrb.gmra.mxu1 %vm386_vm7, %v289_v29  ;;  %v378_v52 = vadd.f32 %v377_v31, %v350_v48  ;;  %v651_v0 = vadd.f32 %v650_v34, %v623_v59 }
 0x1ed   :  { %676 = vmatpush.msra.mxu1 %v662_v39 }
 0x1ef   :  { %677 = vmatpush.msra.mxu1 %v661_v38 }
 0x1f1   :  { %678 = vmatpush.msra.mxu1 %v660_v42 }
 0x1f3   :  { %v380_v36 = vpop.f32.mrf.mxu3  ;;  %v653_v45 = vpop.f32.mrf.mxu0  ;;  %679 = vmatpush.msra.mxu1 %v659_v12 }
 0x1f4   :  { %2861 = vmatmul.msk.f32.gmra.mxu1 %vm386_vm7, %v292_v33  ;;  %v381_v50 = vadd.f32 %v380_v36, %v350_v48  ;;  %v654_v63 = vadd.f32 %v653_v45, %v623_v59 }
 0x1fb   :  { %v383_v46 = vpop.f32.mrf.mxu3  ;;  %v656_v56 = vpop.f32.mrf.mxu0 }
 0x1fc   :  { %2862 = vmatmul.msk.f32.gmra.mxu1 %vm386_vm7, %v295_v44  ;;  %v384_v49 = vadd.f32 %v383_v46, %v350_v48  ;;  %v657_v61 = vadd.f32 %v656_v56, %v623_v59 }
 0x1fe   :  { %552 = vmatpush.msrb.mxu2 %v384_v49 }
 0x200   :  { %553 = vmatpush.msrb.mxu2 %v381_v50 }
 0x202   :  { %554 = vmatpush.msrb.mxu2 %v378_v52 }
 0x204   :  { %2863 = vmatmul.msk.f32.gmra.mxu1 %vm386_vm7, %v298_v51  ;;  %555 = vmatpush.msrb.mxu2 %v375_v54 }
 0x206   :  { %556 = vmatpush.msrb.mxu2 %v372_v58 }
 0x208   :  { %557 = vmatpush.msrb.mxu2 %v369_v60 }
 0x20a   :  { %2890 = vmatpush.xpose.msk.msra.mxu2 %vm386_vm7, %v657_v61 }
 0x20c   :  { %2864 = vmatmul.msk.f32.gmra.mxu1 %vm386_vm7, %v301_v62 }
 0x20e   :  { %2891 = vmatpush.xpose.msk.msra.mxu2 %vm386_vm7, %v654_v63 }
 0x212   :  { %2892 = vmatpush.xpose.msk.msra.mxu2 %vm386_vm7, %v651_v0 }
 0x214   :  { %2865 = vmatmul.msk.f32.gmra.mxu1 %vm386_vm7, %v304_v1 }
 0x216   :  { %2893 = vmatpush.xpose.msk.msra.mxu2 %vm386_vm7, %v648_v3 }
 0x21a   :  { %2894 = vmatpush.xpose.msk.msra.mxu2 %vm386_vm7, %v645_v5 }
 0x21c   :  { %2884 = vmatmul.msk.f32.vlgmr.msra.gmra.mxu1 %vm90_vm1, %v3507_v47  ;;  %v3635_v47 = vld [vmem:[%s4575_s1 + $0xc0] sm:$0xff] }
 0x21e   :  { %2895 = vmatpush.xpose.msk.msra.mxu2 %vm386_vm7, %v642_v4 }
 0x224   :  { %2885 = vmatmul.msk.f32.gmra.mxu1 %vm90_vm1, %v3438_v53 }
 0x22c   :  { %2886 = vmatmul.msk.f32.gmra.mxu1 %vm90_vm1, %v3476_v2  ;;  %v3642_v2 = vld [vmem:[%s4575_s1 + $0xd0] sm:$0xff] }
 0x234   :  { %2887 = vmatmul.msk.f32.gmra.mxu1 %vm90_vm1, %v3487_v37 }
 0x23c   :  { %2888 = vmatmul.msk.f32.gmra.mxu1 %vm90_vm1, %v3491_v43 }
 0x244   :  { %2889 = vmatmul.msk.f32.gmra.mxu1 %vm90_vm1, %v3501_v55 }
 0x269   :  { %v440_v6 = vpop.f32.mrf.mxu1 }
 0x26a   :  { %v441_v53 = vadd.f32 %v440_v6, %v3635_v47 }
 0x26c   :  { %v458_v7 = vsel %vm30_vm0, %v441_v53, -inf }
 0x26d   :  { %459 = vmax.xlane.f32.xlu0 %v458_v7 }
 0x271   :  { %v443_v37 = vpop.f32.mrf.mxu1 }
 0x272   :  { %v444_v43 = vadd.f32 %v443_v37, %v3642_v2 }
 0x274   :  { %v461_v55 = vsel %vm30_vm0, %v444_v43, -inf }
 0x275   :  { %462 = vmax.xlane.f32.xlu1 %v461_v55 }
 0x279   :  { %v446_v9 = vpop.f32.mrf.mxu1 }
 0x27a   :  { %v447_v10 = vadd.f32 %v446_v9, %v3649_v8 }
 0x27c   :  { %v464_v11 = vsel %vm30_vm0, %v447_v10, -inf }
 0x27d   :  { %465 = vmax.xlane.f32.xlu2 %v464_v11 }
 0x281   :  { %v449_v14 = vpop.f32.mrf.mxu1 }
 0x282   :  { %v450_v16 = vadd.f32 %v449_v14, %v3656_v13 }
 0x284   :  { %v467_v17 = vsel %vm30_vm0, %v450_v16, -inf }
 0x285   :  { %468 = vmax.xlane.f32.xlu0 %v467_v17 }
 0x289   :  { %v452_v19 = vpop.f32.mrf.mxu1 }
 0x28a   :  { %v453_v21 = vadd.f32 %v452_v19, %v3663_v18 }
 0x28c   :  { %v470_v22 = vsel %vm30_vm0, %v453_v21, -inf }
 0x28d   :  { %471 = vmax.xlane.f32.xlu1 %v470_v22 }
 0x291   :  { %v455_v24 = vpop.f32.mrf.mxu1 }
 0x292   :  { %v456_v27 = vadd.f32 %v455_v24, %v3670_v23 }
 0x294   :  { %v473_v28 = vsel %vm30_vm0, %v456_v27, -inf }
 0x295   :  { %474 = vmax.xlane.f32.xlu2 %v473_v28 }
 0x299   :  { %v681_v29 = vpop.f32.mrf.mxu1 }
 0x29a   :  { %v682_v45 = vadd.f32 %v681_v29, %v663_v35 }
 0x2a1   :  { %v684_v30 = vpop.f32.mrf.mxu1 }
 0x2a2   :  { %v685_v12 = vadd.f32 %v684_v30, %v663_v35 }
 0x2a9   :  { %v687_v31 = vpop.f32.mrf.mxu1 }
 0x2aa   :  { %v688_v44 = vadd.f32 %v687_v31, %v663_v35 }
 0x2b1   :  { %v690_v33 = vpop.f32.mrf.mxu1 }
 0x2b2   :  { %v691_v42 = vadd.f32 %v690_v33, %v663_v35 }
 0x2b9   :  { %v693_v34 = vpop.f32.mrf.mxu1 }
 0x2ba   :  { %v694_v38 = vadd.f32 %v693_v34, %v663_v35 }
 0x2c1   :  { %v696_v36 = vpop.f32.mrf.mxu1 }
 0x2c2   :  { %v697_v39 = vadd.f32 %v696_v36, %v663_v35 }
 0x2c4   :  { %864 = vmatpush.msrb.mxu3 %v697_v39 }
 0x2c6   :  { %865 = vmatpush.msrb.mxu3 %v694_v38  ;;  %v601_v38 = vpop.f32.mrf.mxu3 }
 0x2c8   :  { %866 = vmatpush.msrb.mxu3 %v691_v42 }
 0x2ca   :  { %867 = vmatpush.msrb.mxu3 %v688_v44 }
 0x2cc   :  { %868 = vmatpush.msrb.mxu3 %v685_v12  ;;  %v583_v12 = vld [vmem:[%s4575_s1 + $0x270] ss:$0 sm:$0xff] }
 0x2ce   :  { %869 = vmatpush.msrb.mxu3 %v682_v45  ;;  %v604_v45 = vpop.f32.mrf.mxu3 }
 0x2e0   :  { %v460_v46 = vpop.xlane.xlu0 %459 }
 0x2e1   :  { %v476_v48 = vsub.f32 %v441_v53, %v460_v46  ;;  %v602_v46 = vadd.f32 %v601_v38, %v583_v12 }
 0x2e3   :  { %v482_v49 = vmul.f32 1.442695, %v476_v48  ;;  %v607_v48 = vpop.f32.mrf.mxu3 }
 0x2e5   :  { %3060 = vpow2.f32 %v482_v49  ;;  %v605_v49 = vadd.f32 %v604_v45, %v583_v12 }
 0x2e8   :  { %v463_v25 = vpop.xlane.xlu1 %462 }
 0x2e9   :  { %v477_v50 = vsub.f32 %v444_v43, %v463_v25  ;;  %v578_v25 = vld [vmem:[%s4575_s1 + $0x220] sm:$0xff] }
 0x2ea   :  { %976 = vmatpush.msrb.mxu1 %v578_v25 }
 0x2eb   :  { %v3061_v51 = vpop.eup %3060  ;;  %v484_v52 = vmul.f32 1.442695, %v477_v50  ;;  %v608_v50 = vadd.f32 %v607_v48, %v583_v12 }
 0x2ec   :  { %v494_v54 = vsel %vm30_vm0, %v3061_v51, 0.0 }
 0x2ed   :  { %3062 = vpow2.f32 %v484_v52  ;;  %495 = vadd.xlane.f32.xlu0 %v494_v54 }
 0x2f0   :  { %v466_v56 = vpop.xlane.xlu2 %465 }
 0x2f1   :  { %v478_v58 = vsub.f32 %v447_v10, %v466_v56 }
 0x2f3   :  { %v3063_v59 = vpop.eup %3062  ;;  %v486_v60 = vmul.f32 1.442695, %v478_v58 }
 0x2f4   :  { %v497_v61 = vsel %vm30_vm0, %v3063_v59, 0.0 }
 0x2f5   :  { %3064 = vpow2.f32 %v486_v60  ;;  %498 = vadd.xlane.f32.xlu1 %v497_v61  ;;  %v577_v60 = vld [vmem:[%s4575_s1 + $0x210] sm:$0xff] }
 0x2f6   :  { %977 = vmatpush.msrb.mxu1 %v577_v60 }
 0x2f8   :  { %v469_v62 = vpop.xlane.xlu0 %468 }
 0x2f9   :  { %v479_v63 = vsub.f32 %v450_v16, %v469_v62 }
 0x2fb   :  { %v3065_v0 = vpop.eup %3064  ;;  %v488_v1 = vmul.f32 1.442695, %v479_v63 }
 0x2fc   :  { %v500_v3 = vsel %vm30_vm0, %v3065_v0, 0.0 }
 0x2fd   :  { %3066 = vpow2.f32 %v488_v1  ;;  %501 = vadd.xlane.f32.xlu2 %v500_v3 }
 0x300   :  { %v472_v5 = vpop.xlane.xlu1 %471 }
 0x301   :  { %v480_v4 = vsub.f32 %v453_v21, %v472_v5 }
 0x303   :  { %v3067_v6 = vpop.eup %3066  ;;  %v490_v53 = vmul.f32 1.442695, %v480_v4 }
 0x304   :  { %v503_v7 = vsel %vm30_vm0, %v3067_v6, 0.0 }
 0x305   :  { %3068 = vpow2.f32 %v490_v53  ;;  %504 = vadd.xlane.f32.xlu0 %v503_v7 }
 0x308   :  { %v475_v37 = vpop.xlane.xlu2 %474 }
 0x309   :  { %v481_v43 = vsub.f32 %v456_v27, %v475_v37 }
 0x30b   :  { %v3069_v55 = vpop.eup %3068  ;;  %v492_v9 = vmul.f32 1.442695, %v481_v43 }
 0x30c   :  { %v506_v10 = vsel %vm30_vm0, %v3069_v55, 0.0 }
 0x30d   :  { %3070 = vpow2.f32 %v492_v9  ;;  %507 = vadd.xlane.f32.xlu1 %v506_v10 }
 0x313   :  { %v3071_v11 = vpop.eup %3070 }
 0x314   :  { %v509_v14 = vsel %vm30_vm0, %v3071_v11, 0.0 }
 0x315   :  { %510 = vadd.xlane.f32.xlu2 %v509_v14 }
 0x360   :  { %v496_v16 = vpop.xlane.xlu0 %495 }
 0x361   :  { %3072 = vrcp.f32 %v496_v16 }
 0x367   :  { %v3073_v17 = vpop.eup %3072 }
 0x368   :  { %v499_v19 = vpop.xlane.xlu1 %498  ;;  %v518_v21 = vmul.f32 %v3073_v17, %v3061_v51  ;;  %v610_v51 = vpop.f32.mrf.mxu3 }
 0x369   :  { %3074 = vrcp.f32 %v499_v19  ;;  %v611_v52 = vadd.f32 %v610_v51, %v583_v12 }
 0x36a   :  { %2866 = vmatmul.msk.f32.vlgmr.msrb.gmra.mxu2 %vm30_vm0, %v518_v21 }
 0x36f   :  { %v3075_v22 = vpop.eup %3074 }
 0x370   :  { %v502_v24 = vpop.xlane.xlu2 %501  ;;  %v519_v27 = vmul.f32 %v3075_v22, %v3063_v59  ;;  %v613_v54 = vpop.f32.mrf.mxu3 }
 0x371   :  { %3076 = vrcp.f32 %v502_v24  ;;  %v614_v56 = vadd.f32 %v613_v54, %v583_v12 }
 0x372   :  { %2867 = vmatmul.msk.f32.gmra.mxu2 %vm30_vm0, %v519_v27 }
 0x377   :  { %v3077_v28 = vpop.eup %3076 }
 0x378   :  { %v505_v29 = vpop.xlane.xlu0 %504  ;;  %v520_v30 = vmul.f32 %v3077_v28, %v3065_v0  ;;  %v616_v58 = vpop.f32.mrf.mxu3 }
 0x379   :  { %3078 = vrcp.f32 %v505_v29  ;;  %v617_v59 = vadd.f32 %v616_v58, %v583_v12 }
 0x37a   :  { %2868 = vmatmul.msk.f32.gmra.mxu2 %vm30_vm0, %v520_v30 }
 0x37f   :  { %v3079_v31 = vpop.eup %3078 }
 0x380   :  { %v508_v33 = vpop.xlane.xlu1 %507  ;;  %v521_v34 = vmul.f32 %v3079_v31, %v3067_v6 }
 0x381   :  { %3080 = vrcp.f32 %v508_v33 }
 0x382   :  { %2869 = vmatmul.msk.f32.gmra.mxu2 %vm30_vm0, %v521_v34 }
 0x387   :  { %v3081_v35 = vpop.eup %3080 }
 0x388   :  { %v511_v36 = vpop.xlane.xlu2 %510  ;;  %v522_v39 = vmul.f32 %v3081_v35, %v3069_v55 }
 0x389   :  { %3082 = vrcp.f32 %v511_v36 }
 0x38a   :  { %2870 = vmatmul.msk.f32.gmra.mxu2 %vm30_vm0, %v522_v39 }
 0x38f   :  { %v3083_v42 = vpop.eup %3082 }
 0x390   :  { %v523_v44 = vmul.f32 %v3083_v42, %v3071_v11 }
 0x392   :  { %2871 = vmatmul.msk.f32.gmra.mxu2 %vm30_vm0, %v523_v44 }
 0x39a   :  { %2896 = vmatmul.msk.f32.vlgmr.msra.gmra.mxu2 %vm386_vm7, %v602_v46 }
 0x3a2   :  { %2897 = vmatmul.msk.f32.gmra.mxu2 %vm386_vm7, %v605_v49 }
 0x3aa   :  { %2898 = vmatmul.msk.f32.gmra.mxu2 %vm386_vm7, %v608_v50 }
 0x3b2   :  { %2899 = vmatmul.msk.f32.gmra.mxu2 %vm386_vm7, %v611_v52 }
 0x3ba   :  { %2900 = vmatmul.msk.f32.gmra.mxu2 %vm386_vm7, %v614_v56 }
 0x3c2   :  { %2901 = vmatmul.msk.f32.gmra.mxu2 %vm386_vm7, %v617_v59 }
 0x3ed   :  { %v559_v61 = vpop.f32.mrf.mxu2 }
 0x3ee   :  { %2914 = vmatmul.msk.f32.vlgmr.msrb.gmra.mxu1 %vm386_vm7, %v559_v61 }
 0x3f5   :  { %v562_v62 = vpop.f32.mrf.mxu2 }
 0x3f6   :  { %2915 = vmatmul.msk.f32.gmra.mxu1 %vm386_vm7, %v562_v62 }
 0x3fd   :  { %v565_v63 = vpop.f32.mrf.mxu2 }
 0x3fe   :  { %2916 = vmatmul.msk.f32.gmra.mxu1 %vm386_vm7, %v565_v63 }
 0x405   :  { %v568_v0 = vpop.f32.mrf.mxu2 }
 0x406   :  { %2917 = vmatmul.msk.f32.gmra.mxu1 %vm386_vm7, %v568_v0 }
 0x40d   :  { %v571_v1 = vpop.f32.mrf.mxu2 }
 0x40e   :  { %2918 = vmatmul.msk.f32.gmra.mxu1 %vm386_vm7, %v571_v1  ;;  %v890_v1 = vld [vmem:[%s4575_s1 + $0x330] sm:$0xff] }
 0x40f   :  { %923 = vmatpush.msrb.mxu0 %v890_v1 }
 0x415   :  { %v574_v3 = vpop.f32.mrf.mxu2 }
 0x416   :  { %2919 = vmatmul.msk.f32.gmra.mxu1 %vm386_vm7, %v574_v3 }
 0x41d   :  { %v752_v5 = vpop.f32.mrf.mxu2 }
 0x41e   :  { %v753_v4 = vadd.f32 %v752_v5, %v3635_v47 }
 0x420   :  { %v770_v6 = vsel %vm30_vm0, %v753_v4, -inf }
 0x421   :  { %771 = vmax.xlane.f32.xlu0 %v770_v6 }
 0x425   :  { %v755_v53 = vpop.f32.mrf.mxu2 }
 0x426   :  { %v756_v7 = vadd.f32 %v755_v53, %v3642_v2 }
 0x428   :  { %v773_v37 = vsel %vm30_vm0, %v756_v7, -inf }
 0x429   :  { %774 = vmax.xlane.f32.xlu1 %v773_v37 }
 0x42d   :  { %v758_v43 = vpop.f32.mrf.mxu2 }
 0x42e   :  { %v759_v55 = vadd.f32 %v758_v43, %v3649_v8 }
 0x430   :  { %v776_v9 = vsel %vm30_vm0, %v759_v55, -inf }
 0x431   :  { %777 = vmax.xlane.f32.xlu2 %v776_v9 }
 0x435   :  { %v761_v10 = vpop.f32.mrf.mxu2 }
 0x436   :  { %v762_v11 = vadd.f32 %v761_v10, %v3656_v13 }
 0x438   :  { %v779_v47 = vsel %vm30_vm0, %v762_v11, -inf }
 0x439   :  { %780 = vmax.xlane.f32.xlu0 %v779_v47 }
 0x43d   :  { %v764_v14 = vpop.f32.mrf.mxu2 }
 0x43e   :  { %v765_v16 = vadd.f32 %v764_v14, %v3663_v18 }
 0x440   :  { %v782_v2 = vsel %vm30_vm0, %v765_v16, -inf }
 0x441   :  { %783 = vmax.xlane.f32.xlu1 %v782_v2 }
 0x445   :  { %v767_v17 = vpop.f32.mrf.mxu2 }
 0x446   :  { %v768_v19 = vadd.f32 %v767_v17, %v3670_v23 }
 0x448   :  { %v785_v8 = vsel %vm30_vm0, %v768_v19, -inf }
 0x449   :  { %786 = vmax.xlane.f32.xlu2 %v785_v8 }
 0x46b   :  { %v979_v8 = vpop.f32.mrf.mxu1 }
 0x494   :  { %v772_v21 = vpop.xlane.xlu0 %771 }
 0x495   :  { %v788_v22 = vsub.f32 %v753_v4, %v772_v21  ;;  %v982_v21 = vpop.f32.mrf.mxu1 }
 0x497   :  { %v794_v24 = vmul.f32 1.442695, %v788_v22 }
 0x499   :  { %3084 = vpow2.f32 %v794_v24 }
 0x49c   :  { %v775_v13 = vpop.xlane.xlu1 %774 }
 0x49d   :  { %v789_v27 = vsub.f32 %v756_v7, %v775_v13  ;;  %v1003_v13 = vld [vmem:[%s4575_s1 + $0x340] ss:$0 sm:$0xff] }
 0x49f   :  { %v3085_v28 = vpop.eup %3084  ;;  %v796_v29 = vmul.f32 1.442695, %v789_v27 }
 0x4a0   :  { %v806_v30 = vsel %vm30_vm0, %v3085_v28, 0.0 }
 0x4a1   :  { %3086 = vpow2.f32 %v796_v29  ;;  %807 = vadd.xlane.f32.xlu0 %v806_v30 }
 0x4a4   :  { %v778_v18 = vpop.xlane.xlu2 %777 }
 0x4a5   :  { %v790_v31 = vsub.f32 %v759_v55, %v778_v18 }
 0x4a7   :  { %v3087_v33 = vpop.eup %3086  ;;  %v798_v34 = vmul.f32 1.442695, %v790_v31 }
 0x4a8   :  { %v809_v23 = vsel %vm30_vm0, %v3087_v33, 0.0 }
 0x4a9   :  { %3088 = vpow2.f32 %v798_v34  ;;  %810 = vadd.xlane.f32.xlu1 %v809_v23  ;;  %v985_v34 = vpop.f32.mrf.mxu1 }
 0x4ac   :  { %v781_v35 = vpop.xlane.xlu0 %780 }
 0x4ad   :  { %v791_v36 = vsub.f32 %v762_v11, %v781_v35  ;;  %v889_v11 = vld [vmem:[%s4575_s1 + $0x320] sm:$0xff] }
 0x4ae   :  { %924 = vmatpush.msrb.mxu0 %v889_v11 }
 0x4af   :  { %v3089_v39 = vpop.eup %3088  ;;  %v800_v38 = vmul.f32 1.442695, %v791_v36 }
 0x4b0   :  { %v812_v42 = vsel %vm30_vm0, %v3089_v39, 0.0 }
 0x4b1   :  { %3090 = vpow2.f32 %v800_v38  ;;  %813 = vadd.xlane.f32.xlu2 %v812_v42 }
 0x4b4   :  { %v784_v44 = vpop.xlane.xlu1 %783 }
 0x4b5   :  { %v792_v12 = vsub.f32 %v765_v16, %v784_v44 }
 0x4b7   :  { %v3091_v45 = vpop.eup %3090  ;;  %v802_v46 = vmul.f32 1.442695, %v792_v12  ;;  %v988_v12 = vpop.f32.mrf.mxu1 }
 0x4b8   :  { %v815_v48 = vsel %vm30_vm0, %v3091_v45, 0.0 }
 0x4b9   :  { %3092 = vpow2.f32 %v802_v46  ;;  %816 = vadd.xlane.f32.xlu0 %v815_v48 }
 0x4bc   :  { %v787_v49 = vpop.xlane.xlu2 %786 }
 0x4bd   :  { %v793_v25 = vsub.f32 %v768_v19, %v787_v49 }
 0x4bf   :  { %v3093_v50 = vpop.eup %3092  ;;  %v804_v51 = vmul.f32 1.442695, %v793_v25 }
 0x4c0   :  { %v818_v52 = vsel %vm30_vm0, %v3093_v50, 0.0 }
 0x4c1   :  { %3094 = vpow2.f32 %v804_v51  ;;  %819 = vadd.xlane.f32.xlu1 %v818_v52 }
 0x4c7   :  { %v3095_v54 = vpop.eup %3094 }
 0x4c8   :  { %v821_v56 = vsel %vm30_vm0, %v3095_v54, 0.0 }
 0x4c9   :  { %822 = vadd.xlane.f32.xlu2 %v821_v56 }
 0x514   :  { %v808_v58 = vpop.xlane.xlu0 %807 }
 0x515   :  { %3096 = vrcp.f32 %v808_v58 }
 0x51b   :  { %v3097_v59 = vpop.eup %3096 }
 0x51c   :  { %v830_v60 = vmul.f32 %v3097_v59, %v3085_v28  ;;  %v811_v61 = vpop.xlane.xlu1 %810 }
 0x51d   :  { %3098 = vrcp.f32 %v811_v61 }
 0x51e   :  { %2902 = vmatmul.msk.f32.vlgmr.msrb.gmra.mxu3 %vm30_vm0, %v830_v60 }
 0x523   :  { %v3099_v62 = vpop.eup %3098 }
 0x524   :  { %v814_v63 = vpop.xlane.xlu2 %813  ;;  %v831_v0 = vmul.f32 %v3099_v62, %v3087_v33 }
 0x525   :  { %3100 = vrcp.f32 %v814_v63 }
 0x526   :  { %2903 = vmatmul.msk.f32.gmra.mxu3 %vm30_vm0, %v831_v0 }
 0x52b   :  { %v3101_v3 = vpop.eup %3100 }
 0x52c   :  { %v817_v5 = vpop.xlane.xlu0 %816  ;;  %v832_v4 = vmul.f32 %v3101_v3, %v3089_v39 }
 0x52d   :  { %3102 = vrcp.f32 %v817_v5 }
 0x52e   :  { %2904 = vmatmul.msk.f32.gmra.mxu3 %vm30_vm0, %v832_v4 }
 0x533   :  { %v3103_v6 = vpop.eup %3102 }
 0x534   :  { %v820_v53 = vpop.xlane.xlu1 %819  ;;  %v833_v7 = vmul.f32 %v3103_v6, %v3091_v45 }
 0x535   :  { %3104 = vrcp.f32 %v820_v53 }
 0x536   :  { %2905 = vmatmul.msk.f32.gmra.mxu3 %vm30_vm0, %v833_v7  ;;  %v1163_v7 = vld [vmem:[%s4575_s1 + $0x380] sm:$0xff] }
 0x537   :  { %1195 = vmatpush.msrb.mxu2 %v1163_v7 }
 0x53b   :  { %v3105_v37 = vpop.eup %3104 }
 0x53c   :  { %v823_v43 = vpop.xlane.xlu2 %822  ;;  %v834_v55 = vmul.f32 %v3105_v37, %v3093_v50  ;;  %v1161_v37 = vld [vmem:[%s4575_s1 + $0x360] sm:$0xff] }
 0x53d   :  { %3106 = vrcp.f32 %v823_v43  ;;  %v1160_v43 = vld [vmem:[%s4575_s1 + $0x350] sm:$0xff] }
 0x53e   :  { %2906 = vmatmul.msk.f32.gmra.mxu3 %vm30_vm0, %v834_v55 }
 0x543   :  { %v3107_v9 = vpop.eup %3106 }
 0x544   :  { %v835_v10 = vmul.f32 %v3107_v9, %v3095_v54 }
 0x546   :  { %2907 = vmatmul.msk.f32.gmra.mxu3 %vm30_vm0, %v835_v10 }
 0x5a1   :  { %v871_v47 = vpop.f32.mrf.mxu3 }
 0x5a2   :  { %2908 = vmatmul.msk.f32.vlgmr.msrb.gmra.mxu0 %vm386_vm7, %v871_v47 }
 0x5a9   :  { %v874_v14 = vpop.f32.mrf.mxu3 }
 0x5aa   :  { %2909 = vmatmul.msk.f32.gmra.mxu0 %vm386_vm7, %v874_v14 }
 0x5b1   :  { %v877_v16 = vpop.f32.mrf.mxu3 }
 0x5b2   :  { %2910 = vmatmul.msk.f32.gmra.mxu0 %vm386_vm7, %v877_v16 }
 0x5b9   :  { %v880_v2 = vpop.f32.mrf.mxu3 }
 0x5ba   :  { %2911 = vmatmul.msk.f32.gmra.mxu0 %vm386_vm7, %v880_v2 }
 0x5c1   :  { %v883_v17 = vpop.f32.mrf.mxu3 }
 0x5c2   :  { %2912 = vmatmul.msk.f32.gmra.mxu0 %vm386_vm7, %v883_v17 }
 0x5c9   :  { %v886_v19 = vpop.f32.mrf.mxu3 }
 0x5ca   :  { %2913 = vmatmul.msk.f32.gmra.mxu0 %vm386_vm7, %v886_v19 }
 0x61f   :  { %v926_v22 = vpop.f32.mrf.mxu0 }
 0x620   :  { %v980_v24 = vadd.f32 %v979_v8, %v926_v22 }
 0x622   :  { %v997_v27 = vadd.f32 %v980_v24, %v3357_v40 }
 0x624   :  { %v3750_v28 = vadd.f32 %v1003_v13, %v997_v27 }
 0x626   :  { %v1010_v29 = vsel %vm90_vm1, %v3750_v28, 0.0  ;;  %v1034_v30 = vmul.f32 %v3750_v28, %v3750_v28 }
 0x627   :  { %1011 = vadd.xlane.f32.xlu0 %v1010_v29  ;;  %v929_v18 = vpop.f32.mrf.mxu0 }
 0x628   :  { %v983_v31 = vadd.f32 %v982_v21, %v929_v18  ;;  %v1040_v33 = vsel %vm90_vm1, %v1034_v30, 0.0 }
 0x629   :  { %1041 = vadd.xlane.f32.xlu1 %v1040_v33 }
 0x62a   :  { %v998_v23 = vadd.f32 %v983_v31, %v3314_v15 }
 0x62c   :  { %v3758_v35 = vadd.f32 %v1003_v13, %v998_v23 }
 0x62e   :  { %v1013_v40 = vsel %vm90_vm1, %v3758_v35, 0.0  ;;  %v1035_v36 = vmul.f32 %v3758_v35, %v3758_v35 }
 0x62f   :  { %1014 = vadd.xlane.f32.xlu2 %v1013_v40  ;;  %v932_v39 = vpop.f32.mrf.mxu0 }
 0x630   :  { %v986_v38 = vadd.f32 %v985_v34, %v932_v39  ;;  %v1043_v42 = vsel %vm90_vm1, %v1035_v36, 0.0 }
 0x631   :  { %1044 = vadd.xlane.f32.xlu0 %v1043_v42 }
 0x632   :  { %v999_v44 = vadd.f32 %v986_v38, %v3323_v20  ;;  %v991_v20 = vpop.f32.mrf.mxu1 }
 0x634   :  { %v3766_v45 = vadd.f32 %v1003_v13, %v999_v44 }
 0x636   :  { %v1016_v15 = vsel %vm90_vm1, %v3766_v45, 0.0  ;;  %v1036_v46 = vmul.f32 %v3766_v45, %v3766_v45 }
 0x637   :  { %1017 = vadd.xlane.f32.xlu1 %v1016_v15  ;;  %v935_v48 = vpop.f32.mrf.mxu0 }
 0x638   :  { %v989_v49 = vadd.f32 %v988_v12, %v935_v48  ;;  %v1046_v25 = vsel %vm90_vm1, %v1036_v46, 0.0 }
 0x639   :  { %1047 = vadd.xlane.f32.xlu2 %v1046_v25 }
 0x63a   :  { %v1000_v50 = vadd.f32 %v989_v49, %v3333_v26  ;;  %v994_v63 = vpop.f32.mrf.mxu1 }
 0x63c   :  { %v3774_v51 = vadd.f32 %v1003_v13, %v1000_v50 }
 0x63e   :  { %v1019_v52 = vsel %vm90_vm1, %v3774_v51, 0.0  ;;  %v1037_v54 = vmul.f32 %v3774_v51, %v3774_v51 }
 0x63f   :  { %1020 = vadd.xlane.f32.xlu0 %v1019_v52  ;;  %v938_v56 = vpop.f32.mrf.mxu0 }
 0x640   :  { %v992_v58 = vadd.f32 %v991_v20, %v938_v56  ;;  %v1049_v59 = vsel %vm90_vm1, %v1037_v54, 0.0 }
 0x641   :  { %1050 = vadd.xlane.f32.xlu1 %v1049_v59 }
 0x642   :  { %v1001_v60 = vadd.f32 %v992_v58, %v3343_v32 }
 0x644   :  { %v3782_v61 = vadd.f32 %v1003_v13, %v1001_v60 }
 0x646   :  { %v1022_v26 = vsel %vm90_vm1, %v3782_v61, 0.0  ;;  %v1038_v62 = vmul.f32 %v3782_v61, %v3782_v61 }
 0x647   :  { %1023 = vadd.xlane.f32.xlu2 %v1022_v26  ;;  %v941_v0 = vpop.f32.mrf.mxu0 }
 0x648   :  { %v995_v1 = vadd.f32 %v994_v63, %v941_v0  ;;  %v1052_v3 = vsel %vm90_vm1, %v1038_v62, 0.0 }
 0x649   :  { %1053 = vadd.xlane.f32.xlu0 %v1052_v3 }
 0x64a   :  { %v1002_v5 = vadd.f32 %v995_v1, %v3359_v41  ;;  %v1162_v41 = vld [vmem:[%s4575_s1 + $0x370] sm:$0xff] }
 0x64b   :  { %1196 = vmatpush.msrb.mxu2 %v1162_v41 }
 0x64c   :  { %v3790_v4 = vadd.f32 %v1003_v13, %v1002_v5 }
 0x64d   :  { %1197 = vmatpush.msrb.mxu2 %v1161_v37 }
 0x64e   :  { %v1025_v32 = vsel %vm90_vm1, %v3790_v4, 0.0  ;;  %v1039_v6 = vmul.f32 %v3790_v4, %v3790_v4 }
 0x64f   :  { %1026 = vadd.xlane.f32.xlu1 %v1025_v32  ;;  %1198 = vmatpush.msrb.mxu2 %v1160_v43 }
 0x650   :  { %v1055_v53 = vsel %vm90_vm1, %v1039_v6, 0.0 }
 0x651   :  { %1056 = vadd.xlane.f32.xlu2 %v1055_v53 }
 0x69a   :  { %v1012_v55 = vpop.xlane.xlu0 %1011 }
 0x69b   :  { %v1028_v9 = vmul.f32 %v1012_v55, %v3377_v57 }
 0x69c   :  { %v1042_v10 = vpop.xlane.xlu1 %1041 }
 0x69d   :  { %v1064_v11 = vmul.f32 %v1028_v9, %v1028_v9  ;;  %v1058_v47 = vmul.f32 %v1042_v10, %v3377_v57  ;;  %v1082_v25 = vsub.f32 %v3750_v28, %v1028_v9 }
 0x69f   :  { %v1070_v14 = vsub.f32 %v1058_v47, %v1064_v11 }
 0x6a1   :  { %v1076_v16 = vmax.f32 %v1070_v14, 0.0 }
 0x6a2   :  { %v1015_v2 = vpop.xlane.xlu2 %1014 }
 0x6a3   :  { %v1088_v17 = vadd.f32 1e-12, %v1076_v16  ;;  %v1029_v19 = vmul.f32 %v1015_v2, %v3377_v57 }
 0x6a4   :  { %v1045_v8 = vpop.xlane.xlu0 %1044 }
 0x6a5   :  { %3108 = vrsqrt.f32 %v1088_v17  ;;  %v1065_v21 = vmul.f32 %v1029_v19, %v1029_v19  ;;  %v1059_v22 = vmul.f32 %v1045_v8, %v3377_v57  ;;  %vm1100_vm9 = vweird.f32 %v1088_v17 }
 0x6a6   :  { %v1083_v41 = vsub.f32 %v3758_v35, %v1029_v19 }
 0x6a7   :  { %v1071_v24 = vsub.f32 %v1059_v22, %v1065_v21 }
 0x6a9   :  { %v1077_v13 = vmax.f32 %v1071_v24, 0.0 }
 0x6aa   :  { %v1018_v27 = vpop.xlane.xlu1 %1017 }
 0x6ab   :  { %v3109_v29 = vpop.eup %3108  ;;  %v3814_v30 = vmul.f32 %v1018_v27, %v3377_v57  ;;  %v1089_v31 = vadd.f32 1e-12, %v1077_v13 }
 0x6ac   :  { %v1095_v18 = vmul.f32 %v3109_v29, %v1088_v17  ;;  %v1048_v33 = vpop.xlane.xlu2 %1047  ;;  %vm1101_vm8 = vweird.f32 %v3109_v29 }
 0x6ad   :  { %v1066_v34 = vmul.f32 %v3814_v30, %v3814_v30  ;;  %v1060_v23 = vmul.f32 %v1048_v33, %v3377_v57  ;;  %3110 = vrsqrt.f32 %v1089_v31  ;;  %vm1102_vm10 = vmor %vm1100_vm9, %vm1101_vm8  ;;  %vm1110_vm12 = vweird.f32 %v1089_v31 }
 0x6ae   :  { %v1096_v40 = vmul.f32 %v3109_v29, %v1095_v18  ;;  %v1084_v21 = vsub.f32 %v3766_v45, %v3814_v30 }
 0x6af   :  { %v1072_v36 = vsub.f32 %v1060_v23, %v1066_v34 }
 0x6b0   :  { %v1097_v39 = vmul.f32 0.5, %v1096_v40 }
 0x6b1   :  { %v1078_v38 = vmax.f32 %v1072_v36, 0.0 }
 0x6b2   :  { %v1098_v42 = vsub.f32 1.5, %v1097_v39  ;;  %v1021_v44 = vpop.xlane.xlu0 %1020 }
 0x6b3   :  { %v1090_v12 = vadd.f32 1e-12, %v1078_v38  ;;  %v3820_v15 = vmul.f32 %v1021_v44, %v3377_v57  ;;  %v3111_v46 = vpop.eup %3110 }
 0x6b4   :  { %v1099_v48 = vmul.f32 %v3109_v29, %v1098_v42  ;;  %v1051_v49 = vpop.xlane.xlu1 %1050  ;;  %v1105_v50 = vmul.f32 %v3111_v46, %v1089_v31  ;;  %vm1111_vm11 = vweird.f32 %v3111_v46 }
 0x6b5   :  { %3112 = vrsqrt.f32 %v1090_v12  ;;  %v1067_v20 = vmul.f32 %v3820_v15, %v3820_v15  ;;  %v1061_v54 = vmul.f32 %v1051_v49, %v3377_v57  ;;  %vm1112_vm13 = vmor %vm1110_vm12, %vm1111_vm11  ;;  %vm1120_vm15 = vweird.f32 %v1090_v12 }
 0x6b6   :  { %v1103_v52 = vsel %vm1102_vm10, %v3109_v29, %v1099_v48  ;;  %v1106_v56 = vmul.f32 %v3111_v46, %v1105_v50  ;;  %v1085_v38 = vsub.f32 %v3774_v51, %v3820_v15 }
 0x6b7   :  { %v1154_v58 = vmul.f32 %v1103_v52, %v1082_v25  ;;  %v1073_v59 = vsub.f32 %v1061_v54, %v1067_v20 }
 0x6b8   :  { %v1107_v60 = vmul.f32 0.5, %v1106_v56 }
 0x6b9   :  { %2920 = vmatmul.msk.f32.vlgmr.msrb.gmra.mxu2 %vm90_vm1, %v1154_v58  ;;  %v1079_v26 = vmax.f32 %v1073_v59, 0.0 }
 0x6ba   :  { %v1024_v62 = vpop.xlane.xlu2 %1023  ;;  %v1108_v0 = vsub.f32 1.5, %v1107_v60 }
 0x6bb   :  { %v3113_v63 = vpop.eup %3112  ;;  %v3828_v1 = vmul.f32 %v1024_v62, %v3377_v57  ;;  %v1091_v5 = vadd.f32 1e-12, %v1079_v26 }
 0x6bc   :  { %v1115_v3 = vmul.f32 %v3113_v63, %v1090_v12  ;;  %v1054_v32 = vpop.xlane.xlu0 %1053  ;;  %v1109_v7 = vmul.f32 %v3111_v46, %v1108_v0  ;;  %vm1121_vm14 = vweird.f32 %v3113_v63  ;;  %v1278_v0 = vld [vmem:[%s4575_s1 + $0x400] sm:$0xff] }
 0x6bd   :  { %v1068_v6 = vmul.f32 %v3828_v1, %v3828_v1  ;;  %v1062_v53 = vmul.f32 %v1054_v32, %v3377_v57  ;;  %3114 = vrsqrt.f32 %v1091_v5  ;;  %vm1122_vm2 = vmor %vm1120_vm15, %vm1121_vm14  ;;  %vm1130_vm4 = vweird.f32 %v1091_v5  ;;  %v1274_v32 = vld [vmem:[%s4575_s1 + $0x3c0] sm:$0xff] }
 0x6be   :  { %v1116_v37 = vmul.f32 %v3113_v63, %v1115_v3  ;;  %v1113_v55 = vsel %vm1112_vm13, %v3111_v46, %v1109_v7  ;;  %v1086_v50 = vsub.f32 %v3782_v61, %v3828_v1  ;;  %v1277_v1 = vld [vmem:[%s4575_s1 + $0x3f0] sm:$0xff]  ;;  %v1276_v3 = vld [vmem:[%s4575_s1 + $0x3e0] sm:$0xff]  ;;  %vm1280_vm13 = vcmask 523264  }
 0x6bf   :  { %v1074_v43 = vsub.f32 %v1062_v53, %v1068_v6  ;;  %v1155_v10 = vmul.f32 %v1113_v55, %v1083_v41  ;;  %v1273_v6 = vld [vmem:[%s4575_s1 + $0x3b0] sm:$0xff]  ;;  %v1272_v53 = vld [vmem:[%s4575_s1 + $0x3a0] sm:$0xff] }
 0x6c0   :  { %v1117_v9 = vmul.f32 0.5, %v1116_v37  ;;  %v1164_v7 = vld [vmem:[%s4575_s1 + $0x390] ss:$0 sm:$0xff] }
 0x6c1   :  { %v1080_v11 = vmax.f32 %v1074_v43, 0.0  ;;  %2921 = vmatmul.msk.f32.gmra.mxu2 %vm90_vm1, %v1155_v10 }
 0x6c2   :  { %v1118_v47 = vsub.f32 1.5, %v1117_v9  ;;  %v1027_v14 = vpop.xlane.xlu1 %1026 }
 0x6c3   :  { %v1092_v16 = vadd.f32 1e-12, %v1080_v11  ;;  %v1033_v2 = vmul.f32 %v1027_v14, %v3377_v57  ;;  %v3115_v17 = vpop.eup %3114 }
 0x6c4   :  { %v1057_v8 = vpop.xlane.xlu2 %1056  ;;  %v1119_v19 = vmul.f32 %v3113_v63, %v1118_v47  ;;  %v1125_v22 = vmul.f32 %v3115_v17, %v1091_v5  ;;  %vm1131_vm3 = vweird.f32 %v3115_v17  ;;  %v1275_v5 = vld [vmem:[%s4575_s1 + $0x3d0] sm:$0xff] }
 0x6c5   :  { %3116 = vrsqrt.f32 %v1092_v16  ;;  %v1069_v24 = vmul.f32 %v1033_v2, %v1033_v2  ;;  %v1063_v13 = vmul.f32 %v1057_v8, %v3377_v57  ;;  %vm1132_vm5 = vmor %vm1130_vm4, %vm1131_vm3  ;;  %vm1140_vm8 = vweird.f32 %v1092_v16 }
 0x6c6   :  { %v1123_v27 = vsel %vm1122_vm2, %v3113_v63, %v1119_v19  ;;  %v1126_v29 = vmul.f32 %v3115_v17, %v1125_v22  ;;  %v1087_v60 = vsub.f32 %v3790_v4, %v1033_v2  ;;  %v1279_v63 = vld [vmem:[%s4575_s1 + $0x410] sm:$0xff] }
 0x6c7   :  { %v1156_v18 = vmul.f32 %v1123_v27, %v1084_v21  ;;  %v1075_v31 = vsub.f32 %v1063_v13, %v1069_v24  ;;  %1307 = vmatpush.msra.mxu3 %v1279_v63 }
 0x6c8   :  { %v1127_v33 = vmul.f32 0.5, %v1126_v29 }
 0x6c9   :  { %v1081_v34 = vmax.f32 %v1075_v31, 0.0  ;;  %2922 = vmatmul.msk.f32.gmra.mxu2 %vm90_vm1, %v1156_v18  ;;  %1308 = vmatpush.msra.mxu3 %v1278_v0 }
 0x6ca   :  { %v1128_v40 = vsub.f32 1.5, %v1127_v33 }
 0x6cb   :  { %v3117_v23 = vpop.eup %3116  ;;  %v1093_v39 = vadd.f32 1e-12, %v1081_v34  ;;  %1309 = vmatpush.msra.mxu3 %v1277_v1 }
 0x6cc   :  { %v1135_v36 = vmul.f32 %v3117_v23, %v1092_v16  ;;  %v1129_v30 = vmul.f32 %v3115_v17, %v1128_v40  ;;  %vm1141_vm6 = vweird.f32 %v3117_v23 }
 0x6cd   :  { %3118 = vrsqrt.f32 %v1093_v39  ;;  %vm1142_vm9 = vmor %vm1140_vm8, %vm1141_vm6  ;;  %vm1150_vm11 = vweird.f32 %v1093_v39  ;;  %1310 = vmatpush.msra.mxu3 %v1276_v3 }
 0x6ce   :  { %v1136_v42 = vmul.f32 %v3117_v23, %v1135_v36  ;;  %v1133_v44 = vsel %vm1132_vm5, %v3115_v17, %v1129_v30 }
 0x6cf   :  { %v1157_v46 = vmul.f32 %v1133_v44, %v1085_v38  ;;  %1311 = vmatpush.msra.mxu3 %v1275_v5 }
 0x6d0   :  { %v1137_v12 = vmul.f32 0.5, %v1136_v42 }
 0x6d1   :  { %2923 = vmatmul.msk.f32.gmra.mxu2 %vm90_vm1, %v1157_v46  ;;  %1312 = vmatpush.msra.mxu3 %v1274_v32 }
 0x6d2   :  { %v1138_v48 = vsub.f32 1.5, %v1137_v12 }
 0x6d3   :  { %v3119_v49 = vpop.eup %3118  ;;  %1313 = vmatpush.msra.mxu3 %v1273_v6 }
 0x6d4   :  { %v1139_v25 = vmul.f32 %v3117_v23, %v1138_v48  ;;  %v1145_v20 = vmul.f32 %v3119_v49, %v1093_v39  ;;  %vm1151_vm10 = vweird.f32 %v3119_v49 }
 0x6d5   :  { %vm1152_vm12 = vmor %vm1150_vm11, %vm1151_vm10  ;;  %1314 = vmatpush.msra.mxu3 %v1272_v53 }
 0x6d6   :  { %v1143_v52 = vsel %vm1142_vm9, %v3117_v23, %v1139_v25  ;;  %v1146_v15 = vmul.f32 %v3119_v49, %v1145_v20 }
 0x6d7   :  { %v1158_v54 = vmul.f32 %v1143_v52, %v1086_v50 }
 0x6d8   :  { %v1147_v56 = vmul.f32 0.5, %v1146_v15 }
 0x6d9   :  { %2924 = vmatmul.msk.f32.gmra.mxu2 %vm90_vm1, %v1158_v54 }
 0x6da   :  { %v1148_v58 = vsub.f32 1.5, %v1147_v56 }
 0x6dc   :  { %v1149_v59 = vmul.f32 %v3119_v49, %v1148_v58 }
 0x6de   :  { %v1153_v26 = vsel %vm1152_vm12, %v3119_v49, %v1149_v59 }
 0x6df   :  { %v1159_v62 = vmul.f32 %v1153_v26, %v1087_v60 }
 0x6e1   :  { %2925 = vmatmul.msk.f32.gmra.mxu2 %vm90_vm1, %v1159_v62 }
 0x73c   :  { %v1200_v41 = vpop.f32.mrf.mxu2 }
 0x73d   :  { %v1201_v37 = vadd.f32 %v1200_v41, %v1164_v7 }
 0x73f   :  { %v1218_v43 = vmul.f32 %v1201_v37, %v1201_v37 }
 0x741   :  { %v1224_v55 = vmul.f32 %v1218_v43, %v1201_v37 }
 0x743   :  { %v1230_v9 = vmul.f32 0.044715, %v1224_v55 }
 0x744   :  { %v1203_v11 = vpop.f32.mrf.mxu2 }
 0x745   :  { %v1236_v10 = vadd.f32 %v1230_v9, %v1201_v37  ;;  %v1204_v47 = vadd.f32 %v1203_v11, %v1164_v7 }
 0x747   :  { %v1242_v14 = vmul.f32 0.7978846, %v1236_v10  ;;  %v1219_v16 = vmul.f32 %v1204_v47, %v1204_v47 }
 0x749   :  { %3120 = vtanh.f32 %v1242_v14  ;;  %v1225_v2 = vmul.f32 %v1219_v16, %v1204_v47 }
 0x74b   :  { %v1231_v17 = vmul.f32 0.044715, %v1225_v2  ;;  %v1340_v2 = vld [vmem:[%s4575_s1 + $0x420] ss:$0 sm:$0xff] }
 0x74c   :  { %v1206_v8 = vpop.f32.mrf.mxu2 }
 0x74d   :  { %v1207_v19 = vadd.f32 %v1206_v8, %v1164_v7  ;;  %v1237_v21 = vadd.f32 %v1231_v17, %v1204_v47 }
 0x74f   :  { %v3121_v22 = vpop.eup %3120  ;;  %v1220_v13 = vmul.f32 %v1207_v19, %v1207_v19  ;;  %v1243_v27 = vmul.f32 0.7978846, %v1237_v21 }
 0x750   :  { %v1254_v24 = vadd.f32 1.0, %v3121_v22 }
 0x751   :  { %v1226_v18 = vmul.f32 %v1220_v13, %v1207_v19  ;;  %3122 = vtanh.f32 %v1243_v27 }
 0x752   :  { %v1260_v29 = vmul.f32 0.5, %v1254_v24 }
 0x753   :  { %v1232_v33 = vmul.f32 0.044715, %v1226_v18 }
 0x754   :  { %v1266_v31 = vmul.f32 %v1260_v29, %v1201_v37  ;;  %v1209_v34 = vpop.f32.mrf.mxu2 }
 0x755   :  { %v1238_v23 = vadd.f32 %v1232_v33, %v1207_v19  ;;  %v1210_v40 = vadd.f32 %v1209_v34, %v1164_v7 }
 0x756   :  { %2926 = vmatmul.msk.f32.vlgmr.msra.gmra.mxu3 %vm1280_vm13, %v1266_v31 }
 0x757   :  { %v3123_v36 = vpop.eup %3122  ;;  %v1221_v39 = vmul.f32 %v1210_v40, %v1210_v40  ;;  %v1244_v30 = vmul.f32 0.7978846, %v1238_v23 }
 0x758   :  { %v1255_v38 = vadd.f32 1.0, %v3123_v36 }
 0x759   :  { %v1227_v42 = vmul.f32 %v1221_v39, %v1210_v40  ;;  %3124 = vtanh.f32 %v1244_v30 }
 0x75a   :  { %v1261_v44 = vmul.f32 0.5, %v1255_v38 }
 0x75b   :  { %v1233_v12 = vmul.f32 0.044715, %v1227_v42 }
 0x75c   :  { %v1212_v46 = vpop.f32.mrf.mxu2  ;;  %v1267_v48 = vmul.f32 %v1261_v44, %v1204_v47 }
 0x75d   :  { %v1239_v49 = vadd.f32 %v1233_v12, %v1210_v40  ;;  %v1213_v25 = vadd.f32 %v1212_v46, %v1164_v7 }
 0x75e   :  { %2927 = vmatmul.msk.f32.gmra.mxu3 %vm1280_vm13, %v1267_v48 }
 0x75f   :  { %v3125_v50 = vpop.eup %3124  ;;  %v1222_v20 = vmul.f32 %v1213_v25, %v1213_v25  ;;  %v1245_v52 = vmul.f32 0.7978846, %v1239_v49 }
 0x760   :  { %v1256_v15 = vadd.f32 1.0, %v3125_v50 }
 0x761   :  { %v1228_v54 = vmul.f32 %v1222_v20, %v1213_v25  ;;  %3126 = vtanh.f32 %v1245_v52 }
 0x762   :  { %v1262_v56 = vmul.f32 0.5, %v1256_v15 }
 0x763   :  { %v1234_v58 = vmul.f32 0.044715, %v1228_v54  ;;  %v1558_v54 = vld [vmem:[%s4575_s1 + $0x4b0] sm:$0xff] }
 0x764   :  { %v1215_v59 = vpop.f32.mrf.mxu2  ;;  %v1268_v60 = vmul.f32 %v1262_v56, %v1207_v19  ;;  %v1598_v56 = vld [vmem:[%s4575_s1 + $0x500] sm:$0xff]  ;;  %1572 = vmatpush.msra.mxu1 %v1558_v54 }
 0x765   :  { %v1240_v26 = vadd.f32 %v1234_v58, %v1213_v25  ;;  %v1216_v62 = vadd.f32 %v1215_v59, %v1164_v7  ;;  %v1557_v58 = vld [vmem:[%s4575_s1 + $0x4a0] sm:$0xff]  ;;  %1612 = vmatpush.msra.mxu2 %v1598_v56  ;;  %v1499_v59 = vld [vmem:[%s4575_s1 + $0x450] sm:$0xff] }
 0x766   :  { %2928 = vmatmul.msk.f32.gmra.mxu3 %vm1280_vm13, %v1268_v60  ;;  %v1597_v60 = vld [vmem:[%s4575_s1 + $0x4f0] sm:$0xff]  ;;  %1573 = vmatpush.msra.mxu1 %v1557_v58 }
 0x767   :  { %v3127_v63 = vpop.eup %3126  ;;  %v1246_v0 = vmul.f32 0.7978846, %v1240_v26  ;;  %v1223_v1 = vmul.f32 %v1216_v62, %v1216_v62  ;;  %1613 = vmatpush.msra.mxu2 %v1597_v60  ;;  %v1498_v26 = vld [vmem:[%s4575_s1 + $0x440] sm:$0xff] }
 0x768   :  { %v1257_v3 = vadd.f32 1.0, %v3127_v63  ;;  %v1596_v63 = vld [vmem:[%s4575_s1 + $0x4e0] sm:$0xff] }
 0x769   :  { %3128 = vtanh.f32 %v1246_v0  ;;  %v1229_v5 = vmul.f32 %v1223_v1, %v1216_v62  ;;  %1614 = vmatpush.msra.mxu2 %v1596_v63  ;;  %v1497_v0 = vld [vmem:[%s4575_s1 + $0x430] sm:$0xff]  ;;  %v1555_v1 = vld [vmem:[%s4575_s1 + $0x480] sm:$0xff] }
 0x76a   :  { %v1263_v32 = vmul.f32 0.5, %v1257_v3  ;;  %v1595_v3 = vld [vmem:[%s4575_s1 + $0x4d0] sm:$0xff] }
 0x76b   :  { %v1235_v6 = vmul.f32 0.044715, %v1229_v5  ;;  %1615 = vmatpush.msra.mxu2 %v1595_v3 }
 0x76c   :  { %v1269_v53 = vmul.f32 %v1263_v32, %v1210_v40 }
 0x76d   :  { %v1241_v41 = vadd.f32 %v1235_v6, %v1216_v62 }
 0x76e   :  { %2929 = vmatmul.msk.f32.gmra.mxu3 %vm1280_vm13, %v1269_v53 }
 0x76f   :  { %v3129_v37 = vpop.eup %3128  ;;  %v1247_v43 = vmul.f32 0.7978846, %v1241_v41 }
 0x770   :  { %v1258_v55 = vadd.f32 1.0, %v3129_v37 }
 0x771   :  { %3130 = vtanh.f32 %v1247_v43 }
 0x772   :  { %v1264_v9 = vmul.f32 0.5, %v1258_v55 }
 0x774   :  { %v1270_v7 = vmul.f32 %v1264_v9, %v1213_v25 }
 0x776   :  { %2930 = vmatmul.msk.f32.gmra.mxu3 %vm1280_vm13, %v1270_v7 }
 0x777   :  { %v3131_v10 = vpop.eup %3130 }
 0x778   :  { %v1259_v11 = vadd.f32 1.0, %v3131_v10 }
 0x77a   :  { %v1265_v47 = vmul.f32 0.5, %v1259_v11 }
 0x77c   :  { %v1271_v14 = vmul.f32 %v1265_v47, %v1216_v62  ;;  %v1556_v62 = vld [vmem:[%s4575_s1 + $0x490] sm:$0xff] }
 0x77d   :  { %1574 = vmatpush.msra.mxu1 %v1556_v62 }
 0x77e   :  { %2931 = vmatmul.msk.f32.gmra.mxu3 %vm1280_vm13, %v1271_v14 }
 0x77f   :  { %1575 = vmatpush.msra.mxu1 %v1555_v1 }
 0x7d9   :  { %v1316_v16 = vpop.f32.mrf.mxu3 }
 0x7da   :  { %v1334_v17 = vadd.f32 %v1316_v16, %v3750_v28 }
 0x7dc   :  { %v3885_v8 = vadd.f32 %v1340_v2, %v1334_v17 }
 0x7de   :  { %v1347_v19 = vsel %vm90_vm1, %v3885_v8, 0.0  ;;  %v1371_v21 = vmul.f32 %v3885_v8, %v3885_v8 }
 0x7df   :  { %1348 = vadd.xlane.f32.xlu0 %v1347_v19 }
 0x7e0   :  { %v1377_v22 = vsel %vm90_vm1, %v1371_v21, 0.0 }
 0x7e1   :  { %1378 = vadd.xlane.f32.xlu1 %v1377_v22  ;;  %v1319_v24 = vpop.f32.mrf.mxu3 }
 0x7e2   :  { %v1335_v13 = vadd.f32 %v1319_v24, %v3758_v35 }
 0x7e4   :  { %v3893_v27 = vadd.f32 %v1340_v2, %v1335_v13 }
 0x7e6   :  { %v1350_v28 = vsel %vm90_vm1, %v3893_v27, 0.0  ;;  %v1372_v29 = vmul.f32 %v3893_v27, %v3893_v27 }
 0x7e7   :  { %1351 = vadd.xlane.f32.xlu2 %v1350_v28 }
 0x7e8   :  { %v1380_v18 = vsel %vm90_vm1, %v1372_v29, 0.0 }
 0x7e9   :  { %1381 = vadd.xlane.f32.xlu0 %v1380_v18  ;;  %v1322_v31 = vpop.f32.mrf.mxu3 }
 0x7ea   :  { %v1336_v33 = vadd.f32 %v1322_v31, %v3766_v45 }
 0x7ec   :  { %v3901_v34 = vadd.f32 %v1340_v2, %v1336_v33 }
 0x7ee   :  { %v1353_v35 = vsel %vm90_vm1, %v3901_v34, 0.0  ;;  %v1373_v23 = vmul.f32 %v3901_v34, %v3901_v34 }
 0x7ef   :  { %1354 = vadd.xlane.f32.xlu1 %v1353_v35 }
 0x7f0   :  { %v1383_v40 = vsel %vm90_vm1, %v1373_v23, 0.0 }
 0x7f1   :  { %1384 = vadd.xlane.f32.xlu2 %v1383_v40  ;;  %v1325_v36 = vpop.f32.mrf.mxu3 }
 0x7f2   :  { %v1337_v39 = vadd.f32 %v1325_v36, %v3774_v51 }
 0x7f4   :  { %v3909_v30 = vadd.f32 %v1340_v2, %v1337_v39 }
 0x7f6   :  { %v1356_v45 = vsel %vm90_vm1, %v3909_v30, 0.0  ;;  %v1374_v38 = vmul.f32 %v3909_v30, %v3909_v30 }
 0x7f7   :  { %1357 = vadd.xlane.f32.xlu0 %v1356_v45 }
 0x7f8   :  { %v1386_v42 = vsel %vm90_vm1, %v1374_v38, 0.0 }
 0x7f9   :  { %1387 = vadd.xlane.f32.xlu1 %v1386_v42  ;;  %v1328_v44 = vpop.f32.mrf.mxu3 }
 0x7fa   :  { %v1338_v12 = vadd.f32 %v1328_v44, %v3782_v61 }
 0x7fc   :  { %v3917_v46 = vadd.f32 %v1340_v2, %v1338_v12 }
 0x7fe   :  { %v1359_v51 = vsel %vm90_vm1, %v3917_v46, 0.0  ;;  %v1375_v48 = vmul.f32 %v3917_v46, %v3917_v46 }
 0x7ff   :  { %1360 = vadd.xlane.f32.xlu2 %v1359_v51 }
 0x800   :  { %v1389_v49 = vsel %vm90_vm1, %v1375_v48, 0.0 }
 0x801   :  { %1390 = vadd.xlane.f32.xlu0 %v1389_v49  ;;  %v1331_v25 = vpop.f32.mrf.mxu3 }
 0x802   :  { %v1339_v50 = vadd.f32 %v1331_v25, %v3790_v4  ;;  %v1500_v4 = vld [vmem:[%s4575_s1 + $0x460] sm:$0xff] }
 0x803   :  { %1532 = vmatpush.msra.mxu0 %v1500_v4 }
 0x804   :  { %v3925_v20 = vadd.f32 %v1340_v2, %v1339_v50 }
 0x805   :  { %1533 = vmatpush.msra.mxu0 %v1499_v59 }
 0x806   :  { %v1362_v61 = vsel %vm90_vm1, %v3925_v20, 0.0  ;;  %v1376_v52 = vmul.f32 %v3925_v20, %v3925_v20 }
 0x807   :  { %1363 = vadd.xlane.f32.xlu1 %v1362_v61  ;;  %1534 = vmatpush.msra.mxu0 %v1498_v26 }
 0x808   :  { %v1392_v15 = vsel %vm90_vm1, %v1376_v52, 0.0 }
 0x809   :  { %1393 = vadd.xlane.f32.xlu2 %v1392_v15  ;;  %1535 = vmatpush.msra.mxu0 %v1497_v0 }
 0x852   :  { %v1349_v5 = vpop.xlane.xlu0 %1348 }
 0x853   :  { %v1365_v32 = vmul.f32 %v1349_v5, %v3377_v57 }
 0x854   :  { %v1379_v6 = vpop.xlane.xlu1 %1378 }
 0x855   :  { %v1401_v53 = vmul.f32 %v1365_v32, %v1365_v32  ;;  %v1395_v41 = vmul.f32 %v1379_v6, %v3377_v57  ;;  %v1419_v45 = vsub.f32 %v3885_v8, %v1365_v32 }
 0x857   :  { %v1407_v37 = vsub.f32 %v1395_v41, %v1401_v53 }
 0x859   :  { %v1413_v43 = vmax.f32 %v1407_v37, 0.0 }
 0x85a   :  { %v1352_v9 = vpop.xlane.xlu2 %1351 }
 0x85b   :  { %v1425_v55 = vadd.f32 1e-12, %v1413_v43  ;;  %v1366_v7 = vmul.f32 %v1352_v9, %v3377_v57  ;;  %v1830_v9 = vld [vmem:[%s4575_s1 + $0x570] sm:$0xff] }
 0x85c   :  { %v1382_v10 = vpop.xlane.xlu0 %1381  ;;  %1844 = vmatpush.msrb.mxu1 %v1830_v9  ;;  %v1559_v9 = vld [vmem:[%s4575_s1 + $0x4c0] ss:$0 sm:$0xff] }
 0x85d   :  { %3132 = vrsqrt.f32 %v1425_v55  ;;  %v1402_v11 = vmul.f32 %v1366_v7, %v1366_v7  ;;  %v1396_v47 = vmul.f32 %v1382_v10, %v3377_v57  ;;  %vm1437_vm15 = vweird.f32 %v1425_v55  ;;  %v1829_v10 = vld [vmem:[%s4575_s1 + $0x560] sm:$0xff] }
 0x85e   :  { %v1420_v26 = vsub.f32 %v3893_v27, %v1366_v7  ;;  %v1870_v7 = vld [vmem:[%s4575_s1 + $0x5c0] sm:$0xff]  ;;  %1845 = vmatpush.msrb.mxu1 %v1829_v10 }
 0x85f   :  { %v1408_v14 = vsub.f32 %v1396_v47, %v1402_v11  ;;  %1884 = vmatpush.msrb.mxu2 %v1870_v7 }
 0x861   :  { %v1414_v16 = vmax.f32 %v1408_v14, 0.0 }
 0x862   :  { %v1355_v17 = vpop.xlane.xlu1 %1354 }
 0x863   :  { %v3133_v2 = vpop.eup %3132  ;;  %v1426_v21 = vadd.f32 1e-12, %v1414_v16  ;;  %v3973_v22 = vmul.f32 %v1355_v17, %v3377_v57  ;;  %v1869_v16 = vld [vmem:[%s4575_s1 + $0x5b0] sm:$0xff] }
 0x864   :  { %v1432_v19 = vmul.f32 %v3133_v2, %v1425_v55  ;;  %v1385_v24 = vpop.xlane.xlu2 %1384  ;;  %vm1438_vm14 = vweird.f32 %v3133_v2  ;;  %1885 = vmatpush.msrb.mxu2 %v1869_v16 }
 0x865   :  { %3134 = vrsqrt.f32 %v1426_v21  ;;  %v1403_v28 = vmul.f32 %v3973_v22, %v3973_v22  ;;  %v1397_v29 = vmul.f32 %v1385_v24, %v3377_v57  ;;  %vm1439_vm2 = vmor %vm1437_vm15, %vm1438_vm14  ;;  %vm1447_vm4 = vweird.f32 %v1426_v21  ;;  %v1868_v24 = vld [vmem:[%s4575_s1 + $0x5a0] sm:$0xff] }
 0x866   :  { %v1433_v13 = vmul.f32 %v3133_v2, %v1432_v19  ;;  %1886 = vmatpush.msrb.mxu2 %v1868_v24 }
 0x867   :  { %v1409_v31 = vsub.f32 %v1397_v29, %v1403_v28 }
 0x868   :  { %v1434_v18 = vmul.f32 0.5, %v1433_v13  ;;  %v1421_v13 = vsub.f32 %v3901_v34, %v3973_v22  ;;  %v1867_v22 = vld [vmem:[%s4575_s1 + $0x590] sm:$0xff] }
 0x869   :  { %v1415_v35 = vmax.f32 %v1409_v31, 0.0  ;;  %1887 = vmatpush.msrb.mxu2 %v1867_v22 }
 0x86a   :  { %v1435_v33 = vsub.f32 1.5, %v1434_v18  ;;  %v1358_v23 = vpop.xlane.xlu0 %1357 }
 0x86b   :  { %v3135_v40 = vpop.eup %3134  ;;  %v3979_v39 = vmul.f32 %v1358_v23, %v3377_v57  ;;  %v1427_v42 = vadd.f32 1e-12, %v1415_v35  ;;  %v1827_v35 = vld [vmem:[%s4575_s1 + $0x540] sm:$0xff] }
 0x86c   :  { %v1436_v36 = vmul.f32 %v3133_v2, %v1435_v33  ;;  %v1442_v38 = vmul.f32 %v3135_v40, %v1426_v21  ;;  %v1388_v44 = vpop.xlane.xlu1 %1387  ;;  %vm1448_vm3 = vweird.f32 %v3135_v40  ;;  %v1828_v21 = vld [vmem:[%s4575_s1 + $0x550] sm:$0xff] }
 0x86d   :  { %v1404_v51 = vmul.f32 %v3979_v39, %v3979_v39  ;;  %v1398_v48 = vmul.f32 %v1388_v44, %v3377_v57  ;;  %3136 = vrsqrt.f32 %v1427_v42  ;;  %vm1449_vm5 = vmor %vm1447_vm4, %vm1448_vm3  ;;  %vm1457_vm8 = vweird.f32 %v1427_v42  ;;  %1846 = vmatpush.msrb.mxu1 %v1828_v21 }
 0x86e   :  { %v1440_v12 = vsel %vm1439_vm2, %v3133_v2, %v1436_v36  ;;  %v1443_v25 = vmul.f32 %v3135_v40, %v1442_v38 }
 0x86f   :  { %v3985_v49 = vmul.f32 %v1440_v12, %v1419_v45  ;;  %v1410_v50 = vsub.f32 %v1398_v48, %v1404_v51  ;;  %1847 = vmatpush.msrb.mxu1 %v1827_v35  ;;  %v1501_v35 = vld [vmem:[%s4575_s1 + $0x470] ss:$0 sm:$0xff] }
 0x870   :  { %v1444_v61 = vmul.f32 0.5, %v1443_v25 }
 0x871   :  { %2932 = vmatmul.msk.f32.vlgmr.msra.gmra.mxu0 %vm90_vm1, %v3985_v49  ;;  %2938 = vmatmul.msk.f32.vlgmr.msra.gmra.mxu1 %vm90_vm1, %v3985_v49  ;;  %v1416_v52 = vmax.f32 %v1410_v50, 0.0 }
 0x872   :  { %2944 = vmatmul.msk.f32.vlgmr.msra.gmra.mxu2 %vm90_vm1, %v3985_v49  ;;  %v1445_v15 = vsub.f32 1.5, %v1444_v61  ;;  %v1361_v54 = vpop.xlane.xlu2 %1360 }
 0x873   :  { %v3993_v4 = vadd.f32 1e-12, %v1416_v52  ;;  %v3996_v56 = vmul.f32 %v1361_v54, %v3377_v57  ;;  %v3137_v58 = vpop.eup %3136 }
 0x874   :  { %v1446_v59 = vmul.f32 %v3135_v40, %v1445_v15  ;;  %v1391_v60 = vpop.xlane.xlu0 %1390  ;;  %v1452_v62 = vmul.f32 %v3137_v58, %v1427_v42  ;;  %vm1458_vm6 = vweird.f32 %v3137_v58  ;;  %v1422_v42 = vsub.f32 %v3909_v30, %v3979_v39 }
 0x875   :  { %3138 = vrsqrt.f32 %v3993_v4  ;;  %v1405_v0 = vmul.f32 %v3996_v56, %v3996_v56  ;;  %v1399_v1 = vmul.f32 %v1391_v60, %v3377_v57  ;;  %vm1459_vm9 = vmor %vm1457_vm8, %vm1458_vm6  ;;  %vm1467_vm11 = vweird.f32 %v3993_v4 }
 0x876   :  { %v1450_v63 = vsel %vm1449_vm5, %v3135_v40, %v1446_v59  ;;  %v1453_v5 = vmul.f32 %v3137_v58, %v1452_v62  ;;  %v1423_v15 = vsub.f32 %v3917_v46, %v3996_v56 }
 0x877   :  { %v4003_v3 = vmul.f32 %v1450_v63, %v1420_v26  ;;  %v1411_v32 = vsub.f32 %v1399_v1, %v1405_v0 }
 0x878   :  { %v1454_v6 = vmul.f32 0.5, %v1453_v5 }
 0x879   :  { %2933 = vmatmul.msk.f32.gmra.mxu0 %vm90_vm1, %v4003_v3  ;;  %2939 = vmatmul.msk.f32.gmra.mxu1 %vm90_vm1, %v4003_v3  ;;  %v1417_v53 = vmax.f32 %v1411_v32, 0.0 }
 0x87a   :  { %2945 = vmatmul.msk.f32.gmra.mxu2 %vm90_vm1, %v4003_v3  ;;  %v1364_v41 = vpop.xlane.xlu1 %1363  ;;  %v1455_v43 = vsub.f32 1.5, %v1454_v6 }
 0x87b   :  { %v3139_v37 = vpop.eup %3138  ;;  %v4012_v55 = vmul.f32 %v1364_v41, %v3377_v57  ;;  %v1429_v47 = vadd.f32 1e-12, %v1417_v53 }
 0x87c   :  { %v1462_v11 = vmul.f32 %v3139_v37, %v3993_v4  ;;  %v1394_v14 = vpop.xlane.xlu2 %1393  ;;  %v1456_v2 = vmul.f32 %v3137_v58, %v1455_v43  ;;  %vm1468_vm10 = vweird.f32 %v3139_v37 }
 0x87d   :  { %v1406_v17 = vmul.f32 %v4012_v55, %v4012_v55  ;;  %v1400_v19 = vmul.f32 %v1394_v14, %v3377_v57  ;;  %3140 = vrsqrt.f32 %v1429_v47  ;;  %vm1469_vm12 = vmor %vm1467_vm11, %vm1468_vm10  ;;  %vm1477_vm15 = vweird.f32 %v1429_v47 }
 0x87e   :  { %v1463_v28 = vmul.f32 %v3139_v37, %v1462_v11  ;;  %v1460_v29 = vsel %vm1459_vm9, %v3137_v58, %v1456_v2  ;;  %v1424_v56 = vsub.f32 %v3925_v20, %v4012_v55 }
 0x87f   :  { %v1412_v18 = vsub.f32 %v1400_v19, %v1406_v17  ;;  %v4039_v31 = vmul.f32 %v1460_v29, %v1421_v13 }
 0x880   :  { %v1464_v33 = vmul.f32 0.5, %v1463_v28 }
 0x881   :  { %v1418_v23 = vmax.f32 %v1412_v18, 0.0  ;;  %2934 = vmatmul.msk.f32.gmra.mxu0 %vm90_vm1, %v4039_v31  ;;  %2940 = vmatmul.msk.f32.gmra.mxu1 %vm90_vm1, %v4039_v31 }
 0x882   :  { %v1465_v40 = vsub.f32 1.5, %v1464_v33  ;;  %2946 = vmatmul.msk.f32.gmra.mxu2 %vm90_vm1, %v4039_v31 }
 0x883   :  { %v1430_v36 = vadd.f32 1e-12, %v1418_v23  ;;  %v3141_v45 = vpop.eup %3140 }
 0x884   :  { %v1466_v38 = vmul.f32 %v3139_v37, %v1465_v40  ;;  %v1472_v44 = vmul.f32 %v3141_v45, %v1429_v47  ;;  %vm1478_vm14 = vweird.f32 %v3141_v45  ;;  %v1599_v47 = vld [vmem:[%s4575_s1 + $0x510] ss:$0 sm:$0xff] }
 0x885   :  { %3142 = vrsqrt.f32 %v1430_v36  ;;  %vm1479_vm2 = vmor %vm1477_vm15, %vm1478_vm14  ;;  %vm1487_vm4 = vweird.f32 %v1430_v36 }
 0x886   :  { %v1470_v12 = vsel %vm1469_vm12, %v3139_v37, %v1466_v38  ;;  %v1473_v48 = vmul.f32 %v3141_v45, %v1472_v44  ;;  %v1910_v44 = vld [vmem:[%s4575_s1 + $0x610] sm:$0xff] }
 0x887   :  { %v4056_v51 = vmul.f32 %v1470_v12, %v1422_v42  ;;  %v1909_v12 = vld [vmem:[%s4575_s1 + $0x600] sm:$0xff] }
 0x888   :  { %v1474_v25 = vmul.f32 0.5, %v1473_v48  ;;  %v1908_v48 = vld [vmem:[%s4575_s1 + $0x5f0] sm:$0xff] }
 0x889   :  { %2935 = vmatmul.msk.f32.gmra.mxu0 %vm90_vm1, %v4056_v51  ;;  %2941 = vmatmul.msk.f32.gmra.mxu1 %vm90_vm1, %v4056_v51 }
 0x88a   :  { %v1475_v61 = vsub.f32 1.5, %v1474_v25  ;;  %2947 = vmatmul.msk.f32.gmra.mxu2 %vm90_vm1, %v4056_v51  ;;  %v1907_v25 = vld [vmem:[%s4575_s1 + $0x5e0] sm:$0xff] }
 0x88b   :  { %v3143_v50 = vpop.eup %3142 }
 0x88c   :  { %v1482_v39 = vmul.f32 %v3143_v50, %v1430_v36  ;;  %v1476_v52 = vmul.f32 %v3141_v45, %v1475_v61  ;;  %vm1488_vm3 = vweird.f32 %v3143_v50 }
 0x88d   :  { %vm1489_vm5 = vmor %vm1487_vm4, %vm1488_vm3 }
 0x88e   :  { %v1483_v54 = vmul.f32 %v3143_v50, %v1482_v39  ;;  %v1480_v4 = vsel %vm1479_vm2, %v3141_v45, %v1476_v52 }
 0x88f   :  { %v4066_v58 = vmul.f32 %v1480_v4, %v1423_v15  ;;  %v1871_v4 = vld [vmem:[%s4575_s1 + $0x5d0] ss:$0 sm:$0xff] }
 0x890   :  { %v1484_v59 = vmul.f32 0.5, %v1483_v54 }
 0x891   :  { %2936 = vmatmul.msk.f32.gmra.mxu0 %vm90_vm1, %v4066_v58  ;;  %2942 = vmatmul.msk.f32.gmra.mxu1 %vm90_vm1, %v4066_v58 }
 0x892   :  { %v1485_v60 = vsub.f32 1.5, %v1484_v59  ;;  %2948 = vmatmul.msk.f32.gmra.mxu2 %vm90_vm1, %v4066_v58 }
 0x894   :  { %v1486_v26 = vmul.f32 %v3143_v50, %v1485_v60 }
 0x896   :  { %v1490_v62 = vsel %vm1489_vm5, %v3143_v50, %v1486_v26 }
 0x897   :  { %v4076_v63 = vmul.f32 %v1490_v62, %v1424_v56 }
 0x899   :  { %2937 = vmatmul.msk.f32.gmra.mxu0 %vm90_vm1, %v4076_v63  ;;  %2943 = vmatmul.msk.f32.gmra.mxu1 %vm90_vm1, %v4076_v63 }
 0x89a   :  { %2949 = vmatmul.msk.f32.gmra.mxu2 %vm90_vm1, %v4076_v63 }
 0x8a1   :  { %2968 = vmatmul.msk.f32.vlgmr.msrb.gmra.mxu1 %vm90_vm1, %v3985_v49 }
 0x8a2   :  { %2974 = vmatmul.msk.f32.vlgmr.msrb.gmra.mxu2 %vm90_vm1, %v3985_v49 }
 0x8a9   :  { %2969 = vmatmul.msk.f32.gmra.mxu1 %vm90_vm1, %v4003_v3 }
 0x8aa   :  { %2975 = vmatmul.msk.f32.gmra.mxu2 %vm90_vm1, %v4003_v3 }
 0x8b1   :  { %2970 = vmatmul.msk.f32.gmra.mxu1 %vm90_vm1, %v4039_v31 }
 0x8b2   :  { %2976 = vmatmul.msk.f32.gmra.mxu2 %vm90_vm1, %v4039_v31 }
 0x8b9   :  { %2971 = vmatmul.msk.f32.gmra.mxu1 %vm90_vm1, %v4056_v51 }
 0x8ba   :  { %2977 = vmatmul.msk.f32.gmra.mxu2 %vm90_vm1, %v4056_v51 }
 0x8c1   :  { %2972 = vmatmul.msk.f32.gmra.mxu1 %vm90_vm1, %v4066_v58 }
 0x8c2   :  { %2978 = vmatmul.msk.f32.gmra.mxu2 %vm90_vm1, %v4066_v58 }
 0x8c9   :  { %2973 = vmatmul.msk.f32.gmra.mxu1 %vm90_vm1, %v4076_v63 }
 0x8ca   :  { %2979 = vmatmul.msk.f32.gmra.mxu2 %vm90_vm1, %v4076_v63 }
 0x8ee   :  { %v1577_v0 = vpop.f32.mrf.mxu1  ;;  %v1537_v19 = vpop.f32.mrf.mxu0 }
 0x8ef   :  { %v1578_v23 = vadd.f32 %v1577_v0, %v1559_v9  ;;  %v1538_v36 = vadd.f32 %v1537_v19, %v1501_v35 }
 0x8f5   :  { %v1617_v1 = vpop.f32.mrf.mxu2 }
 0x8f6   :  { %v1580_v5 = vpop.f32.mrf.mxu1  ;;  %v1618_v33 = vadd.f32 %v1617_v1, %v1599_v47  ;;  %v1540_v22 = vpop.f32.mrf.mxu0 }
 0x8f7   :  { %v1581_v18 = vadd.f32 %v1580_v5, %v1559_v9  ;;  %v1541_v42 = vadd.f32 %v1540_v22, %v1501_v35 }
 0x8fd   :  { %v1620_v32 = vpop.f32.mrf.mxu2 }
 0x8fe   :  { %v1583_v6 = vpop.f32.mrf.mxu1  ;;  %v1621_v29 = vadd.f32 %v1620_v32, %v1599_v47  ;;  %v1543_v45 = vpop.f32.mrf.mxu0 }
 0x8ff   :  { %v1584_v24 = vadd.f32 %v1583_v6, %v1559_v9  ;;  %v1544_v61 = vadd.f32 %v1543_v45, %v1501_v35 }
 0x905   :  { %v1623_v53 = vpop.f32.mrf.mxu2 }
 0x906   :  { %v1586_v41 = vpop.f32.mrf.mxu1  ;;  %v1624_v13 = vadd.f32 %v1623_v53, %v1599_v47  ;;  %v1546_v39 = vpop.f32.mrf.mxu0 }
 0x907   :  { %v1587_v2 = vadd.f32 %v1586_v41, %v1559_v9  ;;  %v1547_v15 = vadd.f32 %v1546_v39, %v1501_v35 }
 0x90d   :  { %v1626_v37 = vpop.f32.mrf.mxu2 }
 0x90e   :  { %v1589_v43 = vpop.f32.mrf.mxu1  ;;  %v1627_v21 = vadd.f32 %v1626_v37, %v1599_v47  ;;  %v1549_v54 = vpop.f32.mrf.mxu0 }
 0x90f   :  { %v1590_v11 = vadd.f32 %v1589_v43, %v1559_v9  ;;  %v1550_v60 = vadd.f32 %v1549_v54, %v1501_v35  ;;  %v4179_v43 = vld [vmem:[%s4575_s1 + $0xe0] sm:$0xff] }
 0x915   :  { %v1629_v55 = vpop.f32.mrf.mxu2 }
 0x916   :  { %v1592_v7 = vpop.f32.mrf.mxu1  ;;  %v1630_v17 = vadd.f32 %v1629_v55, %v1599_v47  ;;  %v1552_v62 = vpop.f32.mrf.mxu0 }
 0x917   :  { %v1593_v10 = vadd.f32 %v1592_v7, %v1559_v9  ;;  %v1553_v0 = vadd.f32 %v1552_v62, %v1501_v35 }
 0x919   :  { %2950 = vmatpush.xpose.msk.msrb.mxu3 %vm386_vm7, %v1593_v10  ;;  %v4186_v10 = vld [vmem:[%s4575_s1 + $0xf0] sm:$0xff] }
 0x91d   :  { %v1632_v14 = vpop.f32.mrf.mxu2  ;;  %2951 = vmatpush.xpose.msk.msrb.mxu3 %vm386_vm7, %v1590_v11 }
 0x91e   :  { %v1633_v16 = vadd.f32 %v1632_v14, %v1599_v47 }
 0x920   :  { %1800 = vmatpush.msrb.mxu0 %v1633_v16  ;;  %v4193_v16 = vld [vmem:[%s4575_s1 + $0x100] sm:$0xff] }
 0x921   :  { %2952 = vmatpush.xpose.msk.msrb.mxu3 %vm386_vm7, %v1587_v2 }
 0x922   :  { %1801 = vmatpush.msrb.mxu0 %v1630_v17 }
 0x924   :  { %1802 = vmatpush.msrb.mxu0 %v1627_v21  ;;  %v4200_v21 = vld [vmem:[%s4575_s1 + $0x110] sm:$0xff] }
 0x925   :  { %v1889_v28 = vpop.f32.mrf.mxu2  ;;  %2953 = vmatpush.xpose.msk.msrb.mxu3 %vm386_vm7, %v1584_v24 }
 0x926   :  { %1803 = vmatpush.msrb.mxu0 %v1624_v13  ;;  %v1890_v6 = vadd.f32 %v1889_v28, %v1871_v4 }
 0x928   :  { %1804 = vmatpush.msrb.mxu0 %v1621_v29 }
 0x929   :  { %2954 = vmatpush.xpose.msk.msrb.mxu3 %vm386_vm7, %v1581_v18 }
 0x92a   :  { %1805 = vmatpush.msrb.mxu0 %v1618_v33 }
 0x92d   :  { %v1892_v40 = vpop.f32.mrf.mxu2  ;;  %2955 = vmatpush.xpose.msk.msrb.mxu3 %vm386_vm7, %v1578_v23  ;;  %v1911_v23 = vld [vmem:[%s4575_s1 + $0x620] ss:$0 sm:$0xff] }
 0x92e   :  { %v1893_v32 = vadd.f32 %v1892_v40, %v1871_v4 }
 0x930   :  { %2956 = vmatmul.msk.f32.vlgmr.msrb.gmra.mxu3 %vm386_vm7, %v1538_v36 }
 0x931   :  { %1924 = vmatpush.msra.mxu3 %v1910_v44 }
 0x933   :  { %1925 = vmatpush.msra.mxu3 %v1909_v12 }
 0x935   :  { %v1895_v38 = vpop.f32.mrf.mxu2  ;;  %1926 = vmatpush.msra.mxu3 %v1908_v48 }
 0x936   :  { %v1896_v5 = vadd.f32 %v1895_v38, %v1871_v4 }
 0x937   :  { %1927 = vmatpush.msra.mxu3 %v1907_v25 }
 0x938   :  { %2957 = vmatmul.msk.f32.gmra.mxu3 %vm386_vm7, %v1541_v42 }
 0x93d   :  { %v1898_v50 = vpop.f32.mrf.mxu2 }
 0x93e   :  { %v1899_v1 = vadd.f32 %v1898_v50, %v1871_v4 }
 0x940   :  { %2958 = vmatmul.msk.f32.gmra.mxu3 %vm386_vm7, %v1544_v61 }
 0x945   :  { %v1901_v52 = vpop.f32.mrf.mxu2 }
 0x946   :  { %v1902_v56 = vadd.f32 %v1901_v52, %v1871_v4 }
 0x948   :  { %2959 = vmatmul.msk.f32.gmra.mxu3 %vm386_vm7, %v1547_v15 }
 0x94d   :  { %v1904_v59 = vpop.f32.mrf.mxu2 }
 0x94e   :  { %v1905_v26 = vadd.f32 %v1904_v59, %v1871_v4 }
 0x950   :  { %2986 = vmatpush.xpose.msk.msra.mxu0 %vm386_vm7, %v1905_v26  ;;  %2960 = vmatmul.msk.f32.gmra.mxu3 %vm386_vm7, %v1550_v60 }
 0x954   :  { %2987 = vmatpush.xpose.msk.msra.mxu0 %vm386_vm7, %v1902_v56 }
 0x958   :  { %2988 = vmatpush.xpose.msk.msra.mxu0 %vm386_vm7, %v1899_v1  ;;  %2961 = vmatmul.msk.f32.gmra.mxu3 %vm386_vm7, %v1553_v0 }
 0x95c   :  { %2989 = vmatpush.xpose.msk.msra.mxu0 %vm386_vm7, %v1896_v5 }
 0x960   :  { %2990 = vmatpush.xpose.msk.msra.mxu0 %vm386_vm7, %v1893_v32  ;;  %2980 = vmatmul.msk.f32.vlgmr.msra.gmra.mxu3 %vm90_vm1, %v3985_v49  ;;  %v4165_v49 = vld [vmem:[%s4575_s1 + $0xc0] sm:$0xff] }
 0x964   :  { %2991 = vmatpush.xpose.msk.msra.mxu0 %vm386_vm7, %v1890_v6 }
 0x968   :  { %2981 = vmatmul.msk.f32.gmra.mxu3 %vm90_vm1, %v4003_v3 }
 0x970   :  { %2982 = vmatmul.msk.f32.gmra.mxu3 %vm90_vm1, %v4039_v31 }
 0x978   :  { %2983 = vmatmul.msk.f32.gmra.mxu3 %vm90_vm1, %v4056_v51  ;;  %v4172_v51 = vld [vmem:[%s4575_s1 + $0xd0] sm:$0xff] }
 0x980   :  { %2984 = vmatmul.msk.f32.gmra.mxu3 %vm90_vm1, %v4066_v58 }
 0x988   :  { %2985 = vmatmul.msk.f32.gmra.mxu3 %vm90_vm1, %v4076_v63 }
 0x9b3   :  { %v1688_v53 = vpop.f32.mrf.mxu3 }
 0x9b4   :  { %v1689_v3 = vadd.f32 %v4165_v49, %v1688_v53 }
 0x9b6   :  { %v1706_v41 = vsel %vm30_vm0, %v1689_v3, -inf }
 0x9b7   :  { %1707 = vmax.xlane.f32.xlu0 %v1706_v41 }
 0x9bb   :  { %v1691_v31 = vpop.f32.mrf.mxu3 }
 0x9bc   :  { %v1692_v58 = vadd.f32 %v4172_v51, %v1691_v31 }
 0x9be   :  { %v1709_v63 = vsel %vm30_vm0, %v1692_v58, -inf }
 0x9bf   :  { %1710 = vmax.xlane.f32.xlu1 %v1709_v63 }
 0x9c3   :  { %v1694_v37 = vpop.f32.mrf.mxu3 }
 0x9c4   :  { %v1695_v55 = vadd.f32 %v4179_v43, %v1694_v37 }
 0x9c6   :  { %v1712_v9 = vsel %vm30_vm0, %v1695_v55, -inf }
 0x9c7   :  { %1713 = vmax.xlane.f32.xlu2 %v1712_v9 }
 0x9cb   :  { %v1697_v7 = vpop.f32.mrf.mxu3 }
 0x9cc   :  { %v1698_v11 = vadd.f32 %v4186_v10, %v1697_v7 }
 0x9ce   :  { %v1715_v47 = vsel %vm30_vm0, %v1698_v11, -inf }
 0x9cf   :  { %1716 = vmax.xlane.f32.xlu0 %v1715_v47 }
 0x9d3   :  { %v1700_v14 = vpop.f32.mrf.mxu3 }
 0x9d4   :  { %v1701_v2 = vadd.f32 %v4193_v16, %v1700_v14 }
 0x9d6   :  { %v1718_v17 = vsel %vm30_vm0, %v1701_v2, -inf }
 0x9d7   :  { %1719 = vmax.xlane.f32.xlu1 %v1718_v17 }
 0x9db   :  { %v1703_v19 = vpop.f32.mrf.mxu3 }
 0x9dc   :  { %v1704_v24 = vadd.f32 %v4200_v21, %v1703_v19 }
 0x9de   :  { %v1721_v13 = vsel %vm30_vm0, %v1704_v24, -inf }
 0x9df   :  { %1722 = vmax.xlane.f32.xlu2 %v1721_v13 }
 0x9e3   :  { %v1929_v28 = vpop.f32.mrf.mxu3 }
 0x9e4   :  { %v1930_v44 = vadd.f32 %v1929_v28, %v1911_v23 }
 0x9eb   :  { %v1932_v29 = vpop.f32.mrf.mxu3 }
 0x9ec   :  { %v1933_v42 = vadd.f32 %v1932_v29, %v1911_v23 }
 0x9f3   :  { %v1935_v18 = vpop.f32.mrf.mxu3 }
 0x9f4   :  { %v1936_v38 = vadd.f32 %v1935_v18, %v1911_v23 }
 0x9fb   :  { %v1938_v33 = vpop.f32.mrf.mxu3 }
 0x9fc   :  { %v1939_v45 = vadd.f32 %v1938_v33, %v1911_v23 }
 0xa03   :  { %v1941_v35 = vpop.f32.mrf.mxu3 }
 0xa04   :  { %v1942_v36 = vadd.f32 %v1941_v35, %v1911_v23 }
 0xa0b   :  { %v1944_v22 = vpop.f32.mrf.mxu3 }
 0xa0c   :  { %v1945_v40 = vadd.f32 %v1944_v22, %v1911_v23 }
 0xa0e   :  { %2112 = vmatpush.msra.mxu1 %v1945_v40 }
 0xa10   :  { %2113 = vmatpush.msra.mxu1 %v1942_v36  ;;  %v1849_v36 = vpop.f32.mrf.mxu1 }
 0xa12   :  { %2114 = vmatpush.msra.mxu1 %v1939_v45 }
 0xa14   :  { %2115 = vmatpush.msra.mxu1 %v1936_v38 }
 0xa16   :  { %2116 = vmatpush.msra.mxu1 %v1933_v42  ;;  %v1831_v42 = vld [vmem:[%s4575_s1 + $0x580] ss:$0 sm:$0xff] }
 0xa18   :  { %2117 = vmatpush.msra.mxu1 %v1930_v44  ;;  %v1852_v44 = vpop.f32.mrf.mxu1 }
 0xa2a   :  { %v1708_v12 = vpop.xlane.xlu0 %1707 }
 0xa2b   :  { %v1724_v48 = vsub.f32 %v1689_v3, %v1708_v12  ;;  %v1850_v12 = vadd.f32 %v1849_v36, %v1831_v42 }
 0xa2d   :  { %v1730_v25 = vmul.f32 1.442695, %v1724_v48  ;;  %v1855_v48 = vpop.f32.mrf.mxu1 }
 0xa2f   :  { %3144 = vpow2.f32 %v1730_v25  ;;  %v1853_v25 = vadd.f32 %v1852_v44, %v1831_v42 }
 0xa32   :  { %v1711_v50 = vpop.xlane.xlu1 %1710 }
 0xa33   :  { %v1725_v61 = vsub.f32 %v1692_v58, %v1711_v50  ;;  %v1826_v50 = vld [vmem:[%s4575_s1 + $0x530] sm:$0xff] }
 0xa34   :  { %2224 = vmatpush.msrb.mxu3 %v1826_v50 }
 0xa35   :  { %v3145_v39 = vpop.eup %3144  ;;  %v1732_v52 = vmul.f32 1.442695, %v1725_v61  ;;  %v1856_v61 = vadd.f32 %v1855_v48, %v1831_v42 }
 0xa36   :  { %v1742_v15 = vsel %vm30_vm0, %v3145_v39, 0.0 }
 0xa37   :  { %3146 = vpow2.f32 %v1732_v52  ;;  %1743 = vadd.xlane.f32.xlu0 %v1742_v15 }
 0xa3a   :  { %v1714_v54 = vpop.xlane.xlu2 %1713 }
 0xa3b   :  { %v1726_v4 = vsub.f32 %v1695_v55, %v1714_v54 }
 0xa3d   :  { %v3147_v59 = vpop.eup %3146  ;;  %v1734_v60 = vmul.f32 1.442695, %v1726_v4 }
 0xa3e   :  { %v1745_v26 = vsel %vm30_vm0, %v3147_v59, 0.0 }
 0xa3f   :  { %3148 = vpow2.f32 %v1734_v60  ;;  %1746 = vadd.xlane.f32.xlu1 %v1745_v26  ;;  %v1825_v60 = vld [vmem:[%s4575_s1 + $0x520] sm:$0xff] }
 0xa40   :  { %2225 = vmatpush.msrb.mxu3 %v1825_v60 }
 0xa42   :  { %v1717_v56 = vpop.xlane.xlu0 %1716 }
 0xa43   :  { %v1727_v62 = vsub.f32 %v1698_v11, %v1717_v56 }
 0xa45   :  { %v3149_v0 = vpop.eup %3148  ;;  %v1736_v1 = vmul.f32 1.442695, %v1727_v62 }
 0xa46   :  { %v1748_v5 = vsel %vm30_vm0, %v3149_v0, 0.0 }
 0xa47   :  { %3150 = vpow2.f32 %v1736_v1  ;;  %1749 = vadd.xlane.f32.xlu2 %v1748_v5 }
 0xa4a   :  { %v1720_v32 = vpop.xlane.xlu1 %1719 }
 0xa4b   :  { %v1728_v6 = vsub.f32 %v1701_v2, %v1720_v32 }
 0xa4d   :  { %v3151_v53 = vpop.eup %3150  ;;  %v1738_v3 = vmul.f32 1.442695, %v1728_v6 }
 0xa4e   :  { %v1751_v41 = vsel %vm30_vm0, %v3151_v53, 0.0 }
 0xa4f   :  { %3152 = vpow2.f32 %v1738_v3  ;;  %1752 = vadd.xlane.f32.xlu0 %v1751_v41 }
 0xa52   :  { %v1723_v31 = vpop.xlane.xlu2 %1722 }
 0xa53   :  { %v1729_v58 = vsub.f32 %v1704_v24, %v1723_v31 }
 0xa55   :  { %v3153_v63 = vpop.eup %3152  ;;  %v1740_v37 = vmul.f32 1.442695, %v1729_v58 }
 0xa56   :  { %v1754_v55 = vsel %vm30_vm0, %v3153_v63, 0.0 }
 0xa57   :  { %3154 = vpow2.f32 %v1740_v37  ;;  %1755 = vadd.xlane.f32.xlu1 %v1754_v55 }
 0xa5d   :  { %v3155_v9 = vpop.eup %3154 }
 0xa5e   :  { %v1757_v7 = vsel %vm30_vm0, %v3155_v9, 0.0 }
 0xa5f   :  { %1758 = vadd.xlane.f32.xlu2 %v1757_v7 }
 0xaaa   :  { %v1744_v11 = vpop.xlane.xlu0 %1743 }
 0xaab   :  { %3156 = vrcp.f32 %v1744_v11 }
 0xab1   :  { %v3157_v47 = vpop.eup %3156 }
 0xab2   :  { %v1766_v14 = vmul.f32 %v3157_v47, %v3145_v39  ;;  %v1747_v2 = vpop.xlane.xlu1 %1746  ;;  %v1858_v39 = vpop.f32.mrf.mxu1 }
 0xab3   :  { %3158 = vrcp.f32 %v1747_v2  ;;  %v1859_v52 = vadd.f32 %v1858_v39, %v1831_v42 }
 0xab4   :  { %2962 = vmatmul.msk.f32.vlgmr.msrb.gmra.mxu0 %vm30_vm0, %v1766_v14 }
 0xab9   :  { %v3159_v17 = vpop.eup %3158 }
 0xaba   :  { %v1750_v19 = vpop.xlane.xlu2 %1749  ;;  %v1767_v24 = vmul.f32 %v3159_v17, %v3147_v59  ;;  %v1861_v15 = vpop.f32.mrf.mxu1 }
 0xabb   :  { %3160 = vrcp.f32 %v1750_v19  ;;  %v1862_v54 = vadd.f32 %v1861_v15, %v1831_v42 }
 0xabc   :  { %2963 = vmatmul.msk.f32.gmra.mxu0 %vm30_vm0, %v1767_v24 }
 0xac1   :  { %v3161_v13 = vpop.eup %3160 }
 0xac2   :  { %v1753_v28 = vpop.xlane.xlu0 %1752  ;;  %v1768_v29 = vmul.f32 %v3161_v13, %v3149_v0  ;;  %v1864_v4 = vpop.f32.mrf.mxu1 }
 0xac3   :  { %3162 = vrcp.f32 %v1753_v28  ;;  %v1865_v59 = vadd.f32 %v1864_v4, %v1831_v42 }
 0xac4   :  { %2964 = vmatmul.msk.f32.gmra.mxu0 %vm30_vm0, %v1768_v29 }
 0xac9   :  { %v3163_v18 = vpop.eup %3162 }
 0xaca   :  { %v1756_v33 = vpop.xlane.xlu1 %1755  ;;  %v1769_v35 = vmul.f32 %v3163_v18, %v3151_v53 }
 0xacb   :  { %3164 = vrcp.f32 %v1756_v33 }
 0xacc   :  { %2965 = vmatmul.msk.f32.gmra.mxu0 %vm30_vm0, %v1769_v35 }
 0xad1   :  { %v3165_v23 = vpop.eup %3164 }
 0xad2   :  { %v1759_v22 = vpop.xlane.xlu2 %1758  ;;  %v1770_v40 = vmul.f32 %v3165_v23, %v3153_v63 }
 0xad3   :  { %3166 = vrcp.f32 %v1759_v22 }
 0xad4   :  { %2966 = vmatmul.msk.f32.gmra.mxu0 %vm30_vm0, %v1770_v40 }
 0xad9   :  { %v3167_v45 = vpop.eup %3166 }
 0xada   :  { %v1771_v38 = vmul.f32 %v3167_v45, %v3155_v9  ;;  %v2138_v45 = vld [vmem:[%s4575_s1 + $0x640] sm:$0xff] }
 0xadb   :  { %2171 = vmatpush.msra.mxu2 %v2138_v45 }
 0xadc   :  { %2967 = vmatmul.msk.f32.gmra.mxu0 %vm30_vm0, %v1771_v38 }
 0xae4   :  { %2992 = vmatmul.msk.f32.vlgmr.msra.gmra.mxu0 %vm386_vm7, %v1850_v12 }
 0xaec   :  { %2993 = vmatmul.msk.f32.gmra.mxu0 %vm386_vm7, %v1853_v25 }
 0xaf4   :  { %2994 = vmatmul.msk.f32.gmra.mxu0 %vm386_vm7, %v1856_v61 }
 0xafc   :  { %2995 = vmatmul.msk.f32.gmra.mxu0 %vm386_vm7, %v1859_v52 }
 0xb04   :  { %2996 = vmatmul.msk.f32.gmra.mxu0 %vm386_vm7, %v1862_v54  ;;  %v2137_v54 = vld [vmem:[%s4575_s1 + $0x630] sm:$0xff] }
 0xb05   :  { %2172 = vmatpush.msra.mxu2 %v2137_v54 }
 0xb0c   :  { %2997 = vmatmul.msk.f32.gmra.mxu0 %vm386_vm7, %v1865_v59 }
 0xb31   :  { %v1807_v26 = vpop.f32.mrf.mxu0 }
 0xb32   :  { %3010 = vmatmul.msk.f32.vlgmr.msrb.gmra.mxu3 %vm386_vm7, %v1807_v26 }
 0xb39   :  { %v1810_v56 = vpop.f32.mrf.mxu0 }
 0xb3a   :  { %3011 = vmatmul.msk.f32.gmra.mxu3 %vm386_vm7, %v1810_v56 }
 0xb41   :  { %v1813_v62 = vpop.f32.mrf.mxu0 }
 0xb42   :  { %3012 = vmatmul.msk.f32.gmra.mxu3 %vm386_vm7, %v1813_v62 }
 0xb49   :  { %v1816_v0 = vpop.f32.mrf.mxu0 }
 0xb4a   :  { %3013 = vmatmul.msk.f32.gmra.mxu3 %vm386_vm7, %v1816_v0 }
 0xb51   :  { %v1819_v1 = vpop.f32.mrf.mxu0 }
 0xb52   :  { %3014 = vmatmul.msk.f32.gmra.mxu3 %vm386_vm7, %v1819_v1  ;;  %v4269_v1 = vld [vmem:[%s4575_s1 + $0x650] ss:$0 sm:$0xff] }
 0xb59   :  { %v1822_v5 = vpop.f32.mrf.mxu0 }
 0xb5a   :  { %3015 = vmatmul.msk.f32.gmra.mxu3 %vm386_vm7, %v1822_v5 }
 0xb61   :  { %v2000_v32 = vpop.f32.mrf.mxu0 }
 0xb62   :  { %v2001_v6 = vadd.f32 %v4165_v49, %v2000_v32 }
 0xb64   :  { %v2018_v53 = vsel %vm30_vm0, %v2001_v6, -inf }
 0xb65   :  { %2019 = vmax.xlane.f32.xlu0 %v2018_v53 }
 0xb69   :  { %v2003_v3 = vpop.f32.mrf.mxu0 }
 0xb6a   :  { %v2004_v41 = vadd.f32 %v4172_v51, %v2003_v3 }
 0xb6c   :  { %v2021_v31 = vsel %vm30_vm0, %v2004_v41, -inf }
 0xb6d   :  { %2022 = vmax.xlane.f32.xlu1 %v2021_v31 }
 0xb71   :  { %v2006_v58 = vpop.f32.mrf.mxu0 }
 0xb72   :  { %v2007_v63 = vadd.f32 %v4179_v43, %v2006_v58 }
 0xb74   :  { %v2024_v37 = vsel %vm30_vm0, %v2007_v63, -inf }
 0xb75   :  { %2025 = vmax.xlane.f32.xlu2 %v2024_v37 }
 0xb79   :  { %v2009_v55 = vpop.f32.mrf.mxu0 }
 0xb7a   :  { %v2010_v9 = vadd.f32 %v4186_v10, %v2009_v55 }
 0xb7c   :  { %v2027_v49 = vsel %vm30_vm0, %v2010_v9, -inf }
 0xb7d   :  { %2028 = vmax.xlane.f32.xlu0 %v2027_v49 }
 0xbb5   :  { %v2227_v56 = vpop.f32.mrf.mxu3 }
 0xbbd   :  { %v2230_v32 = vpop.f32.mrf.mxu3 }
 0xbc5   :  { %v2233_v37 = vpop.f32.mrf.mxu3 }
 0xbd8   :  { %v2020_v7 = vpop.xlane.xlu0 %2019 }
 0xbd9   :  { %v2036_v11 = vsub.f32 %v2001_v6, %v2020_v7 }
 0xbdb   :  { %v2042_v47 = vmul.f32 1.442695, %v2036_v11 }
 0xbdd   :  { %3168 = vpow2.f32 %v2042_v47 }
 0xbe0   :  { %v2023_v51 = vpop.xlane.xlu1 %2022 }
 0xbe1   :  { %v2037_v14 = vsub.f32 %v2004_v41, %v2023_v51  ;;  %v2012_v51 = vpop.f32.mrf.mxu0 }
 0xbe3   :  { %v3169_v2 = vpop.eup %3168  ;;  %v2044_v17 = vmul.f32 1.442695, %v2037_v14 }
 0xbe4   :  { %v2054_v19 = vsel %vm30_vm0, %v3169_v2, 0.0 }
 0xbe5   :  { %3170 = vpow2.f32 %v2044_v17  ;;  %2055 = vadd.xlane.f32.xlu1 %v2054_v19  ;;  %v2236_v17 = vpop.f32.mrf.mxu3 }
 0xbe8   :  { %v2026_v43 = vpop.xlane.xlu2 %2025 }
 0xbe9   :  { %v2038_v24 = vsub.f32 %v2007_v63, %v2026_v43 }
 0xbeb   :  { %v3171_v13 = vpop.eup %3170  ;;  %v2046_v28 = vmul.f32 1.442695, %v2038_v24 }
 0xbec   :  { %v2057_v10 = vsel %vm30_vm0, %v3171_v13, 0.0 }
 0xbed   :  { %3172 = vpow2.f32 %v2046_v28  ;;  %2058 = vadd.xlane.f32.xlu2 %v2057_v10 }
 0xbf0   :  { %v2029_v29 = vpop.xlane.xlu0 %2028 }
 0xbf1   :  { %v2039_v18 = vsub.f32 %v2010_v9, %v2029_v29 }
 0xbf3   :  { %v3173_v33 = vpop.eup %3172  ;;  %v2048_v35 = vmul.f32 1.442695, %v2039_v18  ;;  %v2015_v18 = vpop.f32.mrf.mxu0 }
 0xbf4   :  { %v2060_v23 = vsel %vm30_vm0, %v3173_v33, 0.0 }
 0xbf5   :  { %3174 = vpow2.f32 %v2048_v35  ;;  %2061 = vadd.xlane.f32.xlu0 %v2060_v23  ;;  %v2411_v23 = vld [vmem:[%s4575_s1 + $0x690] sm:$0xff] }
 0xbf6   :  { %2443 = vmatpush.msrb.mxu0 %v2411_v23 }
 0xbfb   :  { %v3175_v22 = vpop.eup %3174 }
 0xbfc   :  { %v2063_v40 = vsel %vm30_vm0, %v3175_v22, 0.0 }
 0xbfd   :  { %2064 = vadd.xlane.f32.xlu1 %v2063_v40  ;;  %v2409_v40 = vld [vmem:[%s4575_s1 + $0x670] sm:$0xff] }
 0xc58   :  { %v2056_v36 = vpop.xlane.xlu1 %2055 }
 0xc59   :  { %3176 = vrcp.f32 %v2056_v36 }
 0xc5f   :  { %v3177_v38 = vpop.eup %3176 }
 0xc60   :  { %v2078_v42 = vmul.f32 %v3177_v38, %v3169_v2  ;;  %v2059_v44 = vpop.xlane.xlu2 %2058 }
 0xc61   :  { %3178 = vrcp.f32 %v2059_v44 }
 0xc62   :  { %2998 = vmatmul.msk.f32.vlgmr.msra.gmra.mxu1 %vm30_vm0, %v2078_v42 }
 0xc67   :  { %v3179_v12 = vpop.eup %3178 }
 0xc68   :  { %v2062_v48 = vpop.xlane.xlu0 %2061  ;;  %v2079_v25 = vmul.f32 %v3179_v12, %v3171_v13 }
 0xc69   :  { %3180 = vrcp.f32 %v2062_v48 }
 0xc6a   :  { %2999 = vmatmul.msk.f32.gmra.mxu1 %vm30_vm0, %v2079_v25 }
 0xc6f   :  { %v3181_v50 = vpop.eup %3180 }
 0xc70   :  { %v2065_v61 = vpop.xlane.xlu1 %2064  ;;  %v2080_v39 = vmul.f32 %v3181_v50, %v3173_v33 }
 0xc71   :  { %3182 = vrcp.f32 %v2065_v61 }
 0xc72   :  { %3000 = vmatmul.msk.f32.gmra.mxu1 %vm30_vm0, %v2080_v39 }
 0xc77   :  { %v3183_v52 = vpop.eup %3182 }
 0xc78   :  { %v2081_v15 = vmul.f32 %v3183_v52, %v3175_v22  ;;  %v2410_v22 = vld [vmem:[%s4575_s1 + $0x680] sm:$0xff] }
 0xc79   :  { %2444 = vmatpush.msrb.mxu0 %v2410_v22 }
 0xc7a   :  { %3001 = vmatmul.msk.f32.gmra.mxu1 %vm30_vm0, %v2081_v15 }
 0xc7b   :  { %2445 = vmatpush.msrb.mxu0 %v2409_v40 }
 0xcdf   :  { %v2119_v4 = vpop.f32.mrf.mxu1 }
 0xce0   :  { %3004 = vmatmul.msk.f32.vlgmr.msra.gmra.mxu2 %vm386_vm7, %v2119_v4 }
 0xce7   :  { %v2122_v59 = vpop.f32.mrf.mxu1 }
 0xce8   :  { %3005 = vmatmul.msk.f32.gmra.mxu2 %vm386_vm7, %v2122_v59 }
 0xcef   :  { %v2125_v60 = vpop.f32.mrf.mxu1 }
 0xcf0   :  { %3006 = vmatmul.msk.f32.gmra.mxu2 %vm386_vm7, %v2125_v60 }
 0xcf7   :  { %v2128_v26 = vpop.f32.mrf.mxu1 }
 0xcf8   :  { %3007 = vmatmul.msk.f32.gmra.mxu2 %vm386_vm7, %v2128_v26 }
 0xd63   :  { %v2174_v62 = vpop.f32.mrf.mxu2 }
 0xd64   :  { %v2228_v0 = vadd.f32 %v2227_v56, %v2174_v62 }
 0xd66   :  { %v2245_v5 = vadd.f32 %v2228_v0, %v3885_v8 }
 0xd68   :  { %v4273_v6 = vadd.f32 %v4269_v1, %v2245_v5 }
 0xd6a   :  { %v2258_v53 = vsel %vm90_vm1, %v4273_v6, 0.0  ;;  %v2282_v3 = vmul.f32 %v4273_v6, %v4273_v6 }
 0xd6b   :  { %2259 = vadd.xlane.f32.xlu2 %v2258_v53  ;;  %v2177_v41 = vpop.f32.mrf.mxu2 }
 0xd6c   :  { %v2231_v31 = vadd.f32 %v2230_v32, %v2177_v41  ;;  %v2288_v58 = vsel %vm90_vm1, %v2282_v3, 0.0 }
 0xd6d   :  { %2289 = vadd.xlane.f32.xlu0 %v2288_v58 }
 0xd6e   :  { %v2246_v63 = vadd.f32 %v2231_v31, %v3893_v27 }
 0xd70   :  { %v4282_v8 = vadd.f32 %v4269_v1, %v2246_v63 }
 0xd72   :  { %v2261_v55 = vsel %vm90_vm1, %v4282_v8, 0.0  ;;  %v2283_v9 = vmul.f32 %v4282_v8, %v4282_v8 }
 0xd73   :  { %2262 = vadd.xlane.f32.xlu1 %v2261_v55  ;;  %v2180_v49 = vpop.f32.mrf.mxu2 }
 0xd74   :  { %v2234_v7 = vadd.f32 %v2233_v37, %v2180_v49  ;;  %v2291_v11 = vsel %vm90_vm1, %v2283_v9, 0.0 }
 0xd75   :  { %2292 = vadd.xlane.f32.xlu2 %v2291_v11 }
 0xd76   :  { %v2247_v47 = vadd.f32 %v2234_v7, %v3901_v34  ;;  %v4300_v34 = vadd.f32 %v4193_v16, %v2012_v51 }
 0xd78   :  { %v4291_v27 = vadd.f32 %v4269_v1, %v2247_v47  ;;  %v2030_v33 = vsel %vm30_vm0, %v4300_v34, -inf }
 0xd7a   :  { %v2264_v14 = vsel %vm90_vm1, %v4291_v27, 0.0  ;;  %v2284_v2 = vmul.f32 %v4291_v27, %v4291_v27 }
 0xd7b   :  { %2265 = vadd.xlane.f32.xlu0 %v2264_v14  ;;  %v2183_v19 = vpop.f32.mrf.mxu2 }
 0xd7c   :  { %v2237_v43 = vadd.f32 %v2236_v17, %v2183_v19  ;;  %v2294_v24 = vsel %vm90_vm1, %v2284_v2, 0.0 }
 0xd7d   :  { %2295 = vadd.xlane.f32.xlu1 %v2294_v24 }
 0xd7e   :  { %v2248_v13 = vadd.f32 %v2237_v43, %v3909_v30  ;;  %v4313_v30 = vadd.f32 %v4200_v21, %v2015_v18  ;;  %v2408_v21 = vld [vmem:[%s4575_s1 + $0x660] sm:$0xff] }
 0xd7f   :  { %2446 = vmatpush.msrb.mxu0 %v2408_v21 }
 0xd80   :  { %v4303_v28 = vadd.f32 %v4269_v1, %v2248_v13  ;;  %v2033_v16 = vsel %vm30_vm0, %v4313_v30, -inf }
 0xd82   :  { %v2267_v10 = vsel %vm90_vm1, %v4303_v28, 0.0  ;;  %v2285_v29 = vmul.f32 %v4303_v28, %v4303_v28 }
 0xd83   :  { %2268 = vadd.xlane.f32.xlu2 %v2267_v10 }
 0xd84   :  { %v2297_v35 = vsel %vm90_vm1, %v2285_v29, 0.0 }
 0xd85   :  { %2031 = vmax.xlane.f32.xlu1 %v2030_v33  ;;  %2298 = vadd.xlane.f32.xlu0 %v2297_v35 }
 0xd8b   :  { %2034 = vmax.xlane.f32.xlu2 %v2033_v16 }
 0xdde   :  { %v2260_v36 = vpop.xlane.xlu2 %2259 }
 0xddf   :  { %v2276_v45 = vmul.f32 %v2260_v36, %v3377_v57 }
 0xde0   :  { %v2290_v38 = vpop.xlane.xlu0 %2289 }
 0xde1   :  { %v2312_v42 = vmul.f32 %v2276_v45, %v2276_v45  ;;  %v2306_v44 = vmul.f32 %v2290_v38, %v3377_v57  ;;  %v2330_v47 = vsub.f32 %v4273_v6, %v2276_v45 }
 0xde3   :  { %v2318_v12 = vsub.f32 %v2306_v44, %v2312_v42 }
 0xde5   :  { %v2324_v48 = vmax.f32 %v2318_v12, 0.0 }
 0xde6   :  { %v2263_v25 = vpop.xlane.xlu1 %2262 }
 0xde7   :  { %v2336_v50 = vadd.f32 1e-12, %v2324_v48  ;;  %v4332_v61 = vmul.f32 %v2263_v25, %v3377_v57 }
 0xde8   :  { %v2293_v39 = vpop.xlane.xlu2 %2292 }
 0xde9   :  { %3184 = vrsqrt.f32 %v2336_v50  ;;  %v2313_v52 = vmul.f32 %v4332_v61, %v4332_v61  ;;  %v2307_v15 = vmul.f32 %v2293_v39, %v3377_v57  ;;  %vm2348_vm8 = vweird.f32 %v2336_v50 }
 0xdea   :  { %v2331_v36 = vsub.f32 %v4282_v8, %v4332_v61 }
 0xdeb   :  { %v2319_v54 = vsub.f32 %v2307_v15, %v2313_v52 }
 0xded   :  { %v2325_v4 = vmax.f32 %v2319_v54, 0.0 }
 0xdee   :  { %v2266_v59 = vpop.xlane.xlu0 %2265 }
 0xdef   :  { %v3185_v60 = vpop.eup %3184  ;;  %v4338_v26 = vmul.f32 %v2266_v59, %v3377_v57  ;;  %v2337_v62 = vadd.f32 1e-12, %v2325_v4 }
 0xdf0   :  { %v2343_v56 = vmul.f32 %v3185_v60, %v2336_v50  ;;  %v2296_v0 = vpop.xlane.xlu1 %2295  ;;  %vm2349_vm6 = vweird.f32 %v3185_v60 }
 0xdf1   :  { %v2314_v5 = vmul.f32 %v4338_v26, %v4338_v26  ;;  %v2308_v32 = vmul.f32 %v2296_v0, %v3377_v57  ;;  %3186 = vrsqrt.f32 %v2337_v62  ;;  %vm2350_vm9 = vmor %vm2348_vm8, %vm2349_vm6  ;;  %vm2358_vm11 = vweird.f32 %v2337_v62  ;;  %v2527_v0 = vld [vmem:[%s4575_s1 + $0x720] sm:$0xff] }
 0xdf2   :  { %v2344_v53 = vmul.f32 %v3185_v60, %v2343_v56  ;;  %v2332_v8 = vsub.f32 %v4291_v27, %v4338_v26  ;;  %2554 = vmatpush.msrb.mxu1 %v2527_v0  ;;  %vm2587_vm6 = vcmask 254976  }
 0xdf3   :  { %v2320_v3 = vsub.f32 %v2308_v32, %v2314_v5  ;;  %v2526_v5 = vld [vmem:[%s4575_s1 + $0x710] sm:$0xff]  ;;  %v2525_v32 = vld [vmem:[%s4575_s1 + $0x700] sm:$0xff] }
 0xdf4   :  { %v2345_v41 = vmul.f32 0.5, %v2344_v53  ;;  %2555 = vmatpush.msrb.mxu1 %v2526_v5  ;;  %v2524_v53 = vld [vmem:[%s4575_s1 + $0x6f0] sm:$0xff] }
 0xdf5   :  { %v2326_v31 = vmax.f32 %v2320_v3, 0.0  ;;  %v2523_v3 = vld [vmem:[%s4575_s1 + $0x6e0] sm:$0xff] }
 0xdf6   :  { %v2346_v58 = vsub.f32 1.5, %v2345_v41  ;;  %v2269_v63 = vpop.xlane.xlu2 %2268  ;;  %2556 = vmatpush.msrb.mxu1 %v2525_v32  ;;  %v2522_v41 = vld [vmem:[%s4575_s1 + $0x6d0] sm:$0xff] }
 0xdf7   :  { %v2338_v37 = vadd.f32 1e-12, %v2326_v31  ;;  %v4344_v55 = vmul.f32 %v2269_v63, %v3377_v57  ;;  %v3187_v9 = vpop.eup %3186  ;;  %v2521_v31 = vld [vmem:[%s4575_s1 + $0x6c0] sm:$0xff] }
 0xdf8   :  { %v2347_v49 = vmul.f32 %v3185_v60, %v2346_v58  ;;  %v2032_v7 = vpop.xlane.xlu1 %2031  ;;  %v2299_v11 = vpop.xlane.xlu0 %2298  ;;  %v2353_v51 = vmul.f32 %v3187_v9, %v2337_v62  ;;  %vm2359_vm10 = vweird.f32 %v3187_v9  ;;  %2557 = vmatpush.msrb.mxu1 %v2524_v53  ;;  %v2520_v58 = vld [vmem:[%s4575_s1 + $0x6b0] sm:$0xff]  ;;  %v4391_v63 = vld [vmem:[%s4575_s1 + $0x6a0] ss:$0 sm:$0xff] }
 0xdf9   :  { %3188 = vrsqrt.f32 %v2338_v37  ;;  %v2315_v2 = vmul.f32 %v4344_v55, %v4344_v55  ;;  %v2040_v17 = vsub.f32 %v4300_v34, %v2032_v7  ;;  %v2309_v24 = vmul.f32 %v2299_v11, %v3377_v57  ;;  %vm2360_vm12 = vmor %vm2358_vm11, %vm2359_vm10 }
 0xdfa   :  { %v2351_v14 = vsel %vm2350_vm9, %v3185_v60, %v2347_v49  ;;  %v2354_v43 = vmul.f32 %v3187_v9, %v2353_v51  ;;  %vm2368_vm15 = vweird.f32 %v2338_v37  ;;  %v2333_v62 = vsub.f32 %v4303_v28, %v4344_v55  ;;  %2558 = vmatpush.msrb.mxu1 %v2523_v3 }
 0xdfb   :  { %v2402_v19 = vmul.f32 %v2351_v14, %v2330_v47  ;;  %v2050_v13 = vmul.f32 1.442695, %v2040_v17  ;;  %v2321_v29 = vsub.f32 %v2309_v24, %v2315_v2 }
 0xdfc   :  { %v2355_v10 = vmul.f32 0.5, %v2354_v43  ;;  %2559 = vmatpush.msrb.mxu1 %v2522_v41 }
 0xdfd   :  { %3016 = vmatmul.msk.f32.vlgmr.msrb.gmra.mxu0 %vm90_vm1, %v2402_v19  ;;  %3190 = vpow2.f32 %v2050_v13  ;;  %v2327_v16 = vmax.f32 %v2321_v29, 0.0 }
 0xdfe   :  { %v2035_v18 = vpop.xlane.xlu2 %2034  ;;  %v2356_v35 = vsub.f32 1.5, %v2355_v10  ;;  %2560 = vmatpush.msrb.mxu1 %v2521_v31 }
 0xdff   :  { %v3189_v33 = vpop.eup %3188  ;;  %v2041_v23 = vsub.f32 %v4313_v30, %v2035_v18  ;;  %v2339_v34 = vadd.f32 1e-12, %v2327_v16 }
 0xe00   :  { %v2363_v22 = vmul.f32 %v3189_v33, %v2338_v37  ;;  %v2357_v21 = vmul.f32 %v3187_v9, %v2356_v35  ;;  %vm2369_vm14 = vweird.f32 %v3189_v33  ;;  %2561 = vmatpush.msrb.mxu1 %v2520_v58 }
 0xe01   :  { %v2052_v40 = vmul.f32 1.442695, %v2041_v23  ;;  %3192 = vrsqrt.f32 %v2339_v34  ;;  %vm2370_vm2 = vmor %vm2368_vm15, %vm2369_vm14  ;;  %vm2378_vm4 = vweird.f32 %v2339_v34 }
 0xe02   :  { %v2364_v45 = vmul.f32 %v3189_v33, %v2363_v22  ;;  %v2361_v38 = vsel %vm2360_vm12, %v3187_v9, %v2357_v21 }
 0xe03   :  { %v3191_v42 = vpop.eup %3190  ;;  %3194 = vpow2.f32 %v2052_v40  ;;  %v2403_v12 = vmul.f32 %v2361_v38, %v2331_v36 }
 0xe04   :  { %v2365_v44 = vmul.f32 0.5, %v2364_v45  ;;  %v2066_v48 = vsel %vm30_vm0, %v3191_v42, 0.0 }
 0xe05   :  { %2067 = vadd.xlane.f32.xlu0 %v2066_v48  ;;  %3017 = vmatmul.msk.f32.gmra.mxu0 %vm90_vm1, %v2403_v12 }
 0xe06   :  { %v2366_v25 = vsub.f32 1.5, %v2365_v44 }
 0xe07   :  { %v3193_v50 = vpop.eup %3192 }
 0xe08   :  { %v2367_v30 = vmul.f32 %v3189_v33, %v2366_v25  ;;  %v2373_v39 = vmul.f32 %v3193_v50, %v2339_v34  ;;  %vm2379_vm3 = vweird.f32 %v3193_v50 }
 0xe09   :  { %v3195_v61 = vpop.eup %3194  ;;  %vm2380_vm5 = vmor %vm2378_vm4, %vm2379_vm3  ;;  %vm2726_vm4 = vcmask 179200  }
 0xe0a   :  { %v2371_v52 = vsel %vm2370_vm2, %v3189_v33, %v2367_v30  ;;  %v2069_v15 = vsel %vm30_vm0, %v3195_v61, 0.0  ;;  %v2374_v4 = vmul.f32 %v3193_v50, %v2373_v39 }
 0xe0b   :  { %v2404_v54 = vmul.f32 %v2371_v52, %v2332_v8  ;;  %2070 = vadd.xlane.f32.xlu1 %v2069_v15 }
 0xe0c   :  { %v2375_v59 = vmul.f32 0.5, %v2374_v4 }
 0xe0d   :  { %3018 = vmatmul.msk.f32.gmra.mxu0 %vm90_vm1, %v2404_v54 }
 0xe0e   :  { %v2376_v60 = vsub.f32 1.5, %v2375_v59 }
 0xe10   :  { %v2377_v56 = vmul.f32 %v3193_v50, %v2376_v60 }
 0xe12   :  { %v2381_v27 = vsel %vm2380_vm5, %v3193_v50, %v2377_v56 }
 0xe13   :  { %v2405_v26 = vmul.f32 %v2381_v27, %v2333_v62 }
 0xe15   :  { %3019 = vmatmul.msk.f32.gmra.mxu0 %vm90_vm1, %v2405_v26 }
 0xe78   :  { %v2068_v37 = vpop.xlane.xlu0 %2067 }
 0xe79   :  { %3196 = vrcp.f32 %v2068_v37 }
 0xe7a   :  { %v2448_v55 = vpop.f32.mrf.mxu0 }
 0xe7b   :  { %v2449_v9 = vadd.f32 %v2448_v55, %v4391_v63  ;;  %v2579_v55 = vld [vmem:[%s4575_s1 + $0x730] ss:$0 sm:$0xff] }
 0xe7d   :  { %v2466_v49 = vmul.f32 %v2449_v9, %v2449_v9 }
 0xe7e   :  { %v2071_v11 = vpop.xlane.xlu1 %2070 }
 0xe7f   :  { %v2472_v7 = vmul.f32 %v2466_v49, %v2449_v9  ;;  %v3197_v47 = vpop.eup %3196  ;;  %3198 = vrcp.f32 %v2071_v11 }
 0xe80   :  { %v2082_v14 = vmul.f32 %v3197_v47, %v3191_v42 }
 0xe81   :  { %v2478_v51 = vmul.f32 0.044715, %v2472_v7 }
 0xe82   :  { %3002 = vmatmul.msk.f32.gmra.mxu1 %vm30_vm0, %v2082_v14  ;;  %v2451_v17 = vpop.f32.mrf.mxu0 }
 0xe83   :  { %v2484_v2 = vadd.f32 %v2478_v51, %v2449_v9  ;;  %v2452_v19 = vadd.f32 %v2451_v17, %v4391_v63 }
 0xe85   :  { %v2490_v43 = vmul.f32 0.7978846, %v2484_v2  ;;  %v3199_v24 = vpop.eup %3198  ;;  %v2467_v13 = vmul.f32 %v2452_v19, %v2452_v19  ;;  %v2239_v2 = vpop.f32.mrf.mxu3 }
 0xe86   :  { %v2083_v29 = vmul.f32 %v3199_v24, %v3195_v61 }
 0xe87   :  { %3200 = vtanh.f32 %v2490_v43  ;;  %v2473_v10 = vmul.f32 %v2467_v13, %v2452_v19 }
 0xe89   :  { %v2479_v18 = vmul.f32 0.044715, %v2473_v10 }
 0xe8a   :  { %3003 = vmatmul.msk.f32.gmra.mxu1 %vm30_vm0, %v2083_v29  ;;  %v2454_v33 = vpop.f32.mrf.mxu0  ;;  %vm2585_vm0 = vcmask 1040384  }
 0xe8b   :  { %v2485_v35 = vadd.f32 %v2479_v18, %v2452_v19  ;;  %v2455_v16 = vadd.f32 %v2454_v33, %v4391_v63 }
 0xe8d   :  { %v3201_v23 = vpop.eup %3200  ;;  %v2491_v34 = vmul.f32 0.7978846, %v2485_v35  ;;  %v2468_v40 = vmul.f32 %v2455_v16, %v2455_v16  ;;  %v2242_v13 = vpop.f32.mrf.mxu3 }
 0xe8e   :  { %v2502_v22 = vadd.f32 1.0, %v3201_v23 }
 0xe8f   :  { %3202 = vtanh.f32 %v2491_v34  ;;  %v2474_v36 = vmul.f32 %v2468_v40, %v2455_v16  ;;  %v2613_v34 = vld [vmem:[%s4575_s1 + $0x740] sm:$0xff] }
 0xe90   :  { %v2508_v21 = vmul.f32 0.5, %v2502_v22  ;;  %v2616_v22 = vld [vmem:[%s4575_s1 + $0x770] sm:$0xff] }
 0xe91   :  { %v2480_v38 = vmul.f32 0.044715, %v2474_v36  ;;  %2633 = vmatpush.msrb.mxu2 %v2616_v22  ;;  %v2617_v22 = vld [vmem:[%s4575_s1 + $0x780] ss:$0 sm:$0xff] }
 0xe92   :  { %v2514_v45 = vmul.f32 %v2508_v21, %v2449_v9  ;;  %v2457_v44 = vpop.f32.mrf.mxu0 }
 0xe93   :  { %v2486_v42 = vadd.f32 %v2480_v38, %v2455_v16  ;;  %v2458_v12 = vadd.f32 %v2457_v44, %v4391_v63 }
 0xe94   :  { %3022 = vmatmul.msk.f32.vlgmr.msrb.gmra.mxu1 %vm1280_vm13, %v2514_v45 }
 0xe95   :  { %v3203_v48 = vpop.eup %3202  ;;  %v2492_v25 = vmul.f32 0.7978846, %v2486_v42  ;;  %v2469_v30 = vmul.f32 %v2458_v12, %v2458_v12 }
 0xe96   :  { %v2503_v50 = vadd.f32 1.0, %v3203_v48 }
 0xe97   :  { %3204 = vtanh.f32 %v2492_v25  ;;  %v2475_v8 = vmul.f32 %v2469_v30, %v2458_v12 }
 0xe98   :  { %v2509_v61 = vmul.f32 0.5, %v2503_v50 }
 0xe99   :  { %v2481_v39 = vmul.f32 0.044715, %v2475_v8 }
 0xe9a   :  { %v2515_v52 = vmul.f32 %v2509_v61, %v2452_v19 }
 0xe9b   :  { %v2487_v15 = vadd.f32 %v2481_v39, %v2458_v12 }
 0xe9c   :  { %3023 = vmatmul.msk.f32.gmra.mxu1 %vm1280_vm13, %v2515_v52 }
 0xe9d   :  { %v3205_v54 = vpop.eup %3204  ;;  %v2493_v4 = vmul.f32 0.7978846, %v2487_v15 }
 0xe9e   :  { %v2504_v59 = vadd.f32 1.0, %v3205_v54 }
 0xe9f   :  { %3206 = vtanh.f32 %v2493_v4 }
 0xea0   :  { %v2510_v60 = vmul.f32 0.5, %v2504_v59 }
 0xea2   :  { %v2516_v56 = vmul.f32 %v2510_v60, %v2455_v16 }
 0xea4   :  { %3024 = vmatmul.msk.f32.gmra.mxu1 %vm1280_vm13, %v2516_v56 }
 0xea5   :  { %v3207_v62 = vpop.eup %3206 }
 0xea6   :  { %v2505_v27 = vadd.f32 1.0, %v3207_v62 }
 0xea8   :  { %v2511_v26 = vmul.f32 0.5, %v2505_v27 }
 0xeaa   :  { %v2517_v0 = vmul.f32 %v2511_v26, %v2458_v12 }
 0xeac   :  { %3025 = vmatmul.msk.f32.gmra.mxu1 %vm1280_vm13, %v2517_v0  ;;  %v2648_v0 = vld [vmem:[%s4575_s1 + $0x7c0] sm:$0xff] }
 0xead   :  { %2672 = vmatpush.msra.mxu3 %v2648_v0  ;;  %v2711_v0 = vld [vmem:[%s4575_s1 + $0x830] sm:$0xff] }
 0xeff   :  { %v2131_v5 = vpop.f32.mrf.mxu1 }
 0xf00   :  { %3008 = vmatmul.msk.f32.gmra.mxu2 %vm386_vm7, %v2131_v5  ;;  %v2649_v5 = vld [vmem:[%s4575_s1 + $0x7c8] sm:$0xff] }
 0xf01   :  { %2692 = vmatpush.msra.mxu0 %v2649_v5  ;;  %v2724_v5 = vld [vmem:[%s4575_s1 + $0x900] sm:$0x3f] }
 0xf07   :  { %v2134_v32 = vpop.f32.mrf.mxu1 }
 0xf08   :  { %3009 = vmatmul.msk.f32.gmra.mxu2 %vm386_vm7, %v2134_v32  ;;  %v2646_v32 = vld [vmem:[%s4575_s1 + $0x7b0] sm:$0xff] }
 0xf09   :  { %2673 = vmatpush.msra.mxu3 %v2646_v32 }
 0xf11   :  { %v2563_v53 = vpop.f32.mrf.mxu1 }
 0xf12   :  { %v2577_v58 = vadd.f32 %v2563_v53, %v4273_v6 }
 0xf14   :  { %v2580_v49 = vadd.f32 %v2579_v55, %v2577_v58 }
 0xf19   :  { %v2566_v3 = vpop.f32.mrf.mxu1 }
 0xf21   :  { %v2568_v41 = vpop.f32.mrf.mxu1 }
 0xf29   :  { %v2570_v31 = vpop.f32.mrf.mxu1 }
 0xf2a   :  { %v2578_v37 = vadd.f32 %v2570_v31, %v4303_v28 }
 0xf2c   :  { %v2581_v9 = vadd.f32 %v2579_v55, %v2578_v37 }
 0xf2e   :  { %v2583_v7 = vrot.slane %v2581_v9, 7 }
 0xf30   :  { %v2586_v11 = vsel %vm2585_vm0, %v2580_v49, %v2583_v7 }
 0xf31   :  { %v2588_v47 = vsel %vm2587_vm6, %v2586_v11, 0.0  ;;  %v2592_v51 = vmul.f32 %v2586_v11, %v2586_v11 }
 0xf32   :  { %2589 = vadd.xlane.f32.xlu2 %v2588_v47 }
 0xf33   :  { %v2593_v14 = vsel %vm2587_vm6, %v2592_v51, 0.0  ;;  %vm2785_vm6 = vcmask 408576  }
 0xf34   :  { %2594 = vadd.xlane.f32.xlu0 %v2593_v14 }
 0xf83   :  { %v2186_v17 = vpop.f32.mrf.mxu2 }
 0xf84   :  { %v2240_v6 = vadd.f32 %v2239_v2, %v2186_v17 }
 0xf86   :  { %v2249_v28 = vadd.f32 %v2240_v6, %v3917_v46 }
 0xf88   :  { %v4412_v19 = vadd.f32 %v4269_v1, %v2249_v28 }
 0xf8a   :  { %v2270_v43 = vsel %vm90_vm1, %v4412_v19, 0.0  ;;  %v2286_v24 = vmul.f32 %v4412_v19, %v4412_v19 }
 0xf8b   :  { %2271 = vadd.xlane.f32.xlu1 %v2270_v43  ;;  %v2189_v10 = vpop.f32.mrf.mxu2 }
 0xf8c   :  { %v2243_v29 = vadd.f32 %v2242_v13, %v2189_v10  ;;  %v2300_v18 = vsel %vm90_vm1, %v2286_v24, 0.0 }
 0xf8d   :  { %2301 = vadd.xlane.f32.xlu2 %v2300_v18 }
 0xf8e   :  { %v2250_v33 = vadd.f32 %v2243_v29, %v3925_v20  ;;  %v2615_v20 = vld [vmem:[%s4575_s1 + $0x760] sm:$0xff] }
 0xf8f   :  { %2634 = vmatpush.msrb.mxu2 %v2615_v20 }
 0xf90   :  { %v4421_v46 = vadd.f32 %v4269_v1, %v2250_v33  ;;  %v2614_v1 = vld [vmem:[%s4575_s1 + $0x750] sm:$0xff] }
 0xf91   :  { %2635 = vmatpush.msrb.mxu2 %v2614_v1 }
 0xf92   :  { %v2273_v35 = vsel %vm90_vm1, %v4421_v46, 0.0  ;;  %v2287_v16 = vmul.f32 %v4421_v46, %v4421_v46 }
 0xf93   :  { %2274 = vadd.xlane.f32.xlu0 %v2273_v35  ;;  %2636 = vmatpush.msrb.mxu2 %v2613_v34  ;;  %v2644_v35 = vld [vmem:[%s4575_s1 + $0x7a0] sm:$0xff] }
 0xf94   :  { %v2303_v23 = vsel %vm90_vm1, %v2287_v16, 0.0  ;;  %v2645_v16 = vld [vmem:[%s4575_s1 + $0x7a8] sm:$0xff]  ;;  %2674 = vmatpush.msra.mxu3 %v2644_v35  ;;  %v2781_v35 = vld [vmem:[%s4575_s1 + $0x960] sm:$0xff] }
 0xf95   :  { %2304 = vadd.xlane.f32.xlu1 %v2303_v23  ;;  %v2643_v23 = vld [vmem:[%s4575_s1 + $0x798] sm:$0xff] }
 0xfa5   :  { %v2590_v40 = vpop.xlane.xlu2 %2589 }
 0xfa6   :  { %v2591_v21 = vmul.f32 %v2590_v40, %v3377_v57  ;;  %v2721_v40 = vld [vmem:[%s4575_s1 + $0x8d0] sm:$0xff] }
 0xfa7   :  { %v2595_v36 = vpop.xlane.xlu0 %2594  ;;  %2734 = vmatpush.msra.mxu2 %v2721_v40 }
 0xfa8   :  { %v2597_v45 = vmul.f32 %v2591_v21, %v2591_v21  ;;  %v2596_v38 = vmul.f32 %v2595_v36, %v3377_v57  ;;  %v2600_v39 = vsub.f32 %v2586_v11, %v2591_v21 }
 0xfaa   :  { %v2598_v42 = vsub.f32 %v2596_v38, %v2597_v45  ;;  %v2720_v38 = vld [vmem:[%s4575_s1 + $0x8c0] sm:$0xff] }
 0xfab   :  { %2735 = vmatpush.msra.mxu2 %v2720_v38  ;;  %v2784_v38 = vld [vmem:[%s4575_s1 + $0x990] ss:$0 sm:$0xff] }
 0xfac   :  { %v2599_v44 = vmax.f32 %v2598_v42, 0.0  ;;  %v2719_v42 = vld [vmem:[%s4575_s1 + $0x8b0] sm:$0xff] }
 0xfad   :  { %2736 = vmatpush.msra.mxu2 %v2719_v42 }
 0xfae   :  { %v2601_v12 = vadd.f32 1e-12, %v2599_v44 }
 0xfb0   :  { %3208 = vrsqrt.f32 %v2601_v12  ;;  %vm2608_vm8 = vweird.f32 %v2601_v12 }
 0xfb6   :  { %v3209_v48 = vpop.eup %3208 }
 0xfb7   :  { %v2603_v25 = vmul.f32 %v3209_v48, %v2601_v12  ;;  %vm2609_vm7 = vweird.f32 %v3209_v48  ;;  %v2718_v12 = vld [vmem:[%s4575_s1 + $0x8a0] sm:$0xff] }
 0xfb8   :  { %vm2610_vm9 = vmor %vm2608_vm8, %vm2609_vm7  ;;  %2737 = vmatpush.msra.mxu2 %v2718_v12 }
 0xfb9   :  { %v2604_v30 = vmul.f32 %v3209_v48, %v2603_v25  ;;  %v2717_v25 = vld [vmem:[%s4575_s1 + $0x890] sm:$0xff] }
 0xfba   :  { %2738 = vmatpush.msra.mxu2 %v2717_v25 }
 0xfbb   :  { %v2605_v50 = vmul.f32 0.5, %v2604_v30 }
 0xfbd   :  { %v2606_v8 = vsub.f32 1.5, %v2605_v50 }
 0xfbf   :  { %v2607_v61 = vmul.f32 %v3209_v48, %v2606_v8  ;;  %v2716_v8 = vld [vmem:[%s4575_s1 + $0x880] sm:$0xff] }
 0xfc0   :  { %2739 = vmatpush.msra.mxu2 %v2716_v8 }
 0xfc1   :  { %v2611_v52 = vsel %vm2610_vm9, %v3209_v48, %v2607_v61 }
 0xfc2   :  { %v2612_v15 = vmul.f32 %v2611_v52, %v2600_v39  ;;  %v2715_v52 = vld [vmem:[%s4575_s1 + $0x870] sm:$0xff] }
 0xfc3   :  { %2740 = vmatpush.msra.mxu2 %v2715_v52 }
 0xfc4   :  { %3028 = vmatmul.msk.f32.vlgmr.msrb.gmra.mxu2 %vm90_vm1, %v2612_v15 }
 0xffe   :  { %v2272_v54 = vpop.xlane.xlu1 %2271 }
 0xfff   :  { %v2280_v4 = vmul.f32 %v2272_v54, %v3377_v57  ;;  %v2714_v54 = vld [vmem:[%s4575_s1 + $0x860] sm:$0xff] }
0x1000   :  { %v2302_v59 = vpop.xlane.xlu2 %2301  ;;  %2741 = vmatpush.msra.mxu2 %v2714_v54 }
0x1001   :  { %v2316_v60 = vmul.f32 %v2280_v4, %v2280_v4  ;;  %v2310_v56 = vmul.f32 %v2302_v59, %v3377_v57  ;;  %v2334_v17 = vsub.f32 %v4412_v19, %v2280_v4  ;;  %v2647_v19 = vld [vmem:[%s4575_s1 + $0x7b8] sm:$0xff]  ;;  %v2713_v59 = vld [vmem:[%s4575_s1 + $0x850] sm:$0xff] }
0x1002   :  { %2693 = vmatpush.msra.mxu0 %v2647_v19  ;;  %2742 = vmatpush.msra.mxu2 %v2713_v59 }
0x1003   :  { %v2322_v62 = vsub.f32 %v2310_v56, %v2316_v60  ;;  %v2712_v60 = vld [vmem:[%s4575_s1 + $0x840] sm:$0xff] }
0x1004   :  { %2694 = vmatpush.msra.mxu0 %v2645_v16  ;;  %2743 = vmatpush.msra.mxu2 %v2712_v60  ;;  %v2780_v16 = vld [vmem:[%s4575_s1 + $0x950] sm:$0xff] }
0x1005   :  { %v2328_v27 = vmax.f32 %v2322_v62, 0.0 }
0x1006   :  { %v2275_v26 = vpop.xlane.xlu0 %2274  ;;  %2695 = vmatpush.msra.mxu0 %v2643_v23  ;;  %2744 = vmatpush.msra.mxu2 %v2711_v0  ;;  %v2778_v23 = vld [vmem:[%s4575_s1 + $0x930] sm:$0xff] }
0x1007   :  { %v2340_v53 = vadd.f32 1e-12, %v2328_v27  ;;  %v2281_v3 = vmul.f32 %v2275_v26, %v3377_v57 }
0x1008   :  { %v2305_v41 = vpop.xlane.xlu1 %2304 }
0x1009   :  { %3210 = vrsqrt.f32 %v2340_v53  ;;  %v2317_v31 = vmul.f32 %v2281_v3, %v2281_v3  ;;  %v2311_v58 = vmul.f32 %v2305_v41, %v3377_v57  ;;  %vm2388_vm11 = vweird.f32 %v2340_v53 }
0x100a   :  { %v2335_v29 = vsub.f32 %v4421_v46, %v2281_v3  ;;  %v2642_v46 = vld [vmem:[%s4575_s1 + $0x790] sm:$0xff] }
0x100b   :  { %v2323_v37 = vsub.f32 %v2311_v58, %v2317_v31  ;;  %2675 = vmatpush.msra.mxu3 %v2642_v46  ;;  %v2723_v3 = vld [vmem:[%s4575_s1 + $0x8f0] sm:$0xff]  ;;  %v2722_v58 = vld [vmem:[%s4575_s1 + $0x8e0] sm:$0xff] }
0x100c   :  { %v2709_v31 = vld [vmem:[%s4575_s1 + $0x810] sm:$0xff]  ;;  %v2779_v46 = vld [vmem:[%s4575_s1 + $0x940] sm:$0xff] }
0x100d   :  { %v2329_v55 = vmax.f32 %v2323_v37, 0.0  ;;  %v2708_v37 = vld [vmem:[%s4575_s1 + $0x800] sm:$0xff] }
0x100f   :  { %v3211_v9 = vpop.eup %3210  ;;  %v2341_v7 = vadd.f32 1e-12, %v2329_v55 }
0x1010   :  { %v2383_v49 = vmul.f32 %v3211_v9, %v2340_v53  ;;  %vm2389_vm10 = vweird.f32 %v3211_v9  ;;  %v2710_v53 = vld [vmem:[%s4575_s1 + $0x820] sm:$0xff] }
0x1011   :  { %3212 = vrsqrt.f32 %v2341_v7  ;;  %vm2390_vm12 = vmor %vm2388_vm11, %vm2389_vm10  ;;  %vm2398_vm15 = vweird.f32 %v2341_v7  ;;  %2745 = vmatpush.msra.mxu2 %v2710_v53 }
0x1012   :  { %v2384_v11 = vmul.f32 %v3211_v9, %v2383_v49  ;;  %v2707_v49 = vld [vmem:[%s4575_s1 + $0x7f0] sm:$0xff] }
0x1013   :  { %2746 = vmatpush.msra.mxu2 %v2709_v31 }
0x1014   :  { %v2385_v47 = vmul.f32 0.5, %v2384_v11  ;;  %v2706_v11 = vld [vmem:[%s4575_s1 + $0x7e0] sm:$0xff] }
0x1015   :  { %2747 = vmatpush.msra.mxu2 %v2708_v37 }
0x1016   :  { %v2386_v51 = vsub.f32 1.5, %v2385_v47 }
0x1017   :  { %v3213_v14 = vpop.eup %3212  ;;  %2748 = vmatpush.msra.mxu2 %v2707_v49 }
0x1018   :  { %v2387_v2 = vmul.f32 %v3211_v9, %v2386_v51  ;;  %v2393_v6 = vmul.f32 %v3213_v14, %v2341_v7  ;;  %vm2399_vm14 = vweird.f32 %v3213_v14  ;;  %v3029_v51 = vld [vmem:[%s4575_s1 + $0x7d0] ss:$8 sm:$0x3] }
0x1019   :  { %vm2400_vm2 = vmor %vm2398_vm15, %vm2399_vm14  ;;  %2749 = vmatpush.msra.mxu2 %v2706_v11 }
0x101a   :  { %v2391_v28 = vsel %vm2390_vm12, %v3211_v9, %v2387_v2  ;;  %v2394_v43 = vmul.f32 %v3213_v14, %v2393_v6 }
0x101b   :  { %v2406_v57 = vmul.f32 %v2391_v28, %v2334_v17  ;;  %v2653_v28 = vperm.slane %v3029_v51, 0 }
0x101c   :  { %v2395_v24 = vmul.f32 0.5, %v2394_v43 }
0x101d   :  { %3020 = vmatmul.msk.f32.gmra.mxu0 %vm90_vm1, %v2406_v57 }
0x101e   :  { %v2396_v13 = vsub.f32 1.5, %v2395_v24 }
0x1020   :  { %v2397_v10 = vmul.f32 %v3213_v14, %v2396_v13 }
0x1022   :  { %v2401_v18 = vsel %vm2400_vm2, %v3213_v14, %v2397_v10  ;;  %v2654_v14 = vperm.slane %v3029_v51, 1 }
0x1023   :  { %v2407_v33 = vmul.f32 %v2401_v18, %v2335_v29  ;;  %v2783_v18 = vld [vmem:[%s4575_s1 + $0x980] sm:$0x3] }
0x1025   :  { %3021 = vmatmul.msk.f32.gmra.mxu0 %vm90_vm1, %v2407_v33  ;;  %v2782_v33 = vld [vmem:[%s4575_s1 + $0x970] sm:$0xff] }
0x1047   :  { %v2638_v20 = vpop.f32.mrf.mxu2 }
0x1048   :  { %v2639_v1 = vadd.f32 %v2638_v20, %v2617_v22  ;;  %v2777_v22 = vld [vmem:[%s4575_s1 + $0x920] sm:$0xff]  ;;  %v2725_v20 = vld [vmem:[%s4575_s1 + $0x910] ss:$0 sm:$0xff] }
0x104a   :  { %3214 = vtanh.f32 %v2639_v1 }
0x1050   :  { %v3215_v34 = vpop.eup %3214 }
0x1051   :  { %3030 = vmatmul.msk.f32.vlgmr.msra.gmra.mxu3 %vm90_vm1, %v3215_v34  ;;  %3031 = vmatmul.msk.f32.vlgmr.msra.gmra.mxu0 %vm90_vm1, %v3215_v34  ;;  %vm2730_vm1 = vcmask 1045504  }
0x1052   :  { %3032 = vmatpush.msk.msrb.mxu3 %vm2730_vm1, %v2724_v5 }
0x1054   :  { %2768 = vmatpush.msrb.mxu3 %v2723_v3 }
0x1056   :  { %2769 = vmatpush.msrb.mxu3 %v2722_v58 }
0x109a   :  { %v2460_v21 = vpop.f32.mrf.mxu0 }
0x109b   :  { %v2461_v36 = vadd.f32 %v2460_v21, %v4391_v63 }
0x109d   :  { %v2470_v45 = vmul.f32 %v2461_v36, %v2461_v36 }
0x109f   :  { %v2476_v44 = vmul.f32 %v2470_v45, %v2461_v36 }
0x10a1   :  { %v2482_v48 = vmul.f32 0.044715, %v2476_v44 }
0x10a2   :  { %v2463_v50 = vpop.f32.mrf.mxu0 }
0x10a3   :  { %v2488_v30 = vadd.f32 %v2482_v48, %v2461_v36  ;;  %v2464_v61 = vadd.f32 %v2463_v50, %v4391_v63 }
0x10a5   :  { %v2494_v39 = vmul.f32 0.7978846, %v2488_v30  ;;  %v2471_v15 = vmul.f32 %v2464_v61, %v2464_v61 }
0x10a7   :  { %3216 = vtanh.f32 %v2494_v39  ;;  %v2477_v4 = vmul.f32 %v2471_v15, %v2464_v61 }
0x10a9   :  { %v2483_v63 = vmul.f32 0.044715, %v2477_v4 }
0x10ab   :  { %v2489_v56 = vadd.f32 %v2483_v63, %v2464_v61 }
0x10ad   :  { %v3217_v62 = vpop.eup %3216  ;;  %v2495_v27 = vmul.f32 0.7978846, %v2489_v56 }
0x10ae   :  { %v2506_v26 = vadd.f32 1.0, %v3217_v62 }
0x10af   :  { %3218 = vtanh.f32 %v2495_v27 }
0x10b0   :  { %v2512_v32 = vmul.f32 0.5, %v2506_v26 }
0x10b2   :  { %v2518_v41 = vmul.f32 %v2512_v32, %v2461_v36 }
0x10b4   :  { %3026 = vmatmul.msk.f32.gmra.mxu1 %vm1280_vm13, %v2518_v41 }
0x10b5   :  { %v3219_v55 = vpop.eup %3218 }
0x10b6   :  { %v2507_v9 = vadd.f32 1.0, %v3219_v55 }
0x10b8   :  { %v2513_v7 = vmul.f32 0.5, %v2507_v9 }
0x10ba   :  { %v2519_v47 = vmul.f32 %v2513_v7, %v2464_v61 }
0x10bc   :  { %3027 = vmatmul.msk.f32.gmra.mxu1 %vm1280_vm13, %v2519_v47  ;;  %vm2789_vm13 = vcmask 1041408  }
0x10bd   :  { %3034 = vmatpush.msk.msrb.mxu0 %vm2789_vm13, %v2783_v18 }
0x10bf   :  { %2803 = vmatpush.msrb.mxu0 %v2782_v33 }
0x10c1   :  { %2804 = vmatpush.msrb.mxu0 %v2781_v35 }
0x10c3   :  { %2805 = vmatpush.msrb.mxu0 %v2780_v16 }
0x10c5   :  { %2806 = vmatpush.msrb.mxu0 %v2779_v46 }
0x10c7   :  { %2807 = vmatpush.msrb.mxu0 %v2778_v23 }
0x10c9   :  { %2808 = vmatpush.msrb.mxu0 %v2777_v22 }
0x10ce   :  { %v2697_v2 = vpop.f32.mrf.mxu0 }
0x10cf   :  { %v2698_v17 = vadd.f32 %v2697_v2, %v2654_v14 }
0x10d1   :  { %vm2701_vm3 = vcmp.ge.f32.partialorder %v2698_v17, 0.0  ;;  %v2703_v6 = vmul.f32 0.01, %v2698_v17 }
0x10d3   :  { %v2705_v43 = vsel %vm2701_vm3, %v2698_v17, %v2703_v6 }
0x10d4   :  { %v2677_v57 = vpop.f32.mrf.mxu3  ;;  %3033 = vmatmul.msk.f32.vlgmr.msrb.gmra.mxu3 %vm2726_vm4, %v2705_v43 }
0x10d5   :  { %v2678_v24 = vadd.f32 %v2677_v57, %v2653_v28 }
0x10d7   :  { %vm2700_vm5 = vcmp.ge.f32.partialorder %v2678_v24, 0.0  ;;  %v2702_v13 = vmul.f32 0.01, %v2678_v24 }
0x10d9   :  { %v2704_v10 = vsel %vm2700_vm5, %v2678_v24, %v2702_v13 }
0x10da   :  { %2750 = vmatmul.f32.vlgmr.msra.gmra.mxu2 %v2704_v10 }
0x1131   :  { %v2573_v29 = vpop.f32.mrf.mxu1 }
0x1139   :  { %v2575_v19 = vpop.f32.mrf.mxu1 }
0x1157   :  { %v2771_v40 = vpop.f32.mrf.mxu3 }
0x115d   :  { %v2751_v1 = vpop.f32.mrf.mxu2 }
0x115e   :  { %v2752_v34 = vadd.f32 %v2751_v1, %v2725_v20 }
0x1160   :  { %v2772_v21 = vadd.f32 %v2771_v40, %v2752_v34 }
0x1162   :  { %vm2774_vm0 = vcmp.ge.f32.partialorder %v2772_v21, 0.0  ;;  %v2775_v36 = vmul.f32 0.01, %v2772_v21 }
0x1164   :  { %v2776_v45 = vsel %vm2774_vm0, %v2772_v21, %v2775_v36 }
0x1165   :  { %3035 = vmatmul.msk.f32.vlgmr.msrb.gmra.mxu0 %vm2785_vm6, %v2776_v45 }
0x11e2   :  { %v2810_v42 = vpop.f32.mrf.mxu0 }
0x11e3   :  { %v2811_v44 = vadd.f32 %v2810_v42, %v2784_v38 }
0x11e5   :  { %2813 = vst [vmem:[#allocation2] sm:$0x3] %v2811_v44 }
0x11e6   :  { %2824 = dma.vmem_to_hbm [thread:$0]  %s2820_s3, 32, %s2822_s6, [#allocation3]  }
0x11e7   :  { %3250 = dma.done.wait [#allocation3], 32  }
0x11e8   :  { %3251 = vsyncadd [#allocation3], 4294967264 }
0x11e9   :  { %2829 = vsyncpa [#allocation3], 1 }

</bundles_post_ra>
